<compile_context>
chip_gen: v7x
topology: tpu7x:2x2x1
jax: 0.10.0
libtpu: 0.0.40
codegen_flags: <defaults>
</compile_context>

<pallas_src>
import functools

import jax
import jax.numpy as jnp
from jax import lax
from jax.experimental import pallas as pl
from jax.experimental.pallas import tpu as pltpu


# ---------------------------------------------------------------------------
# Pallas kernel: in-VMEM im2col (single GEMM) + folded-BN bias + ReLU
# ---------------------------------------------------------------------------
def _conv_bn_relu_kernel(x_ref, w_ref, b_ref, o_ref, *,
                         KH, KW, C, stride, TH, OW, single_matmul):
    """One grid step = TH output rows (full output width) of one image.

    x_ref : (Hp, Wp, C)     bf16  padded NHWC image (batch dim squeezed)
    w_ref : (KH*KW*C, OCp)  bf16  BN-scale-folded weights, K ordered (kh,kw,c)
    b_ref : (1, OCp)        f32   folded BN bias
    o_ref : (TH, OW, OCp)   bf16  output tile (lane-dense, OCp % 128 == 0)
    """
    i = pl.program_id(1)
    h0 = pl.multiple_of(i * (TH * stride), TH * stride)

    taps = []
    for kh in range(KH):                      # static, fully unrolled
        for kw in range(KW):
            if stride == 1:
                t = x_ref[pl.ds(h0 + kh, TH), pl.ds(kw, OW), :]
            else:
                # TODO(synk): strided pl.ds on two axes at once is unverified
                # in Mosaic for stride > 1 (only stride == 1 exercised here).
                t = x_ref[pl.ds(h0 + kh, TH, stride), pl.ds(kw, OW, stride), :]
            taps.append(t)                    # (TH, OW, C) bf16

    if single_matmul:
        # im2col patch with last dim K = KH*KW*C -> one MXU contraction.
        patch = jnp.concatenate(taps, axis=-1)            # (TH, OW, K)
        patch = patch.reshape(TH * OW, KH * KW * C)       # major-dim merge
        y = jnp.dot(patch, w_ref[...],
                    preferred_element_type=jnp.float32)   # (TH*OW, OCp) f32
    else:
        # Fallback: per-tap dots accumulated in SSA (vregs), stored once.
        y = None
        for t_idx, t in enumerate(taps):
            contrib = jnp.dot(t.reshape(TH * OW, C),
                              w_ref[t_idx * C:(t_idx + 1) * C, :],
                              preferred_element_type=jnp.float32)
            y = contrib if y is None else y + contrib

    y = jnp.maximum(y + b_ref[...], 0.0)                  # f32 epilogue
    o_ref[...] = y.reshape(TH, OW, y.shape[-1]).astype(o_ref.dtype)


def _choose_row_tile(OH, OW, OCp, target_rows=1024, max_out_tile_bytes=8 * 2**20):
    """Largest TH dividing OH with TH*OW <= target_rows (floor TH = 1) whose
    double-buffered bf16 output tile stays under max_out_tile_bytes."""
    best = 1
    for th in range(1, OH + 1):
        if OH % th != 0:
            continue
        rows = th * OW
        if th > 1 and (rows > target_rows
                       or rows * OCp * 2 * 2 > max_out_tile_bytes):
            continue
        best = th
    return best


# ---------------------------------------------------------------------------
# BasicConv2d forward (NCHW in, NCHW out)
# ---------------------------------------------------------------------------
def _forward(x_nchw, weight, gamma, beta, running_mean, running_var, *,
             stride, padding, eps, single_matmul):
    N, C, H, W = x_nchw.shape
    OC, _, KH, KW = weight.shape
    OH = (H + 2 * padding - KH) // stride + 1
    OW = (W + 2 * padding - KW) // stride + 1

    # ---- fold eval-mode BN into the conv weight and a per-channel bias -----
    # TODO(synk): training-mode BatchNorm (batch statistics over N,H,W) not implemented.
    scale = gamma / jnp.sqrt(running_var + eps)                  # (OC,)
    bias = beta - running_mean * scale                           # (OC,)
    w_folded = weight * scale[:, None, None, None]               # (OC,C,KH,KW) f32

    # OCp: lane-dense output channels; 256-granular on wide layers (v6e/v7x MXU).
    OCp = 128 if OC <= 128 else ((OC + 255) // 256) * 256
    K = KH * KW * C
    # (OC,C,KH,KW) -> (KH,KW,C,OC) -> (K, OC); K ordering matches the in-kernel
    # tap concat ((kh, kw, c)); pad OC -> OCp; bf16 for the MXU.
    w2d = jnp.transpose(w_folded, (2, 3, 1, 0)).reshape(K, OC)
    w2d = jnp.pad(w2d, ((0, 0), (0, OCp - OC))).astype(jnp.bfloat16)
    bias_p = jnp.pad(bias, (0, OCp - OC)).reshape(1, OCp).astype(jnp.float32)

    # ---- NCHW -> NHWC, spatial zero-pad, bf16 activations -------------------
    x = jnp.transpose(x_nchw, (0, 2, 3, 1))
    xp = jnp.pad(x, ((0, 0), (padding, padding), (padding, padding), (0, 0)))
    xp = xp.astype(jnp.bfloat16)
    Hp, Wp = H + 2 * padding, W + 2 * padding

    TH = _choose_row_tile(OH, OW, OCp)
    n_i = OH // TH

    # VMEM budget: double-buffered image / weight / bias / output blocks.
    working = 2 * (Hp * Wp * C * 2 + K * OCp * 2 + OCp * 4 + TH * OW * OCp * 2)
    # TODO(synk): for padded images bigger than ~VMEM/4 (esp. v7x's 64 MiB),
    # replace whole-image residency with a halo'd row-slab manual DMA.
    vmem_limit = int(min(48 * 2**20, max(32 * 2**20, 2 * working)))

    cost = pl.CostEstimate(
        flops=2 * N * OH * OW * K * OC,
        transcendentals=0,
        bytes_accessed=xp.size * 2 + w2d.size * 2 + bias_p.size * 4
                       + N * OH * OW * OCp * 2)

    kernel = functools.partial(_conv_bn_relu_kernel, KH=KH, KW=KW, C=C,
                               stride=stride, TH=TH, OW=OW,
                               single_matmul=single_matmul)

    out_nhwc = pl.pallas_call(
        kernel,
        out_shape=jax.ShapeDtypeStruct((N, OH, OW, OCp), jnp.bfloat16),
        grid_spec=pltpu.PrefetchScalarGridSpec(
            num_scalar_prefetch=0,
            grid=(N, n_i),
            in_specs=[
                # Whole padded image per batch element; block index constant
                # across the inner row-tile axis so it is not re-DMA'd per step.
                # TODO(synk): pipeline_mode=pl.Buffered(1) on these invariant
                # blocks would reclaim their second buffer on v7x.
                pl.BlockSpec((None, Hp, Wp, C), lambda n, i: (n, 0, 0, 0)),
                pl.BlockSpec((K, OCp), lambda n, i: (0, 0)),
                pl.BlockSpec((1, OCp), lambda n, i: (0, 0)),
            ],
            out_specs=pl.BlockSpec((None, TH, OW, OCp),
                                   lambda n, i: (n, i, 0, 0)),
        ),
        compiler_params=pltpu.CompilerParams(
            dimension_semantics=("parallel", "arbitrary"),
            vmem_limit_bytes=vmem_limit),
        cost_estimate=cost,
    )(xp, w2d, bias_p)

    # Channel slice + NCHW transpose kept only to match the PyTorch contract;
    # a real network should stay NHWC/bf16 downstream.
    out = out_nhwc[..., :OC].astype(jnp.float32)
    return jnp.transpose(out, (0, 3, 1, 2))


def basic_conv2d_forward(x, weight, gamma, beta, running_mean, running_var, *,
                         stride, padding, eps=1e-3):
    try:
        out = _forward(x, weight, gamma, beta, running_mean, running_var,
                       stride=stride, padding=padding, eps=eps,
                       single_matmul=True)
        return jax.block_until_ready(out)
    except Exception:
        # Rescue path if the unaligned lane concat does not lower on this
        # Mosaic version: per-tap dots accumulated in SSA, stored once.
        out = _forward(x, weight, gamma, beta, running_mean, running_var,
                       stride=stride, padding=padding, eps=eps,
                       single_matmul=False)
        return jax.block_until_ready(out)


# ---------------------------------------------------------------------------
# Reference (pure JAX, same bf16 weight/activation casting) for correctness
# ---------------------------------------------------------------------------
def reference_forward(x_nchw, weight, gamma, beta, running_mean, running_var,
                      *, stride, padding, eps=1e-3):
    scale = gamma / jnp.sqrt(running_var + eps)
    bias = beta - running_mean * scale
    w_folded = (weight * scale[:, None, None, None]).astype(jnp.bfloat16)
    y = lax.conv_general_dilated(
        x_nchw.astype(jnp.bfloat16), w_folded,
        window_strides=(stride, stride),
        padding=[(padding, padding), (padding, padding)],
        dimension_numbers=("NCHW", "OIHW", "NCHW"),
        preferred_element_type=jnp.float32)
    return jnp.maximum(y + bias.reshape(1, -1, 1, 1), 0.0)


if __name__ == "__main__":
    # Module config: BasicConv2d(in_planes=4, out_planes=8, kernel_size=3, stride=1, padding=1)
    in_planes, out_planes, ksize, stride, padding = 4, 8, 3, 1, 1
    N, H, W = 2, 16, 16

    key = jax.random.PRNGKey(0)
    kx, kw, kg, kb, km, kv = jax.random.split(key, 6)

    x = jax.random.normal(kx, (N, in_planes, H, W), dtype=jnp.float32)
    weight = jax.random.normal(kw, (out_planes, in_planes, ksize, ksize),
                               dtype=jnp.float32) * 0.1
    gamma = 1.0 + 0.1 * jax.random.normal(kg, (out_planes,), dtype=jnp.float32)
    beta = 0.1 * jax.random.normal(kb, (out_planes,), dtype=jnp.float32)
    running_mean = 0.1 * jax.random.normal(km, (out_planes,), dtype=jnp.float32)
    running_var = 0.5 + jnp.abs(jax.random.normal(kv, (out_planes,), dtype=jnp.float32))

    out = basic_conv2d_forward(x, weight, gamma, beta, running_mean, running_var,
                               stride=stride, padding=padding)
    out = jax.block_until_ready(out)

    ref = reference_forward(x, weight, gamma, beta, running_mean, running_var,
                            stride=stride, padding=padding)
    if not jnp.allclose(out, ref, atol=3e-2, rtol=3e-2):
        err = jnp.max(jnp.abs(out - ref))
        raise AssertionError(f"Pallas kernel output mismatch vs reference (max abs err {err})")

    print("KERNEL_OK")
</pallas_src>

<mosaic_0001>
module attributes {stable_mosaic.version = 11 : i64} {
  func.func @_conv_bn_relu_kernel(%arg0: i32, %arg1: i32, %arg2: memref<1x18x18x4xbf16, #tpu.memory_space<vmem>>, %arg3: memref<36x128xbf16, #tpu.memory_space<vmem>>, %arg4: memref<1x128xf32, #tpu.memory_space<vmem>>, %arg5: memref<1x16x16x128xbf16, #tpu.memory_space<vmem>>) attributes {dimension_semantics = [#tpu.dimension_semantics<parallel>, #tpu.dimension_semantics<arbitrary>], iteration_bounds = array<i64: 2, 1>, scalar_prefetch = 0 : i64, scratch_operands = 0 : i64, tpu.core_type = #tpu.core_type<tc>, window_params = [{transform_indices = @transform_0, window_bounds = array<i64: 1, 18, 18, 4>}, {pipeline_mode = #tpu.pipeline_mode<synchronous>, transform_indices = @transform_1, window_bounds = array<i64: 36, 128>}, {pipeline_mode = #tpu.pipeline_mode<synchronous>, transform_indices = @transform_2, window_bounds = array<i64: 1, 128>}, {transform_indices = @transform_3, window_bounds = array<i64: 1, 16, 16, 128>}]} {
    %c16_i32 = arith.constant 16 : i32
    %0 = arith.muli %arg1, %c16_i32 : i32
    %1 = tpu.assume_multiple %0, 16 : i32
    %c0_i32 = arith.constant 0 : i32
    %2 = arith.addi %1, %c0_i32 : i32
    %c0 = arith.constant 0 : index
    %3 = arith.index_cast %2 : i32 to index
    %c0_0 = arith.constant 0 : index
    %c0_1 = arith.constant 0 : index
    %4 = vector.load %arg2[%c0, %3, %c0_0, %c0_1] : memref<1x18x18x4xbf16, #tpu.memory_space<vmem>>, vector<1x16x16x4xbf16>
    %5 = vector.shape_cast %4 : vector<1x16x16x4xbf16> to vector<16x16x4xbf16>
    %c0_i32_2 = arith.constant 0 : i32
    %6 = arith.addi %1, %c0_i32_2 : i32
    %c0_3 = arith.constant 0 : index
    %7 = arith.index_cast %6 : i32 to index
    %c1 = arith.constant 1 : index
    %c0_4 = arith.constant 0 : index
    %8 = vector.load %arg2[%c0_3, %7, %c1, %c0_4] : memref<1x18x18x4xbf16, #tpu.memory_space<vmem>>, vector<1x16x16x4xbf16>
    %9 = vector.shape_cast %8 : vector<1x16x16x4xbf16> to vector<16x16x4xbf16>
    %c0_i32_5 = arith.constant 0 : i32
    %10 = arith.addi %1, %c0_i32_5 : i32
    %c0_6 = arith.constant 0 : index
    %11 = arith.index_cast %10 : i32 to index
    %c2 = arith.constant 2 : index
    %c0_7 = arith.constant 0 : index
    %12 = vector.load %arg2[%c0_6, %11, %c2, %c0_7] : memref<1x18x18x4xbf16, #tpu.memory_space<vmem>>, vector<1x16x16x4xbf16>
    %13 = vector.shape_cast %12 : vector<1x16x16x4xbf16> to vector<16x16x4xbf16>
    %c1_i32 = arith.constant 1 : i32
    %14 = arith.addi %1, %c1_i32 : i32
    %c0_8 = arith.constant 0 : index
    %15 = arith.index_cast %14 : i32 to index
    %c0_9 = arith.constant 0 : index
    %c0_10 = arith.constant 0 : index
    %16 = vector.load %arg2[%c0_8, %15, %c0_9, %c0_10] : memref<1x18x18x4xbf16, #tpu.memory_space<vmem>>, vector<1x16x16x4xbf16>
    %17 = vector.shape_cast %16 : vector<1x16x16x4xbf16> to vector<16x16x4xbf16>
    %c1_i32_11 = arith.constant 1 : i32
    %18 = arith.addi %1, %c1_i32_11 : i32
    %c0_12 = arith.constant 0 : index
    %19 = arith.index_cast %18 : i32 to index
    %c1_13 = arith.constant 1 : index
    %c0_14 = arith.constant 0 : index
    %20 = vector.load %arg2[%c0_12, %19, %c1_13, %c0_14] : memref<1x18x18x4xbf16, #tpu.memory_space<vmem>>, vector<1x16x16x4xbf16>
    %21 = vector.shape_cast %20 : vector<1x16x16x4xbf16> to vector<16x16x4xbf16>
    %c1_i32_15 = arith.constant 1 : i32
    %22 = arith.addi %1, %c1_i32_15 : i32
    %c0_16 = arith.constant 0 : index
    %23 = arith.index_cast %22 : i32 to index
    %c2_17 = arith.constant 2 : index
    %c0_18 = arith.constant 0 : index
    %24 = vector.load %arg2[%c0_16, %23, %c2_17, %c0_18] : memref<1x18x18x4xbf16, #tpu.memory_space<vmem>>, vector<1x16x16x4xbf16>
    %25 = vector.shape_cast %24 : vector<1x16x16x4xbf16> to vector<16x16x4xbf16>
    %c2_i32 = arith.constant 2 : i32
    %26 = arith.addi %1, %c2_i32 : i32
    %c0_19 = arith.constant 0 : index
    %27 = arith.index_cast %26 : i32 to index
    %c0_20 = arith.constant 0 : index
    %c0_21 = arith.constant 0 : index
    %28 = vector.load %arg2[%c0_19, %27, %c0_20, %c0_21] : memref<1x18x18x4xbf16, #tpu.memory_space<vmem>>, vector<1x16x16x4xbf16>
    %29 = vector.shape_cast %28 : vector<1x16x16x4xbf16> to vector<16x16x4xbf16>
    %c2_i32_22 = arith.constant 2 : i32
    %30 = arith.addi %1, %c2_i32_22 : i32
    %c0_23 = arith.constant 0 : index
    %31 = arith.index_cast %30 : i32 to index
    %c1_24 = arith.constant 1 : index
    %c0_25 = arith.constant 0 : index
    %32 = vector.load %arg2[%c0_23, %31, %c1_24, %c0_25] : memref<1x18x18x4xbf16, #tpu.memory_space<vmem>>, vector<1x16x16x4xbf16>
    %33 = vector.shape_cast %32 : vector<1x16x16x4xbf16> to vector<16x16x4xbf16>
    %c2_i32_26 = arith.constant 2 : i32
    %34 = arith.addi %1, %c2_i32_26 : i32
    %c0_27 = arith.constant 0 : index
    %35 = arith.index_cast %34 : i32 to index
    %c2_28 = arith.constant 2 : index
    %c0_29 = arith.constant 0 : index
    %36 = vector.load %arg2[%c0_27, %35, %c2_28, %c0_29] : memref<1x18x18x4xbf16, #tpu.memory_space<vmem>>, vector<1x16x16x4xbf16>
    %37 = vector.shape_cast %36 : vector<1x16x16x4xbf16> to vector<16x16x4xbf16>
    %38 = tpu.concatenate %5, %9, %13, %17, %21, %25, %29, %33, %37 in 2 : vector<16x16x4xbf16>, vector<16x16x4xbf16>, vector<16x16x4xbf16>, vector<16x16x4xbf16>, vector<16x16x4xbf16>, vector<16x16x4xbf16>, vector<16x16x4xbf16>, vector<16x16x4xbf16>, vector<16x16x4xbf16> -> vector<16x16x36xbf16>
    %39 = vector.shape_cast %38 : vector<16x16x36xbf16> to vector<256x36xbf16>
    %c0_30 = arith.constant 0 : index
    %c0_31 = arith.constant 0 : index
    %40 = vector.load %arg3[%c0_30, %c0_31] : memref<36x128xbf16, #tpu.memory_space<vmem>>, vector<36x128xbf16>
    %cst = arith.constant dense<0.000000e+00> : vector<256x128xf32>
    %41 = tpu.matmul %39, %40, %cst {dimension_numbers = #tpu.dot_dimension_numbers<[1], [0], [0], [1], [0, 0, 1, 1], [], []>} : vector<256x36xbf16>, vector<36x128xbf16>, vector<256x128xf32> -> vector<256x128xf32>
    %c0_32 = arith.constant 0 : index
    %c0_33 = arith.constant 0 : index
    %42 = vector.load %arg4[%c0_32, %c0_33] : memref<1x128xf32, #tpu.memory_space<vmem>>, vector<1x128xf32>
    %43 = vector.broadcast %42 : vector<1x128xf32> to vector<256x128xf32>
    %44 = arith.addf %41, %43 : vector<256x128xf32>
    %cst_34 = arith.constant 0.000000e+00 : f32
    %45 = vector.broadcast %cst_34 : f32 to vector<256x128xf32>
    %46 = arith.maximumf %44, %45 : vector<256x128xf32>
    %47 = vector.shape_cast %46 : vector<256x128xf32> to vector<16x16x128xf32>
    %48 = arith.truncf %47 : vector<16x16x128xf32> to vector<16x16x128xbf16>
    %c0_35 = arith.constant 0 : index
    %c0_36 = arith.constant 0 : index
    %c0_37 = arith.constant 0 : index
    %c0_38 = arith.constant 0 : index
    %49 = vector.load %arg5[%c0_35, %c0_36, %c0_37, %c0_38] : memref<1x16x16x128xbf16, #tpu.memory_space<vmem>>, vector<1x16x16x128xbf16>
    %50 = vector.shape_cast %49 : vector<1x16x16x128xbf16> to vector<16x16x128xbf16>
    %51 = vector.shape_cast %48 : vector<16x16x128xbf16> to vector<1x16x16x128xbf16>
    tpu.vector_store %arg5[%c0_35, %c0_36, %c0_37, %c0_38], %51 {strides = array<i32>} : memref<1x16x16x128xbf16, #tpu.memory_space<vmem>>, vector<1x16x16x128xbf16>,
    return
  }
  func.func @transform_0(%arg0: i32, %arg1: i32) -> (i32, i32, i32, i32) {
    %c0_i32 = arith.constant 0 : i32
    %c0_i32_0 = arith.constant 0 : i32
    %c0_i32_1 = arith.constant 0 : i32
    %c0_i32_2 = arith.constant 0 : i32
    return %arg0, %c0_i32, %c0_i32_0, %c0_i32_1 : i32, i32, i32, i32
  }
  func.func @transform_1(%arg0: i32, %arg1: i32) -> (i32, i32) {
    %c0_i32 = arith.constant 0 : i32
    %c0_i32_0 = arith.constant 0 : i32
    %c0_i32_1 = arith.constant 0 : i32
    return %c0_i32, %c0_i32_0 : i32, i32
  }
  func.func @transform_2(%arg0: i32, %arg1: i32) -> (i32, i32) {
    %c0_i32 = arith.constant 0 : i32
    %c0_i32_0 = arith.constant 0 : i32
    %c0_i32_1 = arith.constant 0 : i32
    return %c0_i32, %c0_i32_0 : i32, i32
  }
  func.func @transform_3(%arg0: i32, %arg1: i32) -> (i32, i32, i32, i32) {
    %c0_i32 = arith.constant 0 : i32
    %c0_i32_0 = arith.constant 0 : i32
    %c0_i32_1 = arith.constant 0 : i32
    return %arg0, %arg1, %c0_i32, %c0_i32_0 : i32, i32, i32, i32
  }
}

module attributes {stable_mosaic.version = 11 : i64} {
  func.func @_conv_bn_relu_kernel(%arg0: i32, %arg1: i32, %arg2: memref<1x18x18x4xbf16, #tpu.memory_space<vmem>>, %arg3: memref<36x128xbf16, #tpu.memory_space<vmem>>, %arg4: memref<1x128xf32, #tpu.memory_space<vmem>>, %arg5: memref<1x16x16x128xbf16, #tpu.memory_space<vmem>>) attributes {dimension_semantics = [#tpu.dimension_semantics<parallel>, #tpu.dimension_semantics<arbitrary>], iteration_bounds = array<i64: 2, 1>, scalar_prefetch = 0 : i64, scratch_operands = 0 : i64, tpu.core_type = #tpu.core_type<tc>, window_params = [{transform_indices = @transform_0, window_bounds = array<i64: 1, 18, 18, 4>}, {pipeline_mode = #tpu.pipeline_mode<synchronous>, transform_indices = @transform_1, window_bounds = array<i64: 36, 128>}, {pipeline_mode = #tpu.pipeline_mode<synchronous>, transform_indices = @transform_2, window_bounds = array<i64: 1, 128>}, {transform_indices = @transform_3, window_bounds = array<i64: 1, 16, 16, 128>}]} {
    %c16_i32 = arith.constant 16 : i32
    %0 = arith.muli %arg1, %c16_i32 : i32
    %1 = tpu.assume_multiple %0, 16 : i32
    %c0_i32 = arith.constant 0 : i32
    %2 = arith.addi %1, %c0_i32 : i32
    %c0 = arith.constant 0 : index
    %3 = arith.index_cast %2 : i32 to index
    %c0_0 = arith.constant 0 : index
    %c0_1 = arith.constant 0 : index
    %4 = vector.load %arg2[%c0, %3, %c0_0, %c0_1] : memref<1x18x18x4xbf16, #tpu.memory_space<vmem>>, vector<1x16x16x4xbf16>
    %5 = vector.shape_cast %4 : vector<1x16x16x4xbf16> to vector<16x16x4xbf16>
    %c0_i32_2 = arith.constant 0 : i32
    %6 = arith.addi %1, %c0_i32_2 : i32
    %c0_3 = arith.constant 0 : index
    %7 = arith.index_cast %6 : i32 to index
    %c1 = arith.constant 1 : index
    %c0_4 = arith.constant 0 : index
    %8 = vector.load %arg2[%c0_3, %7, %c1, %c0_4] : memref<1x18x18x4xbf16, #tpu.memory_space<vmem>>, vector<1x16x16x4xbf16>
    %9 = vector.shape_cast %8 : vector<1x16x16x4xbf16> to vector<16x16x4xbf16>
    %c0_i32_5 = arith.constant 0 : i32
    %10 = arith.addi %1, %c0_i32_5 : i32
    %c0_6 = arith.constant 0 : index
    %11 = arith.index_cast %10 : i32 to index
    %c2 = arith.constant 2 : index
    %c0_7 = arith.constant 0 : index
    %12 = vector.load %arg2[%c0_6, %11, %c2, %c0_7] : memref<1x18x18x4xbf16, #tpu.memory_space<vmem>>, vector<1x16x16x4xbf16>
    %13 = vector.shape_cast %12 : vector<1x16x16x4xbf16> to vector<16x16x4xbf16>
    %c1_i32 = arith.constant 1 : i32
    %14 = arith.addi %1, %c1_i32 : i32
    %c0_8 = arith.constant 0 : index
    %15 = arith.index_cast %14 : i32 to index
    %c0_9 = arith.constant 0 : index
    %c0_10 = arith.constant 0 : index
    %16 = vector.load %arg2[%c0_8, %15, %c0_9, %c0_10] : memref<1x18x18x4xbf16, #tpu.memory_space<vmem>>, vector<1x16x16x4xbf16>
    %17 = vector.shape_cast %16 : vector<1x16x16x4xbf16> to vector<16x16x4xbf16>
    %c1_i32_11 = arith.constant 1 : i32
    %18 = arith.addi %1, %c1_i32_11 : i32
    %c0_12 = arith.constant 0 : index
    %19 = arith.index_cast %18 : i32 to index
    %c1_13 = arith.constant 1 : index
    %c0_14 = arith.constant 0 : index
    %20 = vector.load %arg2[%c0_12, %19, %c1_13, %c0_14] : memref<1x18x18x4xbf16, #tpu.memory_space<vmem>>, vector<1x16x16x4xbf16>
    %21 = vector.shape_cast %20 : vector<1x16x16x4xbf16> to vector<16x16x4xbf16>
    %c1_i32_15 = arith.constant 1 : i32
    %22 = arith.addi %1, %c1_i32_15 : i32
    %c0_16 = arith.constant 0 : index
    %23 = arith.index_cast %22 : i32 to index
    %c2_17 = arith.constant 2 : index
    %c0_18 = arith.constant 0 : index
    %24 = vector.load %arg2[%c0_16, %23, %c2_17, %c0_18] : memref<1x18x18x4xbf16, #tpu.memory_space<vmem>>, vector<1x16x16x4xbf16>
    %25 = vector.shape_cast %24 : vector<1x16x16x4xbf16> to vector<16x16x4xbf16>
    %c2_i32 = arith.constant 2 : i32
    %26 = arith.addi %1, %c2_i32 : i32
    %c0_19 = arith.constant 0 : index
    %27 = arith.index_cast %26 : i32 to index
    %c0_20 = arith.constant 0 : index
    %c0_21 = arith.constant 0 : index
    %28 = vector.load %arg2[%c0_19, %27, %c0_20, %c0_21] : memref<1x18x18x4xbf16, #tpu.memory_space<vmem>>, vector<1x16x16x4xbf16>
    %29 = vector.shape_cast %28 : vector<1x16x16x4xbf16> to vector<16x16x4xbf16>
    %c2_i32_22 = arith.constant 2 : i32
    %30 = arith.addi %1, %c2_i32_22 : i32
    %c0_23 = arith.constant 0 : index
    %31 = arith.index_cast %30 : i32 to index
    %c1_24 = arith.constant 1 : index
    %c0_25 = arith.constant 0 : index
    %32 = vector.load %arg2[%c0_23, %31, %c1_24, %c0_25] : memref<1x18x18x4xbf16, #tpu.memory_space<vmem>>, vector<1x16x16x4xbf16>
    %33 = vector.shape_cast %32 : vector<1x16x16x4xbf16> to vector<16x16x4xbf16>
    %c2_i32_26 = arith.constant 2 : i32
    %34 = arith.addi %1, %c2_i32_26 : i32
    %c0_27 = arith.constant 0 : index
    %35 = arith.index_cast %34 : i32 to index
    %c2_28 = arith.constant 2 : index
    %c0_29 = arith.constant 0 : index
    %36 = vector.load %arg2[%c0_27, %35, %c2_28, %c0_29] : memref<1x18x18x4xbf16, #tpu.memory_space<vmem>>, vector<1x16x16x4xbf16>
    %37 = vector.shape_cast %36 : vector<1x16x16x4xbf16> to vector<16x16x4xbf16>
    %38 = vector.shape_cast %5 : vector<16x16x4xbf16> to vector<256x4xbf16>
    %c0_30 = arith.constant 0 : index
    %c0_31 = arith.constant 0 : index
    %39 = vector.load %arg3[%c0_30, %c0_31] : memref<36x128xbf16, #tpu.memory_space<vmem>>, vector<4x128xbf16>
    %cst = arith.constant dense<0.000000e+00> : vector<256x128xf32>
    %40 = tpu.matmul %38, %39, %cst {dimension_numbers = #tpu.dot_dimension_numbers<[1], [0], [0], [1], [0, 0, 1, 1], [], []>} : vector<256x4xbf16>, vector<4x128xbf16>, vector<256x128xf32> -> vector<256x128xf32>
    %41 = vector.shape_cast %9 : vector<16x16x4xbf16> to vector<256x4xbf16>
    %c4 = arith.constant 4 : index
    %c0_32 = arith.constant 0 : index
    %42 = vector.load %arg3[%c4, %c0_32] : memref<36x128xbf16, #tpu.memory_space<vmem>>, vector<4x128xbf16>
    %cst_33 = arith.constant dense<0.000000e+00> : vector<256x128xf32>
    %43 = tpu.matmul %41, %42, %cst_33 {dimension_numbers = #tpu.dot_dimension_numbers<[1], [0], [0], [1], [0, 0, 1, 1], [], []>} : vector<256x4xbf16>, vector<4x128xbf16>, vector<256x128xf32> -> vector<256x128xf32>
    %44 = arith.addf %40, %43 : vector<256x128xf32>
    %45 = vector.shape_cast %13 : vector<16x16x4xbf16> to vector<256x4xbf16>
    %c8 = arith.constant 8 : index
    %c0_34 = arith.constant 0 : index
    %46 = vector.load %arg3[%c8, %c0_34] : memref<36x128xbf16, #tpu.memory_space<vmem>>, vector<4x128xbf16>
    %cst_35 = arith.constant dense<0.000000e+00> : vector<256x128xf32>
    %47 = tpu.matmul %45, %46, %cst_35 {dimension_numbers = #tpu.dot_dimension_numbers<[1], [0], [0], [1], [0, 0, 1, 1], [], []>} : vector<256x4xbf16>, vector<4x128xbf16>, vector<256x128xf32> -> vector<256x128xf32>
    %48 = arith.addf %44, %47 : vector<256x128xf32>
    %49 = vector.shape_cast %17 : vector<16x16x4xbf16> to vector<256x4xbf16>
    %c12 = arith.constant 12 : index
    %c0_36 = arith.constant 0 : index
    %50 = vector.load %arg3[%c12, %c0_36] : memref<36x128xbf16, #tpu.memory_space<vmem>>, vector<4x128xbf16>
    %cst_37 = arith.constant dense<0.000000e+00> : vector<256x128xf32>
    %51 = tpu.matmul %49, %50, %cst_37 {dimension_numbers = #tpu.dot_dimension_numbers<[1], [0], [0], [1], [0, 0, 1, 1], [], []>} : vector<256x4xbf16>, vector<4x128xbf16>, vector<256x128xf32> -> vector<256x128xf32>
    %52 = arith.addf %48, %51 : vector<256x128xf32>
    %53 = vector.shape_cast %21 : vector<16x16x4xbf16> to vector<256x4xbf16>
    %c16 = arith.constant 16 : index
    %c0_38 = arith.constant 0 : index
    %54 = vector.load %arg3[%c16, %c0_38] : memref<36x128xbf16, #tpu.memory_space<vmem>>, vector<4x128xbf16>
    %cst_39 = arith.constant dense<0.000000e+00> : vector<256x128xf32>
    %55 = tpu.matmul %53, %54, %cst_39 {dimension_numbers = #tpu.dot_dimension_numbers<[1], [0], [0], [1], [0, 0, 1, 1], [], []>} : vector<256x4xbf16>, vector<4x128xbf16>, vector<256x128xf32> -> vector<256x128xf32>
    %56 = arith.addf %52, %55 : vector<256x128xf32>
    %57 = vector.shape_cast %25 : vector<16x16x4xbf16> to vector<256x4xbf16>
    %c20 = arith.constant 20 : index
    %c0_40 = arith.constant 0 : index
    %58 = vector.load %arg3[%c20, %c0_40] : memref<36x128xbf16, #tpu.memory_space<vmem>>, vector<4x128xbf16>
    %cst_41 = arith.constant dense<0.000000e+00> : vector<256x128xf32>
    %59 = tpu.matmul %57, %58, %cst_41 {dimension_numbers = #tpu.dot_dimension_numbers<[1], [0], [0], [1], [0, 0, 1, 1], [], []>} : vector<256x4xbf16>, vector<4x128xbf16>, vector<256x128xf32> -> vector<256x128xf32>
    %60 = arith.addf %56, %59 : vector<256x128xf32>
    %61 = vector.shape_cast %29 : vector<16x16x4xbf16> to vector<256x4xbf16>
    %c24 = arith.constant 24 : index
    %c0_42 = arith.constant 0 : index
    %62 = vector.load %arg3[%c24, %c0_42] : memref<36x128xbf16, #tpu.memory_space<vmem>>, vector<4x128xbf16>
    %cst_43 = arith.constant dense<0.000000e+00> : vector<256x128xf32>
    %63 = tpu.matmul %61, %62, %cst_43 {dimension_numbers = #tpu.dot_dimension_numbers<[1], [0], [0], [1], [0, 0, 1, 1], [], []>} : vector<256x4xbf16>, vector<4x128xbf16>, vector<256x128xf32> -> vector<256x128xf32>
    %64 = arith.addf %60, %63 : vector<256x128xf32>
    %65 = vector.shape_cast %33 : vector<16x16x4xbf16> to vector<256x4xbf16>
    %c28 = arith.constant 28 : index
    %c0_44 = arith.constant 0 : index
    %66 = vector.load %arg3[%c28, %c0_44] : memref<36x128xbf16, #tpu.memory_space<vmem>>, vector<4x128xbf16>
    %cst_45 = arith.constant dense<0.000000e+00> : vector<256x128xf32>
    %67 = tpu.matmul %65, %66, %cst_45 {dimension_numbers = #tpu.dot_dimension_numbers<[1], [0], [0], [1], [0, 0, 1, 1], [], []>} : vector<256x4xbf16>, vector<4x128xbf16>, vector<256x128xf32> -> vector<256x128xf32>
    %68 = arith.addf %64, %67 : vector<256x128xf32>
    %69 = vector.shape_cast %37 : vector<16x16x4xbf16> to vector<256x4xbf16>
    %c32 = arith.constant 32 : index
    %c0_46 = arith.constant 0 : index
    %70 = vector.load %arg3[%c32, %c0_46] : memref<36x128xbf16, #tpu.memory_space<vmem>>, vector<4x128xbf16>
    %cst_47 = arith.constant dense<0.000000e+00> : vector<256x128xf32>
    %71 = tpu.matmul %69, %70, %cst_47 {dimension_numbers = #tpu.dot_dimension_numbers<[1], [0], [0], [1], [0, 0, 1, 1], [], []>} : vector<256x4xbf16>, vector<4x128xbf16>, vector<256x128xf32> -> vector<256x128xf32>
    %72 = arith.addf %68, %71 : vector<256x128xf32>
    %c0_48 = arith.constant 0 : index
    %c0_49 = arith.constant 0 : index
    %73 = vector.load %arg4[%c0_48, %c0_49] : memref<1x128xf32, #tpu.memory_space<vmem>>, vector<1x128xf32>
    %74 = vector.broadcast %73 : vector<1x128xf32> to vector<256x128xf32>
    %75 = arith.addf %72, %74 : vector<256x128xf32>
    %cst_50 = arith.constant 0.000000e+00 : f32
    %76 = vector.broadcast %cst_50 : f32 to vector<256x128xf32>
    %77 = arith.maximumf %75, %76 : vector<256x128xf32>
    %78 = vector.shape_cast %77 : vector<256x128xf32> to vector<16x16x128xf32>
    %79 = arith.truncf %78 : vector<16x16x128xf32> to vector<16x16x128xbf16>
    %c0_51 = arith.constant 0 : index
    %c0_52 = arith.constant 0 : index
    %c0_53 = arith.constant 0 : index
    %c0_54 = arith.constant 0 : index
    %80 = vector.load %arg5[%c0_51, %c0_52, %c0_53, %c0_54] : memref<1x16x16x128xbf16, #tpu.memory_space<vmem>>, vector<1x16x16x128xbf16>
    %81 = vector.shape_cast %80 : vector<1x16x16x128xbf16> to vector<16x16x128xbf16>
    %82 = vector.shape_cast %79 : vector<16x16x128xbf16> to vector<1x16x16x128xbf16>
    tpu.vector_store %arg5[%c0_51, %c0_52, %c0_53, %c0_54], %82 {strides = array<i32>} : memref<1x16x16x128xbf16, #tpu.memory_space<vmem>>, vector<1x16x16x128xbf16>,
    return
  }
  func.func @transform_0(%arg0: i32, %arg1: i32) -> (i32, i32, i32, i32) {
    %c0_i32 = arith.constant 0 : i32
    %c0_i32_0 = arith.constant 0 : i32
    %c0_i32_1 = arith.constant 0 : i32
    %c0_i32_2 = arith.constant 0 : i32
    return %arg0, %c0_i32, %c0_i32_0, %c0_i32_1 : i32, i32, i32, i32
  }
  func.func @transform_1(%arg0: i32, %arg1: i32) -> (i32, i32) {
    %c0_i32 = arith.constant 0 : i32
    %c0_i32_0 = arith.constant 0 : i32
    %c0_i32_1 = arith.constant 0 : i32
    return %c0_i32, %c0_i32_0 : i32, i32
  }
  func.func @transform_2(%arg0: i32, %arg1: i32) -> (i32, i32) {
    %c0_i32 = arith.constant 0 : i32
    %c0_i32_0 = arith.constant 0 : i32
    %c0_i32_1 = arith.constant 0 : i32
    return %c0_i32, %c0_i32_0 : i32, i32
  }
  func.func @transform_3(%arg0: i32, %arg1: i32) -> (i32, i32, i32, i32) {
    %c0_i32 = arith.constant 0 : i32
    %c0_i32_0 = arith.constant 0 : i32
    %c0_i32_1 = arith.constant 0 : i32
    return %arg0, %arg1, %c0_i32, %c0_i32_0 : i32, i32, i32, i32
  }
}

</mosaic_0001>

<bundles_post_ra>
// kernel: tpu_custom_call.1
= control target key start
LH: loop header
LB: loop body
LE: loop exit
PB: predicated region body
PF: predicated region fallthrough
CT: control target
= control target key end

     0   :  { %8 = vsyncpa [#allocation3], 0  ;;  %s4912_s0 = inlined_call_operand.vmem [shape: bf16[2,18,18,4], index: 0, kind: input, shape index: {}]   ;;  %s4913_s1 = inlined_call_operand.vmem [shape: bf16[36,128], index: 1, kind: input, shape index: {}]   ;;  %s4914_s2 = inlined_call_operand.vmem [shape: f32[1,128], index: 2, kind: input, shape index: {}]   ;;  %s4915_s3 = inlined_call_operand.hbm [shape: bf16[2,16,16,128], index: 3, kind: output, shape index: {}]  }
   0x1   :  { %10 = vsyncpa [#allocation3 + $0x1], 0  ;;  %s3527_s12 = smov 0   ;;  %s3529_s13 = smov 0  }
   0x2   :  { %s3531_s14 = smov 0   ;;  %s3533_s15 = smov 0  }
   0x3   :  { %s3535_s16 = smov 0   ;;  %s3537_s17 = smov 0  }
   0x4 LB: > { %s2676_s18 = sadd.s32 4294967295, %s3495_s17   ;;  %s2677_s19 = sadd.s32 4294967294, %s3495_s17   ;;  %s3495_s17 = sphi %s3537_s17, %s16_s17   ;;  %s3491_s16 = sphi %s3535_s16, %s4934_s16   ;;  %s3487_s15 = sphi %s3533_s15, %s4933_s15   ;;  %s3483_s14 = sphi %s3531_s14, %s4932_s14   ;;  %s3479_s13 = sphi %s3529_s13, %s4931_s13   ;;  %s3475_s12 = sphi %s3527_s12, %s4930_s12  }
   0x5   : > { %s28_s20 = sadd.s32 1, %s3491_s16  ;;  %s105_s21 = sadd.s32 1, %s3483_s14 }
   0x6   : > { %p30_p0 = scmp.ge.s32.totalorder %s28_s20, 2  ;;  %p115_p1 = scmp.ne.s32.totalorder %s3483_s14, %s3479_s13 }
   0x7   : > { %p116_p2 = scmp.eq.s32.totalorder %s2676_s18, 1  ;;  %p121_p3 = scmp.ne.s32.totalorder %s3479_s13, %s3475_s12 }
   0x8   : > { %s4936_s20 = smov (%p30_p0, %s28_s20), 0  ;;  %p122_p5 = scmp.eq.s32.totalorder %s2677_s19, 1 }
   0x9   : > { %p3567_p4 = por %p116_p2, %p115_p1  ;;  %s100_s23 = ssub.s32 %s3491_s16, %s4936_s20 }
   0xa   : > { %p2680_p6 = scmp.ge.s32.totalorder %s3495_s17, 1  ;;  %p103_p7 = scmp.eq.s32.totalorder %s100_s23, 0 }
   0xb   : > { %p3574_p8 = por %p122_p5, %p121_p3  ;;  %p154_p9 = scmp.lt.s32.totalorder %s3495_s17, 3 }
   0xc   : > { %s3580_s25 = scalar_select %p103_p7, %s3483_s14, %s105_s21  }
   0xd   : > { %p155_p10 = pnand %p2680_p6, %p154_p9 }
   0xf   : > { %158 = sbr.rel (%p155_p10) target bundleno = 639 (0x27f), region = 32 }
  0x16   : > { %p178_p11 = scmp.lt.s32.totalorder %s3487_s15, 1  ;;  %s3497_s4 = smov 12   ;;  %vm790_vm0 = vcmask 1046528   ;;  %vm517_vm1 = vsmask.f32 7424  ;;  %vm2219_vm2 = vcmask 1041408  }
  0x17   : > { %s3498_s5 = smov 8   ;;  %s3499_s6 = smov 4   ;;  %vm1895_vm3 = vcmask 31744   ;;  %vm1928_vm4 = vcmask 64512   ;;  %vm1961_vm5 = vcmask 97280   ;;  %vm1994_vm6 = vcmask 130048  }
  0x18   : > { %s179_s26 = scalar_select %p178_p11, %s3487_s15, 1  ;;  %vm2027_vm7 = vcmask 162816   ;;  %vm2060_vm8 = vcmask 195584   ;;  %vm2093_vm9 = vcmask 228352   ;;  %vm2126_vm10 = vcmask 261120  }
  0x19   : > { %s3500_s7 = smov 16   ;;  %s3501_s8 = smov 20   ;;  %vm2186_vm11 = vcmask 293888  }
  0x1a   : > { %s3205_s27 = smul.u32 216, %s179_s26  ;;  %s3502_s11 = smov 24  }
  0x1b   : > { %s3503_s21 = smov 28   ;;  %s3504_s23 = smov 32  }
  0x1c   : > { %s3587_s30 = scalar_lea.vmem %s4912_s0, %s3205_s27  ;;  %s3505_s19 = smov [#allocation2]  }
  0x1d   : > { %v2699_v0 = vld [vmem:[%s3587_s30 + $0x6c] sm:$0xf]  ;;  %v3591_v1 = vld [vmem:[%s3587_s30 + $0x70] sm:$0xf]  ;;  %v206_v6 = vld [vmem:[%s3587_s30 + $0x64] sm:$0xf] }
  0x1e   : > { %v3594_v2 = vcombine.low %v2699_v0, %v3591_v1  ;;  %v2683_v3 = vld [vmem:[%s3587_s30 + $0xc] sm:$0xf]  ;;  %v3598_v4 = vld [vmem:[%s3587_s30 + $0x10] sm:$0xf]  ;;  %v245_v7 = vld [vmem:[%s3587_s30 + $0x60] sm:$0xe] }
  0x1f   : > { %v3601_v5 = vcombine.low %v2683_v3, %v3598_v4  ;;  %v3608_v8 = vld [vmem:[%s3587_s30 + $0x68] ss:$0 sps:$4 sm:$0x11]   ;;  %v2851_v9 = vcombine.low %v245_v7, %v206_v6  ;;  %v205_v10 = vld [vmem:[%s3587_s30 + $0x60] sm:$0xf] }
  0x20   : > { %967 = vrot.lane.b32.xlu1 %v3594_v2, %s3497_s4  ;;  %v1130_v11 = vshll.u32 %v3594_v2, 16  ;;  %v190_v12 = vld [vmem:[%s3587_s30 + $0x4] sm:$0xf]  ;;  %v816_v14 = vrot.slane %v3608_v8, 1  ;;  %v237_v15 = vld [vmem:[%s3587_s30] sm:$0xe]  ;;  %v3619_v18 = vcombine.low %v205_v10, %v206_v6 }
  0x21   : > { %951 = vrot.lane.b32.xlu0 %v3601_v5, %s3497_s4  ;;  %v815_v13 = vrot.slane %v2851_v9, 1  ;;  %v189_v16 = vld [vmem:[%s3587_s30] sm:$0xf]  ;;  %v1034_v17 = vshll.u32 %v3601_v5, 16  ;;  %v2843_v20 = vcombine.low %v237_v15, %v190_v12  ;;  %v207_v21 = vld [vmem:[%s3587_s30 + $0x6c] sm:$0xf] }
  0x22   : > { %v3277_v19 = vld [vmem:[%s3587_s30 + $0x8] ss:$0 sps:$4 sm:$0x11]   ;;  %v3624_v23 = vcombine.low %v189_v16, %v190_v12  ;;  %v208_v24 = vld [vmem:[%s3587_s30 + $0x70] sm:$0xf]  ;;  %v615_v30 = vshrl.u32 %v3619_v18, 16 }
  0x23   : > { %v817_v22 = vsel %vm790_vm0, %v815_v13, %v816_v14  ;;  %v246_v25 = vld [vmem:[%s3587_s30 + $0x6c] sm:$0xe]  ;;  %v791_v26 = vrot.slane %v2843_v20, 1  ;;  %v792_v27 = vrot.slane %v3277_v19, 1  ;;  %v3631_v31 = vcombine.low %v207_v21, %v208_v24  ;;  %v192_v33 = vld [vmem:[%s3587_s30 + $0x10] sm:$0xf] }
  0x24   : > { %855 = vrot.lane.b32.xlu1 %v817_v22, %s3498_s5  ;;  %v3281_v28 = vld [vmem:[%s3587_s30 + $0x74] ss:$0 sps:$4 sm:$0x11]   ;;  %v2852_v29 = vcombine.low %v246_v25, %v208_v24  ;;  %v191_v32 = vld [vmem:[%s3587_s30 + $0xc] sm:$0xf]  ;;  %v519_v41 = vshrl.u32 %v3624_v23, 16 }
  0x25   : > { %v793_v34 = vsel %vm790_vm0, %v791_v26, %v792_v27  ;;  %v819_v36 = vrot.slane %v3281_v28, 1  ;;  %v238_v37 = vld [vmem:[%s3587_s30 + $0xc] sm:$0xe]  ;;  %v3637_v38 = vcombine.low %v191_v32, %v192_v33  ;;  %v3284_v39 = vld [vmem:[%s3587_s30 + $0x14] ss:$0 sps:$4 sm:$0x11]  }
  0x26   : > { %v818_v35 = vrot.slane %v2852_v29, 1  ;;  %839 = vrot.lane.b32.xlu0 %v793_v34, %s3498_s5  ;;  %v2844_v40 = vcombine.low %v238_v37, %v192_v33  ;;  %v521_v42 = vshll.u32 %v3624_v23, 16  ;;  %v526_v43 = vshll.u32 %v3277_v19, 16  ;;  %v2701_v52 = vld [vmem:[%s3587_s30 + $0x78] sm:$0xf] }
  0x27   : > { %v531_v45 = vshrl.u32 %v3637_v38, 16  ;;  %v533_v46 = vshll.u32 %v3637_v38, 16  ;;  %v627_v47 = vshrl.u32 %v3631_v31, 16  ;;  %v795_v49 = vrot.slane %v3284_v39, 1  ;;  %v3651_v57 = vld [vmem:[%s3587_s30 + $0x7c] sm:$0xf] }
  0x28   : > { %v820_v44 = vsel %vm790_vm0, %v818_v35, %v819_v36  ;;  %v794_v48 = vrot.slane %v2844_v40, 1  ;;  %v538_v50 = vshll.u32 %v3284_v39, 16  ;;  %v523_v51 = vrot.slane %v521_v42, 1  ;;  %v2685_v62 = vld [vmem:[%s3587_s30 + $0x18] sm:$0xf] }
  0x29   : > { %857 = vrot.lane.b32.xlu1 %v820_v44, %s3498_s5  ;;  %v535_v53 = vrot.slane %v533_v46, 1  ;;  %v528_v54 = vrot.slane %v526_v43, 1  ;;  %v629_v55 = vshll.u32 %v3631_v31, 16  ;;  %v634_v56 = vshll.u32 %v3281_v28, 16  ;;  %v3657_v63 = vld [vmem:[%s3587_s30 + $0x1c] sm:$0xf] }
  0x2a   : > { %v796_v58 = vsel %vm790_vm0, %v794_v48, %v795_v49  ;;  %v540_v59 = vrot.slane %v538_v50, 1  ;;  %v524_v60 = vor.u32 %v523_v51, %v519_v41  ;;  %v617_v61 = vshll.u32 %v3619_v18, 16  ;;  %v3664_v13 = vld [vmem:[%s3587_s30 + $0x74] ss:$0 sps:$4 sm:$0x11]  }
  0x2b   : > { %841 = vrot.lane.b32.xlu0 %v796_v58, %s3498_s5  ;;  %v536_v0 = vor.u32 %v535_v53, %v531_v45  ;;  %v631_v3 = vrot.slane %v629_v55, 1  ;;  %v636_v6 = vrot.slane %v634_v56, 1  ;;  %v622_v7 = vshll.u32 %v3608_v8, 16  ;;  %v3669_v20 = vld [vmem:[%s3587_s30 + $0x14] ss:$0 sps:$4 sm:$0x11]  }
  0x2c   : > { %v529_v9 = vsel %vm517_vm1, %v524_v60, %v528_v54  ;;  %v619_v10 = vrot.slane %v617_v61, 1  ;;  %v2868_v12 = vcombine.low %v2701_v52, %v3651_v57  ;;  %v2860_v19 = vcombine.low %v2685_v62, %v3657_v63  ;;  %v3676_v24 = vld [vmem:[%s3587_s30 + $0x80] ss:$0 sps:$4 sm:$0x11]   ;;  %v2739_v40 = vld [vmem:[%s3587_s30 + $0x6c] sm:$0xe] }
  0x2d   : > { %v541_v14 = vsel %vm517_vm1, %v536_v0, %v540_v59  ;;  %v632_v15 = vor.u32 %v631_v3, %v627_v47  ;;  %v624_v16 = vrot.slane %v622_v7, 1  ;;  %v1128_v21 = vshrl.u32 %v3594_v2, 16  ;;  %v2731_v43 = vld [vmem:[%s3587_s30 + $0xc] sm:$0xe]  ;;  %v2740_v49 = vld [vmem:[%s3587_s30 + $0x78] sm:$0xe] }
  0x2e   : > { %712 = vrot.lane.b32.xlu1 %v541_v14, %s3499_s6  ;;  %v620_v8 = vor.u32 %v619_v10, %v615_v30  ;;  %v1132_v22 = vrot.slane %v1130_v11, 1  ;;  %v1142_v26 = vshll.u32 %v2868_v12, 16  ;;  %v1135_v27 = vshll.u32 %v3664_v13, 16  ;;  %v3687_v11 = vld [vmem:[%s3587_s30 + $0x20] ss:$0 sps:$4 sm:$0x11]  }
  0x2f   : > { %710 = vrot.lane.b32.xlu0 %v529_v9, %s3499_s6  ;;  %v637_v25 = vsel %vm517_vm1, %v632_v15, %v636_v6  ;;  %v1032_v28 = vshrl.u32 %v3601_v5, 16  ;;  %v1046_v30 = vshll.u32 %v2860_v19, 16  ;;  %v1036_v32 = vrot.slane %v1034_v17, 1  ;;  %v2732_v53 = vld [vmem:[%s3587_s30 + $0x18] sm:$0xe] }
  0x30   : > { %v625_v29 = vsel %vm517_vm1, %v620_v8, %v624_v16  ;;  %v1039_v2 = vshll.u32 %v3669_v20, 16  ;;  %v1133_v33 = vor.u32 %v1132_v22, %v1128_v21  ;;  %v1137_v34 = vrot.slane %v1135_v27, 1  ;;  %v2763_v54 = vld [vmem:[%s3587_s30 + $0x78] sm:$0xf]  ;;  %v3714_v60 = vld [vmem:[%s3587_s30 + $0x1c] sm:$0xf] }
  0x31   : > { %v1037_v35 = vor.u32 %v1036_v32, %v1032_v28  ;;  %v1140_v36 = vshrl.u32 %v2868_v12, 16  ;;  %v1144_v37 = vrot.slane %v1142_v26, 1  ;;  %v1147_v39 = vshll.u32 %v3676_v24, 16  ;;  %v2747_v55 = vld [vmem:[%s3587_s30 + $0x18] sm:$0xf] }
  0x32   : > { %728 = vrot.lane.b32.xlu1 %v637_v25, %s3499_s6  ;;  %v1041_v5 = vrot.slane %v1039_v2, 1  ;;  %v1044_v17 = vshrl.u32 %v2860_v19, 16  ;;  %v1048_v41 = vrot.slane %v1046_v30, 1  ;;  %v1051_v42 = vshll.u32 %v3687_v11, 16  ;;  %v2765_v7 = vld [vmem:[%s3587_s30 + $0x84] sm:$0xf] }
  0x33   : > { %726 = vrot.lane.b32.xlu0 %v625_v29, %s3499_s6  ;;  %v2899_v44 = vcombine.low %v2739_v40, %v3591_v1  ;;  %v1138_v45 = vsel %vm517_vm1, %v1133_v33, %v1137_v34  ;;  %v1145_v46 = vor.u32 %v1144_v37, %v1140_v36  ;;  %v1149_v47 = vrot.slane %v1147_v39, 1  ;;  %v3706_v1 = vld [vmem:[%s3587_s30 + $0x7c] sm:$0xf]  ;;  %v3724_v9 = vld [vmem:[%s3587_s30 + $0x88] sm:$0xf] }
  0x34   : > { %v2891_v48 = vcombine.low %v2731_v43, %v3598_v4  ;;  %v1042_v50 = vsel %vm517_vm1, %v1037_v35, %v1041_v5  ;;  %v1049_v51 = vor.u32 %v1048_v41, %v1044_v17  ;;  %v1053_v52 = vrot.slane %v1051_v42, 1  ;;  %v3731_v14 = vld [vmem:[%s3587_s30 + $0x28] sm:$0xf]  ;;  %v3737_v21 = vld [vmem:[%s3587_s30 + $0x80] ss:$0 sps:$4 sm:$0x11]  }
  0x35   : > { %v2900_v56 = vcombine.low %v2740_v49, %v3651_v57  ;;  %v1150_v4 = vsel %vm517_vm1, %v1145_v46, %v1149_v47  ;;  %v1327_v58 = vrot.slane %v2899_v44, 1  ;;  %v1328_v59 = vrot.slane %v3664_v13, 1  ;;  %v2749_v13 = vld [vmem:[%s3587_s30 + $0x24] sm:$0xf]  ;;  %v209_v37 = vld [vmem:[%s3587_s30 + $0x78] sm:$0xf] }
  0x36   : > { %969 = vrot.lane.b32.xlu1 %v2868_v12, %s3497_s4  ;;  %v2892_v61 = vcombine.low %v2732_v53, %v3657_v63  ;;  %v1054_v62 = vsel %vm517_vm1, %v1049_v51, %v1053_v52  ;;  %v1303_v0 = vrot.slane %v2891_v48, 1  ;;  %v1304_v3 = vrot.slane %v3669_v20, 1  ;;  %v3744_v26 = vld [vmem:[%s3587_s30 + $0x20] ss:$0 sps:$4 sm:$0x11]  }
  0x37   : > { %953 = vrot.lane.b32.xlu0 %v2860_v19, %s3497_s4  ;;  %v2915_v57 = vcombine.low %v2763_v54, %v3706_v1  ;;  %v2907_v6 = vcombine.low %v2747_v55, %v3714_v60  ;;  %v1329_v10 = vsel %vm790_vm0, %v1327_v58, %v1328_v59  ;;  %v1330_v63 = vrot.slane %v2900_v56, 1  ;;  %v3750_v34 = vld [vmem:[%s3587_s30 + $0x8c] ss:$0 sps:$4 sm:$0x11]   ;;  %v3759_v39 = vld [vmem:[%s3587_s30 + $0x7c] sm:$0xf] }
  0x38   : > { %v1331_v12 = vrot.slane %v3676_v24, 1  ;;  %v1305_v15 = vsel %vm790_vm0, %v1303_v0, %v1304_v3  ;;  %v1306_v16 = vrot.slane %v2892_v61, 1  ;;  %v1307_v19 = vrot.slane %v3687_v11, 1  ;;  %v3755_v36 = vld [vmem:[%s3587_s30 + $0x2c] ss:$0 sps:$4 sm:$0x11]  }
  0x39   : > { %v1642_v20 = vshll.u32 %v2915_v57, 16  ;;  %v2916_v8 = vcombine.low %v2765_v7, %v3724_v9  ;;  %v1546_v22 = vshll.u32 %v2907_v6, 16  ;;  %v2908_v24 = vcombine.low %v2749_v13, %v3731_v14  ;;  %v193_v40 = vld [vmem:[%s3587_s30 + $0x18] sm:$0xf]  ;;  %v3763_v17 = vld [vmem:[%s3587_s30 + $0x1c] sm:$0xf] }
  0x3a   : > { %1239 = vrot.lane.b32.xlu1 %v1138_v45, %s3500_s7  ;;  %v1332_v25 = vsel %vm790_vm0, %v1330_v63, %v1331_v12  ;;  %v1308_v27 = vsel %vm790_vm0, %v1306_v16, %v1307_v19  ;;  %v1640_v29 = vshrl.u32 %v2915_v57, 16  ;;  %v1647_v32 = vshll.u32 %v3737_v21, 16  ;;  %v3366_v41 = vld [vmem:[%s4913_s1] sm:$0xff]   ;;  %v2803_v42 = vld [vmem:[%s3587_s30 + $0x78] sm:$0xe]  ;;  %v3371_v56 = vld [vmem:[%s4913_s1 + $0x8] sm:$0xff]  }
  0x3b   : > { %1223 = vrot.lane.b32.xlu0 %v1042_v50, %s3500_s7  ;;  %v1654_v28 = vshll.u32 %v2916_v8, 16  ;;  %v1644_v30 = vrot.slane %v1642_v20, 1  ;;  %v1558_v2 = vshll.u32 %v2908_v24, 16  ;;  %v1544_v11 = vshrl.u32 %v2907_v6, 16  ;;  %v2795_v47 = vld [vmem:[%s3587_s30 + $0x18] sm:$0xe]  ;;  %3159 = vmatprep.subr.bf16.mxu0 %v3366_v41 }
  0x3c   : > { %v1548_v33 = vrot.slane %v1546_v22, 1  ;;  %v1551_v35 = vshll.u32 %v3744_v26, 16  ;;  %v1649_v43 = vrot.slane %v1647_v32, 1  ;;  %v1652_v44 = vshrl.u32 %v2916_v8, 16  ;;  %3197 = vmatprep.subr.bf16.mxu1 %v3366_v41  ;;  %3160 = vmatpush3.bf16.msra.mxu0 %v3366_v41  ;;  %v211_v7 = vld [vmem:[%s3587_s30 + $0x84] sm:$0xf] }
  0x3d   : > { %v1645_v5 = vor.u32 %v1644_v30, %v1640_v29  ;;  %v1656_v45 = vrot.slane %v1654_v28, 1  ;;  %v1659_v46 = vshll.u32 %v3750_v34, 16  ;;  %v1556_v48 = vshrl.u32 %v2908_v24, 16  ;;  %3200 = vmatpush3.bf16.msra.mxu1 %v3366_v41  ;;  %v3787_v61 = vld [vmem:[%s3587_s30 + $0x80] ss:$0 sps:$4 sm:$0x11]   ;;  %3161 = vmatprep.subr.bf16.mxu0 %v3371_v56 }
  0x3e   : > { %1241 = vrot.lane.b32.xlu1 %v1150_v4, %s3500_s7  ;;  %v1560_v49 = vrot.slane %v1558_v2, 1  ;;  %v1563_v50 = vshll.u32 %v3755_v36, 16  ;;  %v3775_v51 = vcombine.low %v209_v37, %v3759_v39  ;;  %v1549_v52 = vor.u32 %v1548_v33, %v1544_v11  ;;  %3198 = vmatprep.subr.bf16.mxu1 %v3371_v56  ;;  %v195_v13 = vld [vmem:[%s3587_s30 + $0x24] sm:$0xf] }
  0x3f   : > { %1225 = vrot.lane.b32.xlu0 %v1054_v62, %s3500_s7  ;;  %v1553_v53 = vrot.slane %v1551_v35, 1  ;;  %v3778_v54 = vcombine.low %v193_v40, %v3763_v17  ;;  %v2947_v55 = vcombine.low %v2803_v42, %v3706_v1  ;;  %v2939_v4 = vcombine.low %v2795_v47, %v3714_v60  ;;  %v2804_v16 = vld [vmem:[%s3587_s30 + $0x84] sm:$0xe]  ;;  %v3829_v40 = vld [vmem:[%s3587_s30 + $0x8c] ss:$0 sps:$4 sm:$0x11]  }
  0x40   : > { %v1657_v58 = vor.u32 %v1656_v45, %v1652_v44  ;;  %v1661_v59 = vrot.slane %v1659_v46, 1  ;;  %v1650_v1 = vsel %vm517_vm1, %v1645_v5, %v1649_v43  ;;  %v1561_v62 = vor.u32 %v1560_v49, %v1556_v48  ;;  %3162 = vmatpush3.bf16.msra.mxu0 %v3371_v56 }
  0x41   : > { %v1565_v0 = vrot.slane %v1563_v50, 1  ;;  %v641_v3 = vshll.u32 %v3775_v51, 16  ;;  %v1554_v60 = vsel %vm517_vm1, %v1549_v52, %v1553_v53  ;;  %v1839_v63 = vrot.slane %v2947_v55, 1  ;;  %3201 = vmatpush3.bf16.msra.mxu1 %v3371_v56  ;;  %v247_v53 = vld [vmem:[%s3587_s30 + $0x78] sm:$0xe] }
  0x42   : > { %1367 = vrot.lane.b32.xlu1 %v1329_v10, %s3501_s8  ;;  %v3799_v10 = vld [vmem:[%s3587_s30 + $0x88] sm:$0xf]  ;;  %v1840_v12 = vrot.slane %v3737_v21, 1  ;;  %v1662_v19 = vsel %vm517_vm1, %v1657_v58, %v1661_v59  ;;  %v1815_v20 = vrot.slane %v2939_v4, 1  ;;  %v646_v22 = vshll.u32 %v3787_v61, 16 }
  0x43   : > { %1351 = vrot.lane.b32.xlu0 %v1305_v15, %s3501_s8  ;;  %v3804_v15 = vld [vmem:[%s3587_s30 + $0x28] sm:$0xf]  ;;  %v1566_v21 = vsel %vm517_vm1, %v1561_v62, %v1565_v0  ;;  %v3816_v28 = vcombine.low %v211_v7, %v3799_v10  ;;  %v543_v29 = vshrl.u32 %v3778_v54, 16  ;;  %v2948_v2 = vcombine.low %v2804_v16, %v3724_v9  ;;  %v3834_v9 = vld [vmem:[%s3587_s30 + $0x2c] ss:$0 sps:$4 sm:$0x11]  }
  0x44   : > { %v3821_v32 = vcombine.low %v195_v13, %v3804_v15  ;;  %v648_v33 = vrot.slane %v646_v22, 1  ;;  %v1841_v35 = vsel %vm790_vm0, %v1839_v63, %v1840_v12  ;;  %v1843_v45 = vrot.slane %v3750_v34, 1  ;;  %v240_v63 = vld [vmem:[%s3587_s30 + $0x24] sm:$0xe] }
  0x45   : > { %v653_v5 = vshll.u32 %v3816_v28, 16  ;;  %v1842_v44 = vrot.slane %v2948_v2, 1  ;;  %v1819_v47 = vrot.slane %v3755_v36, 1  ;;  %v651_v49 = vshrl.u32 %v3816_v28, 16  ;;  %v239_v36 = vld [vmem:[%s3587_s30 + $0x18] sm:$0xe] }
  0x46   : > { %1369 = vrot.lane.b32.xlu1 %v1332_v25, %s3501_s8  ;;  %v639_v25 = vshrl.u32 %v3775_v51, 16  ;;  %v658_v52 = vshll.u32 %v3829_v40, 16  ;;  %v555_v56 = vshrl.u32 %v3821_v32, 16  ;;  %v562_v4 = vshll.u32 %v3834_v9, 16 }
  0x47   : > { %1353 = vrot.lane.b32.xlu0 %v1308_v27, %s3501_s8  ;;  %v643_v27 = vrot.slane %v641_v3, 1  ;;  %v655_v50 = vrot.slane %v653_v5, 1  ;;  %v1844_v58 = vsel %vm790_vm0, %v1842_v44, %v1843_v45  ;;  %v2853_v62 = vcombine.low %v247_v53, %v3759_v39  ;;  %v248_v3 = vld [vmem:[%s3587_s30 + $0x84] sm:$0xe] }
  0x48   : > { %v2845_v0 = vcombine.low %v239_v36, %v3763_v17  ;;  %v564_v7 = vrot.slane %v562_v4, 1  ;;  %v822_v12 = vrot.slane %v3787_v61, 1  ;;  %v2854_v16 = vcombine.low %v248_v3, %v3799_v10 }
  0x49   : > { %v644_v37 = vor.u32 %v643_v27, %v639_v25  ;;  %v656_v59 = vor.u32 %v655_v50, %v651_v49  ;;  %v821_v17 = vrot.slane %v2853_v62, 1  ;;  %v2846_v61 = vcombine.low %v240_v63, %v3804_v15  ;;  %v3881_v15 = vld [vmem:[%s3587_s30 + $0x94] sm:$0xf]  ;;  %v2733_v62 = vld [vmem:[%s3587_s30 + $0x24] sm:$0xe] }
  0x4a   : > { %1479 = vrot.lane.b32.xlu1 %v2915_v57, %s3502_s11  ;;  %v3793_v57 = vld [vmem:[%s3587_s30 + $0x20] ss:$0 sps:$4 sm:$0x11]   ;;  %v824_v10 = vrot.slane %v2854_v16, 1 }
  0x4b   : > { %1463 = vrot.lane.b32.xlu0 %v2907_v6, %s3502_s11  ;;  %v545_v6 = vshll.u32 %v3778_v54, 16  ;;  %v649_v48 = vsel %vm517_vm1, %v644_v37, %v648_v33  ;;  %v798_v13 = vrot.slane %v3793_v57, 1  ;;  %v823_v27 = vsel %vm790_vm0, %v821_v17, %v822_v12  ;;  %v2689_v33 = vld [vmem:[%s3587_s30 + $0x30] sm:$0xf] }
  0x4c   : > { %v800_v2 = vrot.slane %v2846_v61, 1  ;;  %v2742_v12 = vld [vmem:[%s3587_s30 + $0x90] sm:$0xe] }
  0x4d   : > { %v547_v30 = vrot.slane %v545_v6, 1  ;;  %v2902_v61 = vcombine.low %v2742_v12, %v3881_v15 }
  0x4e   : > { %1481 = vrot.lane.b32.xlu1 %v2916_v8, %s3502_s11  ;;  %v1816_v8 = vrot.slane %v3744_v26, 1  ;;  %v550_v26 = vshll.u32 %v3793_v57, 16  ;;  %v2687_v57 = vld [vmem:[%s3587_s30 + $0x24] sm:$0xf] }
  0x4f   : > { %1465 = vrot.lane.b32.xlu0 %v2908_v24, %s3502_s11  ;;  %v2796_v24 = vld [vmem:[%s3587_s30 + $0x24] sm:$0xe]  ;;  %v548_v42 = vor.u32 %v547_v30, %v543_v29  ;;  %v2705_v30 = vld [vmem:[%s3587_s30 + $0x90] sm:$0xf] }
  0x50   : > { %v2940_v11 = vcombine.low %v2796_v24, %v3731_v14  ;;  %v1817_v41 = vsel %vm790_vm0, %v1815_v20, %v1816_v8  ;;  %v552_v43 = vrot.slane %v550_v26, 1  ;;  %v557_v14 = vshll.u32 %v3821_v32, 16  ;;  %v2703_v20 = vld [vmem:[%s3587_s30 + $0x84] sm:$0xf]  ;;  %v3865_v8 = vld [vmem:[%s3587_s30 + $0x88] sm:$0xf] }
  0x51   : > { %v3871_v24 = vld [vmem:[%s3587_s30 + $0x28] sm:$0xf]  ;;  %v2869_v25 = vcombine.low %v2703_v20, %v3865_v8 }
  0x52   : > { %1751 = vrot.lane.b32.xlu1 %v1650_v1, %s3503_s21  ;;  %v1818_v46 = vrot.slane %v2940_v11, 1  ;;  %v553_v55 = vsel %vm517_vm1, %v548_v42, %v552_v43  ;;  %v559_v34 = vrot.slane %v557_v14, 1  ;;  %v660_v1 = vrot.slane %v658_v52, 1  ;;  %v3326_v43 = vld [vmem:[%s3587_s30 + $0x8c] ss:$0 sps:$4 sm:$0x11]  }
  0x53   : > { %1735 = vrot.lane.b32.xlu0 %v1554_v60, %s3503_s21  ;;  %v2861_v29 = vcombine.low %v2687_v57, %v3871_v24  ;;  %v801_v11 = vrot.slane %v3834_v9, 1  ;;  %v1154_v37 = vshll.u32 %v2869_v25, 16  ;;  %v3897_v14 = vld [vmem:[%s3587_s30 + $0x2c] ss:$0 sps:$4 sm:$0x11]   ;;  %v1152_v45 = vshrl.u32 %v2869_v25, 16 }
  0x54   : > { %v1820_v60 = vsel %vm790_vm0, %v1818_v46, %v1819_v47  ;;  %v560_v6 = vor.u32 %v559_v34, %v555_v56  ;;  %v661_v39 = vsel %vm517_vm1, %v656_v59, %v660_v1  ;;  %v1159_v49 = vshll.u32 %v3326_v43, 16  ;;  %v3902_v52 = vld [vmem:[%s3587_s30 + $0x98] ss:$0 sps:$4 sm:$0x11]   ;;  %v2741_v56 = vld [vmem:[%s3587_s30 + $0x84] sm:$0xe] }
  0x55   : > { %v802_v9 = vsel %vm790_vm0, %v800_v2, %v801_v11  ;;  %v1156_v46 = vrot.slane %v1154_v37, 1  ;;  %v1056_v47 = vshrl.u32 %v2861_v29, 16  ;;  %v1063_v53 = vshll.u32 %v3897_v14, 16  ;;  %v2767_v57 = vld [vmem:[%s3587_s30 + $0x90] sm:$0xf] }
  0x56   : > { %1753 = vrot.lane.b32.xlu1 %v1662_v19, %s3503_s21  ;;  %v797_v19 = vrot.slane %v2845_v0, 1  ;;  %v565_v22 = vsel %vm517_vm1, %v560_v6, %v564_v7  ;;  %v1161_v36 = vrot.slane %v1159_v49, 1  ;;  %v1171_v1 = vshll.u32 %v3902_v52, 16  ;;  %v2769_v11 = vld [vmem:[%s3587_s30 + $0x9c] sm:$0xf] }
  0x57   : > { %1737 = vrot.lane.b32.xlu0 %v1566_v21, %s3503_s21  ;;  %v825_v21 = vrot.slane %v3829_v40, 1  ;;  %v2870_v40 = vcombine.low %v2705_v30, %v3881_v15  ;;  %v1157_v34 = vor.u32 %v1156_v46, %v1152_v45  ;;  %v1065_v0 = vrot.slane %v1063_v53, 1  ;;  %v3935_v15 = vld [vmem:[%s3587_s30 + $0x34] sm:$0xf]  ;;  %v3952_v45 = vld [vmem:[%s3587_s30 + $0x40] sm:$0xf] }
  0x58   : > { %v799_v26 = vsel %vm790_vm0, %v797_v19, %v798_v13  ;;  %v2901_v7 = vcombine.low %v2741_v56, %v3865_v8  ;;  %v2893_v63 = vcombine.low %v2733_v62, %v3871_v24  ;;  %v3926_v24 = vld [vmem:[%s3587_s30 + $0x94] sm:$0xf]  ;;  %v3955_v46 = vld [vmem:[%s3587_s30 + $0x98] ss:$0 sps:$4 sm:$0x11]  }
  0x59   : > { %v826_v5 = vsel %vm790_vm0, %v824_v10, %v825_v21  ;;  %v1166_v44 = vshll.u32 %v2870_v40, 16  ;;  %v1164_v4 = vshrl.u32 %v2870_v40, 16  ;;  %v1162_v13 = vsel %vm517_vm1, %v1157_v34, %v1161_v36  ;;  %v3961_v49 = vld [vmem:[%s3587_s30 + $0x38] ss:$0 sps:$4 sm:$0x11]  }
  0x5a   : > { %1879 = vrot.lane.b32.xlu1 %v1841_v35, %s3504_s23  ;;  %v3887_v35 = vld [vmem:[%s3587_s30 + $0x34] sm:$0xf]  ;;  %v1333_v8 = vrot.slane %v2901_v7, 1  ;;  %v1334_v21 = vrot.slane %v3326_v43, 1  ;;  %v2917_v2 = vcombine.low %v2767_v57, %v3926_v24  ;;  %v1575_v62 = vshll.u32 %v3961_v49, 16 }
  0x5b   : > { %1863 = vrot.lane.b32.xlu0 %v1817_v41, %s3504_s23  ;;  %v1058_v41 = vshll.u32 %v2861_v29, 16  ;;  %v2862_v42 = vcombine.low %v2689_v33, %v3887_v35  ;;  %v1168_v59 = vrot.slane %v1166_v44, 1  ;;  %v3940_v33 = vld [vmem:[%s3587_s30 + $0xa0] sm:$0xf] }
  0x5c   : > { %v1335_v37 = vsel %vm790_vm0, %v1333_v8, %v1334_v21  ;;  %v1666_v44 = vshll.u32 %v2917_v2, 16  ;;  %v1664_v56 = vshrl.u32 %v2917_v2, 16  ;;  %v1577_v8 = vrot.slane %v1575_v62, 1 }
  0x5d   : > { %v1060_v50 = vrot.slane %v1058_v41, 1  ;;  %v1068_v3 = vshrl.u32 %v2862_v42, 16  ;;  %v1169_v16 = vor.u32 %v1168_v59, %v1164_v4  ;;  %v1671_v4 = vshll.u32 %v3955_v46, 16  ;;  %v3972_v59 = vld [vmem:[%s3587_s30 + $0x44] ss:$0 sps:$4 sm:$0x11]  }
  0x5e   : > { %730 = vrot.lane.b32.xlu1 %v649_v48, %s3499_s6  ;;  %v1070_v48 = vshll.u32 %v2862_v42, 16  ;;  %v1668_v34 = vrot.slane %v1666_v44, 1  ;;  %v2806_v44 = vld [vmem:[%s3587_s30 + $0x9c] sm:$0xe] }
  0x5f   : > { %714 = vrot.lane.b32.xlu0 %v553_v55, %s3499_s6  ;;  %v3906_v55 = vld [vmem:[%s3587_s30 + $0x38] ss:$0 sps:$4 sm:$0x11]  }
  0x60   : > { %v1075_v6 = vshll.u32 %v3906_v55, 16  ;;  %v1313_v43 = vrot.slane %v3906_v55, 1  ;;  %v2805_v55 = vld [vmem:[%s3587_s30 + $0x90] sm:$0xe] }
  0x61   : > { %v2949_v7 = vcombine.low %v2805_v55, %v3926_v24  ;;  %v1822_v55 = vrot.slane %v3961_v49, 1 }
  0x62   : > { %1881 = vrot.lane.b32.xlu1 %v1844_v58, %s3504_s23  ;;  %v1061_v58 = vor.u32 %v1060_v50, %v1056_v47  ;;  %v1077_v20 = vrot.slane %v1075_v6, 1  ;;  %v3376_v6 = vld [vmem:[%s4913_s1 + $0x10] ss:$0 sps:$4 sm:$0x33]  }
  0x63   : > { %1865 = vrot.lane.b32.xlu0 %v1820_v60, %s3504_s23  ;;  %v1072_v60 = vrot.slane %v1070_v48, 1  ;;  %3203 = vmatprep.subr.msk.bf16.mxu0 %vm2219_vm2, %v3376_v6 }
  0x64   : > { %v1066_v17 = vsel %vm517_vm1, %v1061_v58, %v1065_v0  ;;  %v3969_v58 = vld [vmem:[%s3587_s30 + $0xa4] ss:$0 sps:$4 sm:$0x11]   ;;  %v213_v0 = vld [vmem:[%s3587_s30 + $0x90] sm:$0xf]  ;;  %3204 = vmatprep.subr.msk.bf16.mxu1 %vm2219_vm2, %v3376_v6 }
  0x65   : > { %v1073_v19 = vor.u32 %v1072_v60, %v1068_v3  ;;  %v3978_v60 = vld [vmem:[%s3587_s30 + $0x94] sm:$0xf] }
  0x66   : > { %732 = vrot.lane.b32.xlu1 %v661_v39, %s3499_s6  ;;  %v1173_v39 = vrot.slane %v1171_v1, 1  ;;  %v3993_v57 = vcombine.low %v213_v0, %v3978_v60 }
  0x67   : > { %716 = vrot.lane.b32.xlu0 %v565_v22, %s3499_s6  ;;  %v2734_v22 = vld [vmem:[%s3587_s30 + $0x30] sm:$0xe]  ;;  %v1078_v30 = vsel %vm517_vm1, %v1073_v19, %v1077_v20  ;;  %v1683_v19 = vshll.u32 %v3969_v58, 16 }
  0x68   : > { %v1174_v10 = vsel %vm517_vm1, %v1169_v16, %v1173_v39  ;;  %v3986_v16 = vld [vmem:[%s3587_s30 + $0x34] sm:$0xf]  ;;  %v1673_v39 = vrot.slane %v1671_v4, 1  ;;  %v2797_v20 = vld [vmem:[%s3587_s30 + $0x30] sm:$0xe]  ;;  %4922 = vst [vmem:[#allocation5_spill] sm:$0xff] %v3993_v57 }
  0x6a   : > { %859 = vrot.lane.b32.xlu1 %v823_v27, %s3498_s5  ;;  %v1310_v27 = vrot.slane %v3897_v14, 1  ;;  %v2753_v14 = vld [vmem:[%s3587_s30 + $0x3c] sm:$0xf] }
  0x6b   : > { %843 = vrot.lane.b32.xlu0 %v799_v26, %s3498_s5  ;;  %v2751_v26 = vld [vmem:[%s3587_s30 + $0x30] sm:$0xf]  ;;  %v2910_v53 = vcombine.low %v2753_v14, %v3952_v45  ;;  %v4017_v14 = vld [vmem:[%s3587_s30 + $0xa0] sm:$0xf] }
  0x6d   : > { %v1582_v3 = vshll.u32 %v2910_v53, 16 }
  0x6e   : > { %861 = vrot.lane.b32.xlu1 %v826_v5, %s3498_s5  ;;  %v2909_v5 = vcombine.low %v2751_v26, %v3935_v15  ;;  %v4002_v26 = vld [vmem:[%s3587_s30 + $0x98] ss:$0 sps:$4 sm:$0x11]  }
  0x6f   : > { %845 = vrot.lane.b32.xlu0 %v802_v9, %s3498_s5  ;;  %v2918_v9 = vcombine.low %v2769_v11, %v3940_v33  ;;  %v1584_v24 = vrot.slane %v1582_v3, 1  ;;  %v1845_v11 = vrot.slane %v2949_v7, 1  ;;  %v670_v4 = vshll.u32 %v4002_v26, 16 }
  0x70   : > { %v1570_v48 = vshll.u32 %v2909_v5, 16  ;;  %v1568_v36 = vshrl.u32 %v2909_v5, 16  ;;  %v2950_v7 = vcombine.low %v2806_v44, %v3940_v33 }
  0x71   : > { %v1676_v12 = vshrl.u32 %v2918_v9, 16 }
  0x72   : > { %971 = vrot.lane.b32.xlu1 %v2869_v25, %s3497_s4  ;;  %v1309_v25 = vrot.slane %v2893_v63, 1  ;;  %v1572_v1 = vrot.slane %v1570_v48, 1  ;;  %v1669_v63 = vor.u32 %v1668_v34, %v1664_v56  ;;  %v4022_v48 = vld [vmem:[%s3587_s30 + $0x40] sm:$0xf]  ;;  %v663_v56 = vshrl.u32 %v3993_v57, 16 }
  0x73   : > { %955 = vrot.lane.b32.xlu0 %v2861_v29, %s3497_s4  ;;  %v2894_v29 = vcombine.low %v2734_v22, %v3887_v35  ;;  %v1336_v35 = vrot.slane %v2902_v61, 1  ;;  %v1580_v61 = vshrl.u32 %v2910_v53, 16 }
  0x74   : > { %v1311_v41 = vsel %vm790_vm0, %v1309_v25, %v1310_v27  ;;  %v1573_v22 = vor.u32 %v1572_v1, %v1568_v36  ;;  %v2221_v25 = vsel %vm2219_vm2, %v3376_v6, 0  ;;  %v2941_v27 = vcombine.low %v2797_v20, %v3935_v15 }
  0x75   : > { %3164 = vmatpush3.bf16.msra.mxu0 %v2221_v25  ;;  %3202 = vmatpush3.bf16.msra.mxu1 %v2221_v25  ;;  %v665_v15 = vshll.u32 %v3993_v57, 16  ;;  %v1849_v25 = vrot.slane %v3969_v58, 1 }
  0x76   : > { %973 = vrot.lane.b32.xlu1 %v2870_v40, %s3497_s4  ;;  %v1337_v40 = vrot.slane %v3902_v52, 1  ;;  %v1678_v52 = vshll.u32 %v2918_v9, 16 }
  0x77   : > { %957 = vrot.lane.b32.xlu0 %v2862_v42, %s3497_s4  ;;  %v1312_v42 = vrot.slane %v2894_v29, 1  ;;  %v667_v34 = vrot.slane %v665_v15, 1  ;;  %v249_v15 = vld [vmem:[%s3587_s30 + $0x90] sm:$0xe] }
  0x78   : > { %v1338_v47 = vsel %vm790_vm0, %v1336_v35, %v1337_v40  ;;  %v4009_v35 = vld [vmem:[%s3587_s30 + $0x38] ss:$0 sps:$4 sm:$0x11]   ;;  %v1578_v40 = vsel %vm517_vm1, %v1573_v22, %v1577_v8 }
  0x79   : > { %v1314_v50 = vsel %vm790_vm0, %v1312_v42, %v1313_v43  ;;  %v574_v36 = vshll.u32 %v4009_v35, 16 }
  0x7a   : > { %1243 = vrot.lane.b32.xlu1 %v1162_v13, %s3500_s7  ;;  %v197_v13 = vld [vmem:[%s3587_s30 + $0x30] sm:$0xf] }
  0x7b   : > { %1227 = vrot.lane.b32.xlu0 %v1066_v17, %s3500_s7  ;;  %v1680_v17 = vrot.slane %v1678_v52, 1  ;;  %v3997_v21 = vcombine.low %v197_v13, %v3986_v16  ;;  %v668_v13 = vor.u32 %v667_v34, %v663_v56 }
  0x7d   : > { %4923 = vst [vmem:[#allocation6_spill] sm:$0xff] %v3997_v21  ;;  %v1681_v29 = vor.u32 %v1680_v17, %v1676_v12  ;;  %v569_v43 = vshll.u32 %v3997_v21, 16  ;;  %v567_v0 = vshrl.u32 %v3997_v21, 16  ;;  %v576_v17 = vrot.slane %v574_v36, 1 }
  0x7e   : > { %1245 = vrot.lane.b32.xlu1 %v1174_v10, %s3500_s7  ;;  %v1587_v10 = vshll.u32 %v3972_v59, 16 }
  0x7f   : > { %1229 = vrot.lane.b32.xlu0 %v1078_v30, %s3500_s7  ;;  %v1685_v30 = vrot.slane %v1683_v19, 1  ;;  %v571_v3 = vrot.slane %v569_v43, 1  ;;  %v4050_v19 = vld [vmem:[%s3587_s30 + $0xa4] ss:$0 sps:$4 sm:$0x11]  }
  0x80   : > { %v1589_v42 = vrot.slane %v1587_v10, 1  ;;  %v1848_v10 = vrot.slane %v2950_v7, 1  ;;  %v241_v43 = vld [vmem:[%s3587_s30 + $0x30] sm:$0xe] }
  0x81   : > { %v1686_v52 = vsel %vm517_vm1, %v1681_v29, %v1685_v30  ;;  %v572_v8 = vor.u32 %v571_v3, %v567_v0  ;;  %v1825_v29 = vrot.slane %v3972_v59, 1  ;;  %v2847_v34 = vcombine.low %v241_v43, %v3986_v16  ;;  %v2707_v3 = vld [vmem:[%s3587_s30 + $0x9c] sm:$0xf] }
  0x82   : > { %1371 = vrot.lane.b32.xlu1 %v1335_v37, %s3501_s8  ;;  %v1846_v37 = vrot.slane %v3955_v46, 1  ;;  %v2798_v46 = vld [vmem:[%s3587_s30 + $0x3c] sm:$0xe]  ;;  %v1850_v44 = vsel %vm790_vm0, %v1848_v10, %v1849_v25  ;;  %v828_v0 = vrot.slane %v4002_v26, 1  ;;  %v2709_v25 = vld [vmem:[%s3587_s30 + $0xa8] sm:$0xf] }
  0x83   : > { %1355 = vrot.lane.b32.xlu0 %v1311_v41, %s3501_s8  ;;  %v1585_v41 = vor.u32 %v1584_v24, %v1580_v61 }
  0x84   : > { %v1847_v12 = vsel %vm790_vm0, %v1845_v11, %v1846_v37  ;;  %v682_v37 = vshll.u32 %v4050_v19, 16 }
  0x85   : > { %v1590_v62 = vsel %vm517_vm1, %v1585_v41, %v1589_v42 }
  0x86   : > { %1373 = vrot.lane.b32.xlu1 %v1338_v47, %s3501_s8  ;;  %v199_v47 = vld [vmem:[%s3587_s30 + $0x3c] sm:$0xf] }
  0x87   : > { %1357 = vrot.lane.b32.xlu0 %v1314_v50, %s3501_s8  ;;  %v4040_v49 = vcombine.low %v199_v47, %v4022_v48 }
  0x89   : > { %4925 = vst [vmem:[#allocation8_spill] sm:$0xff] %v4040_v49  ;;  %v581_v61 = vshll.u32 %v4040_v49, 16  ;;  %v579_v41 = vshrl.u32 %v4040_v49, 16 }
  0x8a   : > { %1483 = vrot.lane.b32.xlu1 %v2917_v2, %s3502_s11  ;;  %v1674_v2 = vsel %vm517_vm1, %v1669_v63, %v1673_v39  ;;  %v2942_v63 = vcombine.low %v2798_v46, %v3952_v45  ;;  %v672_v39 = vrot.slane %v670_v4, 1  ;;  %v4057_v45 = vld [vmem:[%s3587_s30 + $0x44] ss:$0 sps:$4 sm:$0x11]   ;;  %v684_v46 = vrot.slane %v682_v37, 1 }
  0x8b   : > { %1467 = vrot.lane.b32.xlu0 %v2909_v5, %s3502_s11  ;;  %v583_v42 = vrot.slane %v581_v61, 1  ;;  %v586_v58 = vshll.u32 %v4057_v45, 16  ;;  %v250_v4 = vld [vmem:[%s3587_s30 + $0x9c] sm:$0xe] }
  0x8c   : > { %v673_v30 = vsel %vm517_vm1, %v668_v13, %v672_v39  ;;  %v803_v39 = vrot.slane %v2847_v34, 1 }
  0x8d   : > { %v588_v56 = vrot.slane %v586_v58, 1 }
  0x8e   : > { %1485 = vrot.lane.b32.xlu1 %v2918_v9, %s3502_s11  ;;  %v215_v9 = vld [vmem:[%s3587_s30 + $0x9c] sm:$0xf] }
  0x8f   : > { %1469 = vrot.lane.b32.xlu0 %v2910_v53, %s3502_s11  ;;  %v1821_v53 = vrot.slane %v2941_v27, 1  ;;  %v4035_v1 = vcombine.low %v215_v9, %v4017_v14  ;;  %v1824_v27 = vrot.slane %v2942_v63, 1  ;;  %v2855_v9 = vcombine.low %v249_v15, %v3978_v60  ;;  %v242_v60 = vld [vmem:[%s3587_s30 + $0x3c] sm:$0xe]  ;;  %v2693_v15 = vld [vmem:[%s3587_s30 + $0x48] sm:$0xf] }
  0x90   : > { %v2856_v63 = vcombine.low %v250_v4, %v4017_v14  ;;  %v2848_v26 = vcombine.low %v242_v60, %v4022_v48 }
  0x91   : > { %4924 = vst [vmem:[#allocation7_spill] sm:$0xff] %v4035_v1  ;;  %v677_v20 = vshll.u32 %v4035_v1, 16  ;;  %v1823_v33 = vsel %vm790_vm0, %v1821_v53, %v1822_v55  ;;  %v1826_v53 = vsel %vm790_vm0, %v1824_v27, %v1825_v29  ;;  %v584_v55 = vor.u32 %v583_v42, %v579_v41  ;;  %v4116_v27 = vld [vmem:[%s3587_s30 + $0xac] sm:$0xf] }
  0x92   : > { %v4012_v5 = vpop.permute.xlu1 %967  ;;  %1755 = vrot.lane.b32.xlu1 %v1674_v2, %s3503_s21  ;;  %v675_v2 = vshrl.u32 %v4035_v1, 16  ;;  %v830_v10 = vrot.slane %v2856_v63, 1  ;;  %v2872_v41 = vcombine.low %v2709_v25, %v4116_v27  ;;  %v4131_v42 = vld [vmem:[%s3587_s30 + $0xa4] ss:$0 sps:$4 sm:$0x11]  }
  0x93   : > { %v4026_v50 = vpop.permute.xlu0 %951  ;;  %1739 = vrot.lane.b32.xlu0 %v1578_v40, %s3503_s21  ;;  %v679_v11 = vrot.slane %v677_v20, 1  ;;  %v577_v40 = vsel %vm517_vm1, %v572_v8, %v576_v17  ;;  %v589_v13 = vsel %vm517_vm1, %v584_v55, %v588_v56  ;;  %v804_v17 = vrot.slane %v4009_v35, 1  ;;  %v2691_v20 = vld [vmem:[%s3587_s30 + $0x3c] sm:$0xf] }
  0x94   : > { %v831_v35 = vrot.slane %v4050_v19, 1  ;;  %v1190_v55 = vshll.u32 %v2872_v41, 16  ;;  %v1183_v34 = vshll.u32 %v4131_v42, 16  ;;  %v4154_v63 = vld [vmem:[%s3587_s30 + $0x50] ss:$0 sps:$4 sm:$0x11]  }
  0x95   : > { %v680_v47 = vor.u32 %v679_v11, %v675_v2  ;;  %v806_v2 = vrot.slane %v2848_v26, 1  ;;  %v807_v11 = vrot.slane %v4057_v45, 1  ;;  %v2743_v26 = vld [vmem:[%s3587_s30 + $0x9c] sm:$0xe] }
  0x96   : > { %v4042_v6 = vpop.permute.xlu1 %855  ;;  %1757 = vrot.lane.b32.xlu1 %v1686_v52, %s3503_s21  ;;  %v832_v58 = vsel %vm790_vm0, %v830_v10, %v831_v35  ;;  %v1192_v10 = vrot.slane %v1190_v55, 1  ;;  %v2735_v25 = vld [vmem:[%s3587_s30 + $0x3c] sm:$0xe] }
  0x97   : > { %1741 = vrot.lane.b32.xlu0 %v1590_v62, %s3503_s21  ;;  %v827_v62 = vrot.slane %v2855_v9, 1  ;;  %v685_v7 = vsel %vm517_vm1, %v680_v47, %v684_v46  ;;  %v4136_v9 = vld [vmem:[%s3587_s30 + $0x44] ss:$0 sps:$4 sm:$0x11]  }
  0x98   : > { %v4053_v22 = vpop.permute.xlu0 %839 }
  0x99   : > { %v829_v61 = vsel %vm790_vm0, %v827_v62, %v828_v0  ;;  %v4148_v62 = vld [vmem:[%s3587_s30 + $0xb0] ss:$0 sps:$4 sm:$0x11]  }
  0x9a   : > { %1883 = vrot.lane.b32.xlu1 %v1847_v12, %s3504_s23  ;;  %v4095_v12 = vld [vmem:[%s3587_s30 + $0xa0] sm:$0xf]  ;;  %v1195_v35 = vshll.u32 %v4148_v62, 16 }
  0x9b   : > { %v4061_v24 = vpop.permute.xlu1 %857  ;;  %1867 = vrot.lane.b32.xlu0 %v1823_v33, %s3504_s23  ;;  %v4104_v33 = vld [vmem:[%s3587_s30 + $0x40] sm:$0xf]  ;;  %v2871_v14 = vcombine.low %v2707_v3, %v4095_v12 }
  0x9c   : > { %v2863_v48 = vcombine.low %v2691_v20, %v4104_v33  ;;  %v1185_v20 = vrot.slane %v1183_v34, 1  ;;  %v1197_v34 = vrot.slane %v1195_v35, 1 }
  0x9d   : > { %v4073_v59 = vpop.permute.xlu0 %841  ;;  %v1178_v19 = vshll.u32 %v2871_v14, 16 }
  0x9e   : > { %734 = vrot.lane.b32.xlu1 %v673_v30, %s3499_s6  ;;  %v805_v30 = vsel %vm790_vm0, %v803_v39, %v804_v17  ;;  %v1082_v43 = vshll.u32 %v2863_v48, 16  ;;  %v1080_v4 = vshrl.u32 %v2863_v48, 16  ;;  %v1188_v17 = vshrl.u32 %v2872_v41, 16 }
  0x9f   : > { %718 = vrot.lane.b32.xlu0 %v577_v40, %s3499_s6  ;;  %v4126_v40 = vld [vmem:[%s3587_s30 + $0x4c] sm:$0xf]  ;;  %v1180_v56 = vrot.slane %v1178_v19, 1 }
  0xa0   : > { %v4080_v52 = vpop.permute.xlu1 %712  ;;  %v2864_v47 = vcombine.low %v2693_v15, %v4126_v40  ;;  %v1084_v60 = vrot.slane %v1082_v43, 1  ;;  %v1099_v15 = vshll.u32 %v4154_v63, 16  ;;  %v4170_v43 = vld [vmem:[%s3587_s30 + $0xac] sm:$0xf] }
  0xa1   : > { %v4085_v36 = vpop.permute.xlu0 %710 }
  0xa2   : > { %1885 = vrot.lane.b32.xlu1 %v1850_v44, %s3504_s23  ;;  %v808_v44 = vsel %vm790_vm0, %v806_v2, %v807_v11  ;;  %v1094_v3 = vshll.u32 %v2864_v47, 16  ;;  %v1092_v11 = vshrl.u32 %v2864_v47, 16 }
  0xa3   : > { %1869 = vrot.lane.b32.xlu0 %v1826_v53, %s3504_s23  ;;  %v1176_v53 = vshrl.u32 %v2871_v14, 16 }
  0xa4   : > { %v4097_v16 = vpop.permute.xlu1 %728 }
  0xa5   : > { %v4106_v8 = vpop.permute.xlu0 %726  ;;  %v1181_v39 = vor.u32 %v1180_v56, %v1176_v53  ;;  %v2744_v53 = vld [vmem:[%s3587_s30 + $0xa8] sm:$0xe]  ;;  %v1193_v56 = vor.u32 %v1192_v10, %v1188_v17  ;;  %v4196_v10 = vld [vmem:[%s3587_s30 + $0xb8] sm:$0xf] }
  0xa6   : > { %736 = vrot.lane.b32.xlu1 %v685_v7, %s3499_s6  ;;  %v1087_v7 = vshll.u32 %v4136_v9, 16  ;;  %v2904_v17 = vcombine.low %v2744_v53, %v4116_v27  ;;  %v4204_v27 = vld [vmem:[%s3587_s30 + $0x58] sm:$0xf] }
  0xa7   : > { %720 = vrot.lane.b32.xlu0 %v589_v13, %s3499_s6  ;;  %v1186_v55 = vsel %vm517_vm1, %v1181_v39, %v1185_v20  ;;  %v4189_v39 = vld [vmem:[%s3587_s30 + $0x4c] sm:$0xf]  ;;  %v1340_v20 = vrot.slane %v4131_v42, 1 }
  0xa8   : > { %v4118_v29 = vpop.permute.xlu1 %969  ;;  %v1089_v2 = vrot.slane %v1087_v7, 1  ;;  %v1101_v7 = vrot.slane %v1099_v15, 1 }
  0xa9   : > { %v4122_v37 = vpop.permute.xlu0 %953 }
  0xaa   : > { %863 = vrot.lane.b32.xlu1 %v829_v61, %s3498_s5  ;;  %v1085_v61 = vor.u32 %v1084_v60, %v1080_v4  ;;  %v2736_v4 = vld [vmem:[%s3587_s30 + $0x48] sm:$0xe] }
  0xab   : > { %847 = vrot.lane.b32.xlu0 %v805_v30, %s3498_s5  ;;  %v2896_v35 = vcombine.low %v2736_v4, %v4126_v40  ;;  %v4214_v40 = vld [vmem:[%s3587_s30 + $0xb0] ss:$0 sps:$4 sm:$0x11]   ;;  %v1343_v4 = vrot.slane %v4148_v62, 1 }
  0xac   : > { %v4138_v45 = vpop.permute.xlu1 %1239 }
  0xad   : > { %v4142_v46 = vpop.permute.xlu0 %1223 }
  0xae   : > { %865 = vrot.lane.b32.xlu1 %v832_v58, %s3498_s5  ;;  %v2771_v58 = vld [vmem:[%s3587_s30 + $0xa8] sm:$0xf] }
  0xaf   : > { %849 = vrot.lane.b32.xlu0 %v808_v44, %s3498_s5  ;;  %v2895_v44 = vcombine.low %v2735_v25, %v4104_v33  ;;  %v1198_v25 = vsel %vm517_vm1, %v1193_v56, %v1197_v34 }
  0xb0   : > { %v4150_v0 = vpop.permute.xlu1 %1241 }
  0xb1   : > { %v4156_v13 = vpop.permute.xlu0 %1225 }
  0xb2   : > { %975 = vrot.lane.b32.xlu1 %v2871_v14, %s3497_s4  ;;  %v1096_v14 = vrot.slane %v1094_v3, 1  ;;  %v1090_v3 = vsel %vm517_vm1, %v1085_v61, %v1089_v2  ;;  %v2773_v61 = vld [vmem:[%s3587_s30 + $0xb4] sm:$0xf]  ;;  %v1315_v2 = vrot.slane %v2895_v44, 1 }
  0xb3   : > { %959 = vrot.lane.b32.xlu0 %v2863_v48, %s3497_s4  ;;  %v2903_v48 = vcombine.low %v2743_v26, %v4095_v12  ;;  %v4219_v44 = vcombine.low %v2773_v61, %v4196_v10 }
  0xb4   : > { %v4163_v30 = vpop.permute.xlu1 %1367  ;;  %v1097_v12 = vor.u32 %v1096_v14, %v1092_v11  ;;  %v1316_v11 = vrot.slane %v4136_v9, 1  ;;  %v2757_v14 = vld [vmem:[%s3587_s30 + $0x54] sm:$0xf] }
  0xb5   : > { %v4166_v19 = vpop.permute.xlu0 %1351  ;;  %v1339_v26 = vrot.slane %v2903_v48, 1  ;;  %v4224_v56 = vcombine.low %v2757_v14, %v4204_v27  ;;  %v1702_v62 = vshll.u32 %v4219_v44, 16 }
  0xb6   : > { %977 = vrot.lane.b32.xlu1 %v2872_v41, %s3497_s4  ;;  %v4183_v41 = vcombine.low %v2771_v58, %v4170_v43  ;;  %v1102_v58 = vsel %vm517_vm1, %v1097_v12, %v1101_v7  ;;  %v1317_v34 = vsel %vm790_vm0, %v1315_v2, %v1316_v11  ;;  %v1319_v12 = vrot.slane %v4154_v63, 1  ;;  %v4239_v63 = vld [vmem:[%s3587_s30 + $0x50] ss:$0 sps:$4 sm:$0x11]  }
  0xb7   : > { %961 = vrot.lane.b32.xlu0 %v2864_v47, %s3497_s4  ;;  %v2755_v47 = vld [vmem:[%s3587_s30 + $0x48] sm:$0xf]  ;;  %v1341_v9 = vsel %vm790_vm0, %v1339_v26, %v1340_v20  ;;  %v1695_v20 = vshll.u32 %v4214_v40, 16  ;;  %v4247_v2 = vld [vmem:[%s3587_s30 + $0xbc] ss:$0 sps:$4 sm:$0x11]   ;;  %v1897_v11 = vsel %vm1895_vm3, %v3624_v23, %v4085_v36 }
  0xb8   : > { %v4179_v60 = vpop.permute.xlu1 %1369  ;;  %v1690_v42 = vshll.u32 %v4183_v41, 16  ;;  %v4211_v48 = vcombine.low %v2755_v47, %v4189_v39 }
  0xb9   : > { %v4185_v33 = vpop.permute.xlu0 %1353  ;;  %v1697_v1 = vrot.slane %v1695_v20, 1 }
  0xba   : > { %1247 = vrot.lane.b32.xlu1 %v1186_v55, %s3500_s7  ;;  %v1342_v55 = vrot.slane %v2904_v17, 1  ;;  %v1594_v47 = vshll.u32 %v4211_v48, 16  ;;  %v1688_v17 = vshrl.u32 %v4183_v41, 16  ;;  %v1692_v26 = vrot.slane %v1690_v42, 1 }
  0xbb   : > { %1231 = vrot.lane.b32.xlu0 %v1090_v3, %s3500_s7  ;;  %v1318_v3 = vrot.slane %v2896_v35, 1  ;;  %v1913_v35 = vsel %vm1895_vm3, %v3619_v18, %v4106_v8  ;;  %v2807_v18 = vld [vmem:[%s3587_s30 + $0xa8] sm:$0xe]  ;;  %v4257_v8 = vld [vmem:[%s3587_s30 + $0x5c] ss:$0 sps:$4 sm:$0x11]  }
  0xbc   : > { %v4206_v15 = vpop.permute.xlu1 %1479  ;;  %v1344_v14 = vsel %vm790_vm0, %v1342_v55, %v1343_v4  ;;  %v1693_v49 = vor.u32 %v1692_v26, %v1688_v17  ;;  %v1592_v21 = vshrl.u32 %v4211_v48, 16  ;;  %v1596_v57 = vrot.slane %v1594_v47, 1 }
  0xbd   : > { %v4216_v53 = vpop.permute.xlu0 %1463  ;;  %v1946_v23 = vsel %vm1928_vm4, %v1913_v35, %v4042_v6  ;;  %v1700_v55 = vshrl.u32 %v4219_v44, 16  ;;  %v1704_v4 = vrot.slane %v1702_v62, 1  ;;  %v1604_v47 = vshrl.u32 %v4224_v56, 16 }
  0xbe   : > { %1249 = vrot.lane.b32.xlu1 %v1198_v25, %s3500_s7  ;;  %v1606_v25 = vshll.u32 %v4224_v56, 16  ;;  %v2951_v6 = vcombine.low %v2807_v18, %v4170_v43  ;;  %v1611_v20 = vshll.u32 %v4257_v8, 16  ;;  %v1698_v35 = vsel %vm517_vm1, %v1693_v49, %v1697_v1 }
  0xbf   : > { %1233 = vrot.lane.b32.xlu0 %v1102_v58, %s3500_s7  ;;  %v1320_v58 = vsel %vm790_vm0, %v1318_v3, %v1319_v12  ;;  %v1930_v3 = vsel %vm1928_vm4, %v1897_v11, %v4053_v22  ;;  %v1707_v12 = vshll.u32 %v4247_v2, 16  ;;  %v1979_v22 = vsel %vm1961_vm5, %v1946_v23, %v4012_v5  ;;  %v217_v11 = vld [vmem:[%s3587_s30 + $0xa8] sm:$0xf]  ;;  %v4291_v23 = vld [vmem:[%s3587_s30 + $0x4c] sm:$0xf] }
  0xc0   : > { %v4230_v7 = vpop.permute.xlu1 %1481  ;;  %v1608_v17 = vrot.slane %v1606_v25, 1  ;;  %v1597_v25 = vor.u32 %v1596_v57, %v1592_v21  ;;  %v2012_v43 = vsel %vm1994_vm6, %v1979_v22, %v4138_v45  ;;  %v201_v5 = vld [vmem:[%s3587_s30 + $0x48] sm:$0xf]  ;;  %v219_v22 = vld [vmem:[%s3587_s30 + $0xb4] sm:$0xf] }
  0xc1   : > { %v4235_v61 = vpop.permute.xlu0 %1465  ;;  %v2045_v57 = vsel %vm2027_vm7, %v2012_v43, %v4163_v30  ;;  %v1709_v21 = vrot.slane %v1707_v12, 1  ;;  %v1915_v30 = vsel %vm1895_vm3, %v3631_v31, %v4097_v16  ;;  %v1851_v31 = vrot.slane %v2951_v6, 1  ;;  %v4323_v16 = vld [vmem:[%s3587_s30 + $0xb0] ss:$0 sps:$4 sm:$0x11]  }
  0xc2   : > { %1375 = vrot.lane.b32.xlu1 %v1341_v9, %s3501_s8  ;;  %v2799_v9 = vld [vmem:[%s3587_s30 + $0x48] sm:$0xe]  ;;  %v1609_v49 = vor.u32 %v1608_v17, %v1604_v47  ;;  %v2078_v45 = vsel %vm2060_vm8, %v2045_v57, %v4206_v15  ;;  %v4315_v15 = vcombine.low %v201_v5, %v4291_v23  ;;  %v1948_v47 = vsel %vm1928_vm4, %v1915_v30, %v4061_v24 }
  0xc3   : > { %1359 = vrot.lane.b32.xlu0 %v1317_v34, %s3501_s8  ;;  %v1599_v34 = vshll.u32 %v4239_v63, 16  ;;  %v2943_v26 = vcombine.low %v2799_v9, %v4189_v39  ;;  %v1963_v39 = vsel %vm1961_vm5, %v1930_v3, %v4026_v50  ;;  %v1705_v9 = vor.u32 %v1704_v4, %v1700_v55 }
  0xc4   : > { %v1752_v42 = vpop.permute.xlu1 %1751  ;;  %v1996_v1 = vsel %vm1994_vm6, %v1963_v39, %v4142_v46  ;;  %v1828_v17 = vrot.slane %v4239_v63, 1  ;;  %v694_v43 = vshll.u32 %v4323_v16, 16  ;;  %v203_v39 = vld [vmem:[%s3587_s30 + $0x54] sm:$0xf] }
  0xc5   : > { %v1736_v36 = vpop.permute.xlu0 %1735  ;;  %v1601_v18 = vrot.slane %v1599_v34, 1  ;;  %v2029_v50 = vsel %vm2027_vm7, %v1996_v1, %v4166_v19  ;;  %v1613_v34 = vrot.slane %v1611_v20, 1  ;;  %v2111_v19 = vsel %vm2093_vm9, %v2078_v45, %v1752_v42 }
  0xc6   : > { %1377 = vrot.lane.b32.xlu1 %v1344_v14, %s3501_s8  ;;  %v4281_v14 = vld [vmem:[%s3587_s30 + $0xac] sm:$0xf]  ;;  %v593_v20 = vshll.u32 %v4315_v15, 16 }
  0xc7   : > { %1361 = vrot.lane.b32.xlu0 %v1320_v58, %s3501_s8  ;;  %v4306_v46 = vcombine.low %v217_v11, %v4281_v14  ;;  %v1602_v42 = vsel %vm517_vm1, %v1597_v25, %v1601_v18  ;;  %v4352_v25 = vld [vmem:[%s3587_s30 + $0xb8] sm:$0xf] }
  0xc8   : > { %v4276_v62 = vpop.permute.xlu1 %1753  ;;  %v4364_v18 = vld [vmem:[%s3587_s30 + $0x58] sm:$0xf] }
  0xc9   : > { %v4287_v58 = vpop.permute.xlu0 %1737  ;;  %v689_v6 = vshll.u32 %v4306_v46, 16 }
  0xca   : > { %1487 = vrot.lane.b32.xlu1 %v4183_v41, %s3502_s11  ;;  %v2062_v41 = vsel %vm2060_vm8, %v2029_v50, %v4216_v53  ;;  %v4381_v50 = vcombine.low %v219_v22, %v4352_v25 }
  0xcb   : > { %1471 = vrot.lane.b32.xlu0 %v4211_v48, %s3502_s11  ;;  %v1899_v48 = vsel %vm1895_vm3, %v3637_v38, %v4080_v52  ;;  %v2095_v4 = vsel %vm2093_vm9, %v2062_v41, %v1736_v36  ;;  %v1852_v38 = vrot.slane %v4214_v40, 1  ;;  %v1827_v52 = vrot.slane %v2943_v26, 1  ;;  %v4332_v36 = vld [vmem:[%s3587_s30 + $0x50] ss:$0 sps:$4 sm:$0x11]  }
  0xcc   : > { %v1880_v55 = vpop.permute.xlu1 %1879  ;;  %v1981_v40 = vsel %vm1961_vm5, %v1948_v47, %v4118_v29  ;;  %v1932_v26 = vsel %vm1928_vm4, %v1899_v48, %v4073_v59  ;;  %v687_v59 = vshrl.u32 %v4306_v46, 16  ;;  %v696_v48 = vrot.slane %v694_v43, 1  ;;  %v243_v43 = vld [vmem:[%s3587_s30 + $0x48] sm:$0xe] }
  0xcd   : > { %v1864_v3 = vpop.permute.xlu0 %1863  ;;  %v2144_v12 = vsel %vm2126_vm10, %v2111_v19, %v1880_v55  ;;  %v1965_v63 = vsel %vm1961_vm5, %v1932_v26, %v4122_v37  ;;  %v2014_v29 = vsel %vm1994_vm6, %v1981_v40, %v4150_v0  ;;  %v591_v37 = vshrl.u32 %v4315_v15, 16 }
  0xce   : > { %1489 = vrot.lane.b32.xlu1 %v4219_v44, %s3502_s11  ;;  %v2128_v53 = vsel %vm2126_vm10, %v2095_v4, %v1864_v3  ;;  %3181 = vmatprep.mubr.msk.bf16.mxu1 %vm2186_vm11, %v2144_v12  ;;  %v1710_v44 = vsel %vm517_vm1, %v1705_v9, %v1709_v21  ;;  %v1998_v9 = vsel %vm1994_vm6, %v1965_v63, %v4156_v13  ;;  %v598_v0 = vshll.u32 %v4332_v36, 16  ;;  %v2808_v21 = vld [vmem:[%s3587_s30 + $0xb4] sm:$0xe]  ;;  %v4402_v4 = vld [vmem:[%s3587_s30 + $0xbc] ss:$0 sps:$4 sm:$0x11]  }
  0xcf   : > { %1473 = vrot.lane.b32.xlu0 %v4224_v56, %s3502_s11  ;;  %3165 = vmatprep.mubr.msk.bf16.mxu0 %vm2186_vm11, %v2128_v53  ;;  %v1614_v56 = vsel %vm517_vm1, %v1609_v49, %v1613_v34  ;;  %v2047_v5 = vsel %vm2027_vm7, %v2014_v29, %v4179_v60  ;;  %v2031_v1 = vsel %vm2027_vm7, %v1998_v9, %v4185_v33  ;;  %v2800_v49 = vld [vmem:[%s3587_s30 + $0x54] sm:$0xe]  ;;  %v691_v13 = vrot.slane %v689_v6, 1 }
  0xd0   : > { %v4346_v24 = vpop.permute.xlu1 %730  ;;  %v2080_v57 = vsel %vm2060_vm8, %v2047_v5, %v4230_v7  ;;  %v2064_v60 = vsel %vm2060_vm8, %v2031_v1, %v4235_v61  ;;  %v595_v33 = vrot.slane %v593_v20, 1  ;;  %v4388_v34 = vcombine.low %v203_v39, %v4364_v18 }
  0xd1   : > { %v4358_v11 = vpop.permute.xlu0 %714  ;;  %v2097_v7 = vsel %vm2093_vm9, %v2064_v60, %v4287_v58  ;;  %v2952_v19 = vcombine.low %v2808_v21, %v4196_v10  ;;  %v2944_v61 = vcombine.low %v2800_v49, %v4204_v27  ;;  %v692_v58 = vor.u32 %v691_v13, %v687_v59  ;;  %v252_v13 = vld [vmem:[%s3587_s30 + $0xb4] sm:$0xe] }
  0xd2   : > { %1759 = vrot.lane.b32.xlu1 %v1698_v35, %s3503_s21  ;;  %v2113_v35 = vsel %vm2093_vm9, %v2080_v57, %v4276_v62  ;;  %v1853_v62 = vsel %vm790_vm0, %v1851_v31, %v1852_v38  ;;  %v701_v10 = vshll.u32 %v4381_v50, 16  ;;  %v1829_v27 = vsel %vm790_vm0, %v1827_v52, %v1828_v17 }
  0xd3   : > { %1743 = vrot.lane.b32.xlu0 %v1602_v42, %s3503_s21  ;;  %v596_v12 = vor.u32 %v595_v33, %v591_v37  ;;  %v600_v53 = vrot.slane %v598_v0, 1  ;;  %v4409_v42 = vld [vmem:[%s3587_s30 + $0x5c] ss:$0 sps:$4 sm:$0x11]   ;;  %v605_v47 = vshll.u32 %v4388_v34, 16  ;;  %v1854_v31 = vrot.slane %v2952_v19, 1 }
  0xd4   : > { %v1882_v45 = vpop.permute.xlu1 %1881  ;;  %v1855_v38 = vrot.slane %v4247_v2, 1  ;;  %v1830_v6 = vrot.slane %v2944_v61, 1  ;;  %v1831_v40 = vrot.slane %v4257_v8, 1  ;;  %v697_v52 = vsel %vm517_vm1, %v692_v58, %v696_v48  ;;  %v251_v8 = vld [vmem:[%s3587_s30 + $0xa8] sm:$0xe] }
  0xd5   : > { %v2146_v30 = vsel %vm2126_vm10, %v2113_v35, %v1882_v45  ;;  %v1866_v41 = vpop.permute.xlu0 %1865  ;;  %v699_v17 = vshrl.u32 %v4381_v50, 16  ;;  %v703_v26 = vrot.slane %v701_v10, 1  ;;  %v601_v22 = vsel %vm517_vm1, %v596_v12, %v600_v53  ;;  %v244_v35 = vld [vmem:[%s3587_s30 + $0x54] sm:$0xe] }
  0xd6   : > { %v2130_v55 = vsel %vm2126_vm10, %v2097_v7, %v1866_v41  ;;  %1761 = vrot.lane.b32.xlu1 %v1710_v44, %s3503_s21  ;;  %3182 = vmatmul.mubr.msk.bf16.vlgmr.msra.gmra.mrb[0].mxu1 %vm2186_vm11, %v2146_v30  ;;  %v603_v63 = vshrl.u32 %v4388_v34, 16  ;;  %v607_v29 = vrot.slane %v605_v47, 1  ;;  %v610_v2 = vshll.u32 %v4409_v42, 16  ;;  %v2695_v48 = vld [vmem:[%s3587_s30 + $0x54] sm:$0xf] }
  0xd7   : > { %1745 = vrot.lane.b32.xlu0 %v1614_v56, %s3503_s21  ;;  %3166 = vmatmul.mubr.msk.bf16.vlgmr.msra.gmra.mrb[0].mxu0 %vm2186_vm11, %v2130_v55  ;;  %v706_v56 = vshll.u32 %v4402_v4, 16  ;;  %v1856_v39 = vsel %vm790_vm0, %v1854_v31, %v1855_v38  ;;  %v704_v9 = vor.u32 %v703_v26, %v699_v17  ;;  %v2857_v37 = vcombine.low %v251_v8, %v4281_v14  ;;  %v2711_v55 = vld [vmem:[%s3587_s30 + $0xb4] sm:$0xf]  ;;  %v2713_v38 = vld [vmem:[%s3587_s30 + $0xc0] sm:$0xf] }
  0xd8   : > { %v4405_v3 = vpop.permute.xlu1 %732  ;;  %v1832_v1 = vsel %vm790_vm0, %v1830_v6, %v1831_v40  ;;  %v608_v57 = vor.u32 %v607_v29, %v603_v63  ;;  %v612_v21 = vrot.slane %v610_v2, 1  ;;  %v2849_v49 = vcombine.low %v243_v43, %v4291_v23  ;;  %v4474_v6 = vld [vmem:[%s3587_s30 + $0xc4] sm:$0xf] }
  0xd9   : > { %v4412_v44 = vpop.permute.xlu0 %716  ;;  %v708_v5 = vrot.slane %v706_v56, 1  ;;  %v833_v45 = vrot.slane %v2857_v37, 1  ;;  %v834_v33 = vrot.slane %v4323_v16, 1  ;;  %v2858_v7 = vcombine.low %v252_v13, %v4352_v25  ;;  %v4460_v16 = vld [vmem:[%s3587_s30 + $0x58] sm:$0xf] }
  0xda   : > { %1887 = vrot.lane.b32.xlu1 %v1853_v62, %s3504_s23  ;;  %v613_v23 = vsel %vm517_vm1, %v608_v57, %v612_v21  ;;  %v809_v41 = vrot.slane %v2849_v49, 1  ;;  %v810_v19 = vrot.slane %v4332_v36, 1  ;;  %v2850_v61 = vcombine.low %v244_v35, %v4364_v18  ;;  %v4454_v62 = vld [vmem:[%s3587_s30 + $0xb8] sm:$0xf]  ;;  %v4480_v17 = vld [vmem:[%s3587_s30 + $0x64] sm:$0xf] }
  0xdb   : > { %1871 = vrot.lane.b32.xlu0 %v1829_v27, %s3504_s23  ;;  %v709_v14 = vsel %vm517_vm1, %v704_v9, %v708_v5  ;;  %v835_v36 = vsel %vm790_vm0, %v833_v45, %v834_v33  ;;  %v836_v25 = vrot.slane %v2858_v7, 1  ;;  %v837_v18 = vrot.slane %v4402_v4, 1  ;;  %v4484_v4 = vld [vmem:[%s3587_s30 + $0xbc] ss:$0 sps:$4 sm:$0x11]  }
  0xdc   : > { %v4421_v20 = vpop.permute.xlu1 %859  ;;  %v2873_v10 = vcombine.low %v2711_v55, %v4454_v62  ;;  %v811_v12 = vsel %vm790_vm0, %v809_v41, %v810_v19  ;;  %v812_v53 = vrot.slane %v2850_v61, 1  ;;  %v813_v47 = vrot.slane %v4409_v42, 1  ;;  %v4508_v35 = vld [vmem:[%s3587_s30 + $0x68] ss:$0 sps:$4 sm:$0x11]  }
  0xdd   : > { %v4427_v59 = vpop.permute.xlu0 %843  ;;  %v2865_v31 = vcombine.low %v2695_v48, %v4460_v16  ;;  %v838_v26 = vsel %vm790_vm0, %v836_v25, %v837_v18  ;;  %v2874_v42 = vcombine.low %v2713_v38, %v4474_v6  ;;  %v1207_v9 = vshll.u32 %v4484_v4, 16 }
  0xde   : > { %738 = vrot.lane.b32.xlu1 %v697_v52, %s3499_s6  ;;  %v2697_v52 = vld [vmem:[%s3587_s30 + $0x60] sm:$0xf]  ;;  %v1202_v56 = vshll.u32 %v2873_v10, 16  ;;  %v814_v29 = vsel %vm790_vm0, %v812_v53, %v813_v47  ;;  %v1123_v18 = vshll.u32 %v4508_v35, 16  ;;  %v2737_v53 = vld [vmem:[%s3587_s30 + $0x54] sm:$0xe] }
  0xdf   : > { %722 = vrot.lane.b32.xlu0 %v601_v22, %s3499_s6  ;;  %v4490_v22 = vld [vmem:[%s3587_s30 + $0x5c] ss:$0 sps:$4 sm:$0x11]   ;;  %v2866_v2 = vcombine.low %v2697_v52, %v4480_v17  ;;  %v1106_v8 = vshll.u32 %v2865_v31, 16  ;;  %v1214_v57 = vshll.u32 %v2874_v42, 16  ;;  %v1104_v49 = vshrl.u32 %v2865_v31, 16 }
  0xe0   : > { %v4434_v0 = vpop.permute.xlu1 %861  ;;  %v1204_v5 = vrot.slane %v1202_v56, 1  ;;  %v1111_v37 = vshll.u32 %v4490_v22, 16  ;;  %v1209_v33 = vrot.slane %v1207_v9, 1  ;;  %v1212_v7 = vshrl.u32 %v2874_v42, 16  ;;  %v2746_v9 = vld [vmem:[%s3587_s30 + $0xc0] sm:$0xe] }
  0xe1   : > { %v4439_v60 = vpop.permute.xlu0 %845  ;;  %v1108_v13 = vrot.slane %v1106_v8, 1  ;;  %v1216_v19 = vrot.slane %v1214_v57, 1  ;;  %v1125_v8 = vrot.slane %v1123_v18, 1 }
  0xe2   : > { %1889 = vrot.lane.b32.xlu1 %v1856_v39, %s3504_s23  ;;  %v1200_v39 = vshrl.u32 %v2873_v10, 16  ;;  %v1113_v41 = vrot.slane %v1111_v37, 1  ;;  %v4536_v37 = vld [vmem:[%s3587_s30 + $0xc4] sm:$0xf] }
  0xe3   : > { %1873 = vrot.lane.b32.xlu0 %v1832_v1, %s3504_s23  ;;  %v4503_v1 = vld [vmem:[%s3587_s30 + $0xc8] ss:$0 sps:$4 sm:$0x11]   ;;  %v1109_v48 = vor.u32 %v1108_v13, %v1104_v49  ;;  %v2906_v13 = vcombine.low %v2746_v9, %v4474_v6 }
  0xe4   : > { %v4447_v30 = vpop.permute.xlu1 %971  ;;  %v1219_v61 = vshll.u32 %v4503_v1, 16  ;;  %v1349_v18 = vrot.slane %v4503_v1, 1 }
  0xe5   : > { %v4456_v58 = vpop.permute.xlu0 %955  ;;  %v1114_v56 = vsel %vm517_vm1, %v1109_v48, %v1113_v41  ;;  %v2777_v48 = vld [vmem:[%s3587_s30 + $0xcc] sm:$0xf] }
  0xe6   : > { %740 = vrot.lane.b32.xlu1 %v709_v14, %s3499_s6  ;;  %v1118_v14 = vshll.u32 %v2866_v2, 16  ;;  %v1221_v38 = vrot.slane %v1219_v61, 1 }
  0xe7   : > { %724 = vrot.lane.b32.xlu0 %v613_v23, %s3499_s6  ;;  %v1205_v23 = vor.u32 %v1204_v5, %v1200_v39  ;;  %v2897_v39 = vcombine.low %v2737_v53, %v4460_v16  ;;  %v2775_v5 = vld [vmem:[%s3587_s30 + $0xc0] sm:$0xf]  ;;  %v1322_v16 = vrot.slane %v4490_v22, 1  ;;  %v4559_v22 = vld [vmem:[%s3587_s30 + $0xd0] sm:$0xf] }
  0xe8   : > { %v4467_v27 = vpop.permute.xlu1 %973  ;;  %v1120_v25 = vrot.slane %v1118_v14, 1  ;;  %v2759_v14 = vld [vmem:[%s3587_s30 + $0x60] sm:$0xf] }
  0xe9   : > { %v4476_v40 = vpop.permute.xlu0 %957  ;;  %v1210_v47 = vsel %vm517_vm1, %v1205_v23, %v1209_v33  ;;  %v4546_v33 = vld [vmem:[%s3587_s30 + $0x64] sm:$0xf]  ;;  %v1321_v41 = vrot.slane %v2897_v39, 1  ;;  %v4581_v39 = vld [vmem:[%s3587_s30 + $0x68] ss:$0 sps:$4 sm:$0x11]  }
  0xea   : > { %867 = vrot.lane.b32.xlu1 %v835_v36, %s3498_s5  ;;  %v1116_v36 = vshrl.u32 %v2866_v2, 16  ;;  %v2913_v6 = vcombine.low %v2759_v14, %v4546_v33  ;;  %v1623_v14 = vshll.u32 %v4581_v39, 16 }
  0xeb   : > { %851 = vrot.lane.b32.xlu0 %v811_v12, %s3498_s5  ;;  %v2745_v12 = vld [vmem:[%s3587_s30 + $0xb4] sm:$0xe]  ;;  %v1323_v53 = vsel %vm790_vm0, %v1321_v41, %v1322_v16  ;;  %v1917_v41 = vsel %vm1895_vm3, %v3775_v51, %v4346_v24 }
  0xec   : > { %v4492_v63 = vpop.permute.xlu1 %1243  ;;  %v2905_v52 = vcombine.low %v2745_v12, %v4454_v62  ;;  %v1346_v62 = vrot.slane %v4484_v4, 1  ;;  %v1618_v9 = vshll.u32 %v2913_v6, 16 }
  0xed   : > { %v4496_v43 = vpop.permute.xlu0 %1227 }
  0xee   : > { %869 = vrot.lane.b32.xlu1 %v838_v26, %s3498_s5  ;;  %v1345_v49 = vrot.slane %v2905_v52, 1 }
  0xef   : > { %853 = vrot.lane.b32.xlu0 %v814_v29, %s3498_s5  ;;  %v1121_v29 = vor.u32 %v1120_v25, %v1116_v36  ;;  %v4562_v36 = vld [vmem:[%s3587_s30 + $0xc8] ss:$0 sps:$4 sm:$0x11]   ;;  %v1348_v25 = vrot.slane %v2906_v13, 1 }
  0xf0   : > { %v4505_v21 = vpop.permute.xlu1 %1245  ;;  %v1719_v1 = vshll.u32 %v4562_v36, 16 }
  0xf1   : > { %v4510_v45 = vpop.permute.xlu0 %1229  ;;  %v1126_v23 = vsel %vm517_vm1, %v1121_v29, %v1125_v8  ;;  %v4575_v29 = vcombine.low %v2777_v48, %v4559_v22  ;;  %v4578_v8 = vld [vmem:[%s3587_s30 + $0x70] sm:$0xf]  ;;  %v1616_v48 = vshrl.u32 %v2913_v6, 16 }
  0xf2   : > { %979 = vrot.lane.b32.xlu1 %v2873_v10, %s3497_s4 }
  0xf3   : > { %963 = vrot.lane.b32.xlu0 %v2865_v31, %s3497_s4  ;;  %v1217_v31 = vor.u32 %v1216_v19, %v1212_v7  ;;  %v2921_v19 = vcombine.low %v2775_v5, %v4536_v37 }
  0xf4   : > { %v4515_v55 = vpop.permute.xlu1 %1371 }
  0xf5   : > { %v4519_v10 = vpop.permute.xlu0 %1355  ;;  %v1222_v57 = vsel %vm517_vm1, %v1217_v31, %v1221_v38  ;;  %v1325_v31 = vrot.slane %v4508_v35, 1  ;;  %v2761_v38 = vld [vmem:[%s3587_s30 + $0x6c] sm:$0xf]  ;;  %v1714_v52 = vshll.u32 %v2921_v19, 16  ;;  %v1350_v35 = vsel %vm790_vm0, %v1348_v25, %v1349_v18 }
  0xf6   : > { %981 = vrot.lane.b32.xlu1 %v2874_v42, %s3497_s4  ;;  %v1901_v25 = vsel %vm1895_vm3, %v3778_v54, %v4358_v11  ;;  %v1950_v18 = vsel %vm1928_vm4, %v1917_v41, %v4421_v20 }
  0xf7   : > { %965 = vrot.lane.b32.xlu0 %v2866_v2, %s3497_s4  ;;  %v2738_v2 = vld [vmem:[%s3587_s30 + $0x60] sm:$0xe]  ;;  %v1716_v16 = vrot.slane %v1714_v52, 1  ;;  %v1934_v51 = vsel %vm1928_vm4, %v1901_v25, %v4427_v59  ;;  %v1983_v24 = vsel %vm1961_vm5, %v1950_v18, %v4447_v30 }
  0xf8   : > { %v4526_v26 = vpop.permute.xlu1 %1373  ;;  %v2898_v4 = vcombine.low %v2738_v2, %v4480_v17  ;;  %v1347_v17 = vsel %vm790_vm0, %v1345_v49, %v1346_v62  ;;  %v4588_v2 = vld [vmem:[%s3587_s30 + $0xd4] ss:$0 sps:$4 sm:$0x11]   ;;  %v1712_v49 = vshrl.u32 %v2921_v19, 16  ;;  %v1967_v20 = vsel %vm1961_vm5, %v1934_v51, %v4456_v58  ;;  %v2809_v58 = vld [vmem:[%s3587_s30 + $0xc0] sm:$0xe] }
  0xf9   : > { %v4531_v42 = vpop.permute.xlu0 %1357  ;;  %v2016_v52 = vsel %vm1994_vm6, %v1983_v24, %v4492_v63  ;;  %v2000_v59 = vsel %vm1994_vm6, %v1967_v20, %v4496_v43  ;;  %v2802_v24 = vld [vmem:[%s3587_s30 + $0x6c] sm:$0xe] }
  0xfa   : > { %1251 = vrot.lane.b32.xlu1 %v1210_v47, %s3500_s7  ;;  %v1324_v47 = vrot.slane %v2898_v4, 1  ;;  %v1721_v4 = vrot.slane %v1719_v1, 1  ;;  %v1717_v54 = vor.u32 %v1716_v16, %v1712_v49  ;;  %v2049_v30 = vsel %vm2027_vm7, %v2016_v52, %v4515_v55 }
  0xfb   : > { %1235 = vrot.lane.b32.xlu0 %v1114_v56, %s3500_s7  ;;  %v2033_v63 = vsel %vm2027_vm7, %v2000_v59, %v4519_v10 }
  0xfc   : > { %v4548_v7 = vpop.permute.xlu1 %1483  ;;  %v1326_v62 = vsel %vm790_vm0, %v1324_v47, %v1325_v31  ;;  %v1731_v47 = vshll.u32 %v4588_v2, 16  ;;  %v4609_v31 = vld [vmem:[%s3587_s30 + $0x74] ss:$0 sps:$4 sm:$0x11]   ;;  %v1722_v41 = vsel %vm517_vm1, %v1717_v54, %v1721_v4  ;;  %v1903_v4 = vsel %vm1895_vm3, %v3821_v32, %v4412_v44 }
  0xfd   : > { %v4553_v61 = vpop.permute.xlu0 %1467  ;;  %v2082_v16 = vsel %vm2060_vm8, %v2049_v30, %v4548_v7  ;;  %v1635_v43 = vshll.u32 %v4609_v31, 16 }
  0xfe   : > { %1253 = vrot.lane.b32.xlu1 %v1222_v57, %s3500_s7  ;;  %v4592_v57 = vcombine.low %v2761_v38, %v4578_v8  ;;  %v2066_v55 = vsel %vm2060_vm8, %v2033_v63, %v4553_v61  ;;  %v1919_v61 = vsel %vm1895_vm3, %v3816_v28, %v4405_v3  ;;  %v1936_v3 = vsel %vm1928_vm4, %v1903_v4, %v4439_v60 }
  0xff   : > { %1237 = vrot.lane.b32.xlu0 %v1126_v23, %s3500_s7  ;;  %v1726_v23 = vshll.u32 %v4575_v29, 16  ;;  %v1637_v44 = vrot.slane %v1635_v43, 1  ;;  %v1858_v60 = vrot.slane %v4562_v36, 1  ;;  %s3044_s7 = sshll.u32 %s3487_s15, 11 }
 0x100   : > { %v4567_v12 = vpop.permute.xlu1 %1485  ;;  %v1630_v11 = vshll.u32 %v4592_v57, 16  ;;  %v1628_v49 = vshrl.u32 %v4592_v57, 16 }
 0x101   : > { %v4572_v56 = vpop.permute.xlu0 %1469 }
 0x102   : > { %1379 = vrot.lane.b32.xlu1 %v1347_v17, %s3501_s8  ;;  %v1620_v17 = vrot.slane %v1618_v9, 1  ;;  %v1625_v9 = vrot.slane %v1623_v14, 1  ;;  %v1733_v14 = vrot.slane %v1731_v47, 1  ;;  %v2810_v47 = vld [vmem:[%s3587_s30 + $0xcc] sm:$0xe] }
 0x103   : > { %1363 = vrot.lane.b32.xlu0 %v1323_v53, %s3501_s8  ;;  %v1724_v53 = vshrl.u32 %v4575_v29, 16  ;;  %v2954_v52 = vcombine.low %v2810_v47, %v4559_v22 }
 0x104   : > { %v1756_v5 = vpop.permute.xlu1 %1755 }
 0x105   : > { %v1740_v13 = vpop.permute.xlu0 %1739 }
 0x106   : > { %1381 = vrot.lane.b32.xlu1 %v1350_v35, %s3501_s8  ;;  %v1728_v35 = vrot.slane %v1726_v23, 1  ;;  %v2099_v10 = vsel %vm2093_vm9, %v2066_v55, %v1740_v13 }
 0x107   : > { %1365 = vrot.lane.b32.xlu0 %v1326_v62, %s3501_s8  ;;  %v1621_v62 = vor.u32 %v1620_v17, %v1616_v48  ;;  %v1632_v48 = vrot.slane %v1630_v11, 1  ;;  %v2801_v17 = vld [vmem:[%s3587_s30 + $0x60] sm:$0xe]  ;;  %s175_s30 = sand.u32 1, %s3479_s13  }
 0x108   : > { %v4615_v38 = vpop.permute.xlu1 %1757  ;;  %v1729_v18 = vor.u32 %v1728_v35, %v1724_v53  ;;  %v2945_v28 = vcombine.low %v2801_v17, %v4546_v33  ;;  %v2946_v35 = vcombine.low %v2802_v24, %v4578_v8  ;;  %v1861_v8 = vrot.slane %v4588_v2, 1  ;;  %s2681_s4 = sshll.u32 %s175_s30, 7  ;;  %s4865_s15 = scalar_lea.sflag [#allocation3], %s175_s30 }
 0x109   : > { %v4622_v1 = vpop.permute.xlu0 %1741  ;;  %v1626_v13 = vsel %vm517_vm1, %v1621_v62, %v1625_v9  ;;  %v1633_v32 = vor.u32 %v1632_v48, %v1628_v49  ;;  %v1837_v49 = vrot.slane %v4609_v31, 1  ;;  %s4812_s5 = scalar_lea.vmem [#allocation2], %s2681_s4 }
 0x10a   : > { %1491 = vrot.lane.b32.xlu1 %v2921_v19, %s3502_s11  ;;  %v2115_v19 = vsel %vm2093_vm9, %v2082_v16, %v1756_v5  ;;  %v1734_v33 = vsel %vm517_vm1, %v1729_v18, %v1733_v14  ;;  %v1833_v36 = vrot.slane %v2945_v28, 1  ;;  %v1836_v62 = vrot.slane %v2946_v35, 1  ;;  %s2593_s8 = sshll.u32 %s4812_s5, 4  ;;  %s4858_s8 = int_to_ptr.vmem [resolvable:$true] %s2593_s8 }
 0x10b   : > { %1475 = vrot.lane.b32.xlu0 %v2913_v6, %s3502_s11  ;;  %v2953_v6 = vcombine.low %v2809_v58, %v4536_v37  ;;  %v1952_v37 = vsel %vm1928_vm4, %v1919_v61, %v4434_v0  ;;  %v1969_v0 = vsel %vm1961_vm5, %v1936_v3, %v4476_v40  ;;  %v1834_v40 = vrot.slane %v4581_v39, 1  ;;  %s3417_s18 = scalar_lea.vmem %s4858_s8, 2048 }
 0x10c   : > { %v1884_v23 = vpop.permute.xlu1 %1883  ;;  %v1638_v39 = vsel %vm517_vm1, %v1633_v32, %v1637_v44  ;;  %v1838_v14 = vsel %vm790_vm0, %v1836_v62, %v1837_v49  ;;  %v4927_v44 = vld [vmem:[#allocation6_spill] sm:$0xff]  ;;  %p3418_p12 = scmp.ne.s32.totalorder %s4858_s8, %s3417_s18 }
 0x10d   : > { %v2148_v25 = vsel %vm2126_vm10, %v2115_v19, %v1884_v23  ;;  %v1868_v7 = vpop.permute.xlu0 %1867  ;;  %v1857_v11 = vrot.slane %v2953_v6, 1 }
 0x10e   : > { %v2132_v5 = vsel %vm2126_vm10, %v2099_v10, %v1868_v7  ;;  %1493 = vrot.lane.b32.xlu1 %v4575_v29, %s3502_s11  ;;  %3185 = vmatprep.mubr.msk.bf16.mxu1 %vm2186_vm11, %v2148_v25  ;;  %v1985_v29 = vsel %vm1961_vm5, %v1952_v37, %v4467_v27  ;;  %v2002_v27 = vsel %vm1994_vm6, %v1969_v0, %v4510_v45  ;;  %p3419_p13 = pnand %p3418_p12, %p3567_p4 }
 0x10f   : > { %1477 = vrot.lane.b32.xlu0 %v4592_v57, %s3502_s11  ;;  %3169 = vmatprep.mubr.msk.bf16.mxu0 %vm2186_vm11, %v2132_v5  ;;  %v2018_v57 = vsel %vm1994_vm6, %v1985_v29, %v4505_v21  ;;  %v2035_v21 = vsel %vm2027_vm7, %v2002_v27, %v4531_v42  ;;  %v1859_v22 = vsel %vm790_vm0, %v1857_v11, %v1858_v60  ;;  %v4926_v29 = vld [vmem:[#allocation5_spill] sm:$0xff]  ;;  %s4855_s11 = scalar_lea.hbm %s4915_s3, %s3044_s7 }
 0x110   : > { %v4666_v53 = vpop.permute.xlu1 %734  ;;  %v2051_v54 = vsel %vm2027_vm7, %v2018_v57, %v4526_v26  ;;  %v2068_v45 = vsel %vm2060_vm8, %v2035_v21, %v4572_v56  ;;  %v1860_v56 = vrot.slane %v2954_v52, 1  ;;  %p3420_p0 = pneg %p3419_p13 }
 0x111   : > { %v4673_v51 = vpop.permute.xlu0 %718  ;;  %v2084_v20 = vsel %vm2060_vm8, %v2051_v54, %v4567_v12  ;;  %v2101_v42 = vsel %vm2093_vm9, %v2068_v45, %v4622_v1  ;;  %v1835_v1 = vsel %vm790_vm0, %v1833_v36, %v1834_v40  ;;  %v1921_v32 = vsel %vm1895_vm3, %v4926_v29, %v4666_v53 }
 0x112   : > { %1763 = vrot.lane.b32.xlu1 %v1722_v41, %s3503_s21  ;;  %v2117_v26 = vsel %vm2093_vm9, %v2084_v20, %v4615_v38  ;;  %v1862_v63 = vsel %vm790_vm0, %v1860_v56, %v1861_v8  ;;  %v1905_v47 = vsel %vm1895_vm3, %v4927_v44, %v4673_v51 }
 0x113   : > { %1747 = vrot.lane.b32.xlu0 %v1626_v13, %s3503_s21 }
 0x114   : > { %v1886_v9 = vpop.permute.xlu1 %1885 }
 0x115   : > { %v2150_v12 = vsel %vm2126_vm10, %v2117_v26, %v1886_v9  ;;  %v1870_v59 = vpop.permute.xlu0 %1869  ;;  %v4928_v9 = vld [vmem:[#allocation7_spill] sm:$0xff] }
 0x116   : > { %v2134_v30 = vsel %vm2126_vm10, %v2101_v42, %v1870_v59  ;;  %1765 = vrot.lane.b32.xlu1 %v1734_v33, %s3503_s21  ;;  %3186 = vmatmul.mubr.msk.bf16.gmra.mrb[4].mxu1 %vm2186_vm11, %v2150_v12  ;;  %v4929_v42 = vld [vmem:[#allocation8_spill] sm:$0xff] }
 0x117   : > { %1749 = vrot.lane.b32.xlu0 %v1638_v39, %s3503_s21  ;;  %3170 = vmatmul.mubr.msk.bf16.gmra.mrb[4].mxu0 %vm2186_vm11, %v2134_v30  ;;  %s3421_s21 = sshll.u32 %s3505_s19, 4  ;;  %s3422_s21 = int_to_ptr.vmem [resolvable:$false] %s3421_s21 }
 0x118   : > { %v737_v38 = vpop.permute.xlu1 %736  ;;  %p3424_p1 = scmp.lt.s32.totalorder %s4858_s8, %s3422_s21 }
 0x119   : > { %v721_v58 = vpop.permute.xlu0 %720  ;;  %v1923_v39 = vsel %vm1895_vm3, %v4928_v9, %v737_v38 }
 0x11a   : > { %1891 = vrot.lane.b32.xlu1 %v1859_v22, %s3504_s23  ;;  %v1907_v12 = vsel %vm1895_vm3, %v4929_v42, %v721_v58 }
 0x11b   : > { %1875 = vrot.lane.b32.xlu0 %v1835_v1, %s3504_s23 }
 0x11c   : > { %v864_v16 = vpop.permute.xlu1 %863 }
 0x11d   : > { %v848_v43 = vpop.permute.xlu0 %847  ;;  %v1954_v0 = vsel %vm1928_vm4, %v1921_v32, %v864_v16 }
 0x11e   : > { %1893 = vrot.lane.b32.xlu1 %v1862_v63, %s3504_s23  ;;  %v1938_v57 = vsel %vm1928_vm4, %v1905_v47, %v848_v43 }
 0x11f   : > { %1877 = vrot.lane.b32.xlu0 %v1838_v14, %s3504_s23  ;;  %s3423_s23 = scalar_lea.vmem %s3422_s21, 4096 }
 0x120   : > { %v866_v2 = vpop.permute.xlu1 %865  ;;  %p3425_p2 = scmp.lt.s32.totalorder %s3423_s23, %s3417_s18 }
 0x121   : > { %v850_v55 = vpop.permute.xlu0 %849  ;;  %v1956_v59 = vsel %vm1928_vm4, %v1923_v39, %v866_v2 }
 0x122   : > { %v1940_v30 = vsel %vm1928_vm4, %v1907_v12, %v850_v55  ;;  %p3426_p3 = por %p3425_p2, %p3424_p1 }
 0x124   : > { %v976_v19 = vpop.permute.xlu1 %975  ;;  %p3427_p5 = pnand %p3426_p3, %p3420_p0 }
 0x125   : > { %v960_v23 = vpop.permute.xlu0 %959  ;;  %v1987_v33 = vsel %vm1961_vm5, %v1954_v0, %v976_v19 }
 0x126   : > { %v1971_v24 = vsel %vm1961_vm5, %v1938_v57, %v960_v23 }
 0x128   : > { %v978_v31 = vpop.permute.xlu1 %977 }
 0x129   : > { %v962_v41 = vpop.permute.xlu0 %961  ;;  %v1989_v22 = vsel %vm1961_vm5, %v1956_v59, %v978_v31 }
 0x12a   : > { %v1973_v8 = vsel %vm1961_vm5, %v1940_v30, %v962_v41 }
 0x12c   : > { %v1248_v48 = vpop.permute.xlu1 %1247 }
 0x12d   : > { %v1232_v17 = vpop.permute.xlu0 %1231  ;;  %v2020_v27 = vsel %vm1994_vm6, %v1987_v33, %v1248_v48 }
 0x12e   : > { %v2004_v11 = vsel %vm1994_vm6, %v1971_v24, %v1232_v17 }
 0x130   : > { %v1250_v10 = vpop.permute.xlu1 %1249 }
 0x131   : > { %v1234_v25 = vpop.permute.xlu0 %1233  ;;  %v2022_v38 = vsel %vm1994_vm6, %v1989_v22, %v1250_v10 }
 0x132   : > { %v2006_v62 = vsel %vm1994_vm6, %v1973_v8, %v1234_v25 }
 0x134   : > { %v1376_v7 = vpop.permute.xlu1 %1375 }
 0x135   : > { %v1360_v18 = vpop.permute.xlu0 %1359  ;;  %v2053_v53 = vsel %vm2027_vm7, %v2020_v27, %v1376_v7 }
 0x136   : > { %v2037_v40 = vsel %vm2027_vm7, %v2004_v11, %v1360_v18 }
 0x138   : > { %v1378_v6 = vpop.permute.xlu1 %1377 }
 0x139   : > { %v1362_v61 = vpop.permute.xlu0 %1361  ;;  %v2055_v49 = vsel %vm2027_vm7, %v2022_v38, %v1378_v6 }
 0x13a   : > { %v2039_v58 = vsel %vm2027_vm7, %v2006_v62, %v1362_v61 }
 0x13c   : > { %v1488_v5 = vpop.permute.xlu1 %1487 }
 0x13d   : > { %v1472_v13 = vpop.permute.xlu0 %1471  ;;  %v2086_v51 = vsel %vm2060_vm8, %v2053_v53, %v1488_v5 }
 0x13e   : > { %v2070_v21 = vsel %vm2060_vm8, %v2037_v40, %v1472_v13 }
 0x140   : > { %v1490_v4 = vpop.permute.xlu1 %1489 }
 0x141   : > { %v1474_v37 = vpop.permute.xlu0 %1473  ;;  %v2088_v63 = vsel %vm2060_vm8, %v2055_v49, %v1490_v4 }
 0x142   : > { %v2072_v16 = vsel %vm2060_vm8, %v2039_v58, %v1474_v37 }
 0x144   : > { %v1760_v28 = vpop.permute.xlu1 %1759 }
 0x145   : > { %v1744_v3 = vpop.permute.xlu0 %1743  ;;  %v2119_v20 = vsel %vm2093_vm9, %v2086_v51, %v1760_v28 }
 0x146   : > { %v2103_v52 = vsel %vm2093_vm9, %v2070_v21, %v1744_v3 }
 0x148   : > { %v1762_v60 = vpop.permute.xlu1 %1761 }
 0x149   : > { %v1746_v54 = vpop.permute.xlu0 %1745  ;;  %v2121_v14 = vsel %vm2093_vm9, %v2088_v63, %v1762_v60 }
 0x14a   : > { %v2105_v2 = vsel %vm2093_vm9, %v2072_v16, %v1746_v54 }
 0x14c   : > { %v1888_v36 = vpop.permute.xlu1 %1887 }
 0x14d   : > { %v2152_v45 = vsel %vm2126_vm10, %v2119_v20, %v1888_v36  ;;  %v1872_v26 = vpop.permute.xlu0 %1871 }
 0x14e   : > { %v2136_v35 = vsel %vm2126_vm10, %v2103_v52, %v1872_v26  ;;  %3189 = vmatprep.mubr.msk.bf16.mxu1 %vm2186_vm11, %v2152_v45 }
 0x14f   : > { %3173 = vmatprep.mubr.msk.bf16.mxu0 %vm2186_vm11, %v2136_v35 }
 0x150   : > { %v739_v56 = vpop.permute.xlu1 %738 }
 0x151   : > { %v723_v1 = vpop.permute.xlu0 %722  ;;  %v1925_v24 = vsel %vm1895_vm3, %v4306_v46, %v739_v56 }
 0x152   : > { %v1909_v27 = vsel %vm1895_vm3, %v4315_v15, %v723_v1 }
 0x154   : > { %v1890_v43 = vpop.permute.xlu1 %1889 }
 0x155   : > { %v2154_v55 = vsel %vm2126_vm10, %v2121_v14, %v1890_v43  ;;  %v1874_v19 = vpop.permute.xlu0 %1873 }
 0x156   : > { %v2138_v23 = vsel %vm2126_vm10, %v2105_v2, %v1874_v19  ;;  %3190 = vmatmul.mubr.msk.bf16.gmra.mrb[8].mxu1 %vm2186_vm11, %v2154_v55  ;;  %v4799_v19 = vld [vmem:[%s4914_s2] ss:$0 sm:$0xff] }
 0x157   : > { %3174 = vmatmul.mubr.msk.bf16.gmra.mrb[8].mxu0 %vm2186_vm11, %v2138_v23 }
 0x158   : > { %v741_v31 = vpop.permute.xlu1 %740 }
 0x159   : > { %v725_v41 = vpop.permute.xlu0 %724  ;;  %v1927_v36 = vsel %vm1895_vm3, %v4381_v50, %v741_v31 }
 0x15a   : > { %v1911_v15 = vsel %vm1895_vm3, %v4388_v34, %v725_v41 }
 0x15c   : > { %v868_v48 = vpop.permute.xlu1 %867 }
 0x15d   : > { %v852_v17 = vpop.permute.xlu0 %851  ;;  %v1958_v54 = vsel %vm1928_vm4, %v1925_v24, %v868_v48 }
 0x15e   : > { %v1942_v11 = vsel %vm1928_vm4, %v1909_v27, %v852_v17 }
 0x160   : > { %v870_v10 = vpop.permute.xlu1 %869 }
 0x161   : > { %v854_v25 = vpop.permute.xlu0 %853  ;;  %v1960_v45 = vsel %vm1928_vm4, %v1927_v36, %v870_v10 }
 0x162   : > { %v1944_v39 = vsel %vm1928_vm4, %v1911_v15, %v854_v25 }
 0x164   : > { %v980_v7 = vpop.permute.xlu1 %979 }
 0x165   : > { %v964_v18 = vpop.permute.xlu0 %963  ;;  %v1991_v53 = vsel %vm1961_vm5, %v1958_v54, %v980_v7 }
 0x166   : > { %v1975_v51 = vsel %vm1961_vm5, %v1942_v11, %v964_v18 }
 0x168   : > { %v982_v6 = vpop.permute.xlu1 %981 }
 0x169   : > { %v966_v61 = vpop.permute.xlu0 %965  ;;  %v1993_v35 = vsel %vm1961_vm5, %v1960_v45, %v982_v6 }
 0x16a   : > { %v1977_v59 = vsel %vm1961_vm5, %v1944_v39, %v966_v61 }
 0x16c   : > { %v1252_v5 = vpop.permute.xlu1 %1251 }
 0x16d   : > { %v1236_v13 = vpop.permute.xlu0 %1235  ;;  %v2024_v21 = vsel %vm1994_vm6, %v1991_v53, %v1252_v5 }
 0x16e   : > { %v2008_v46 = vsel %vm1994_vm6, %v1975_v51, %v1236_v13 }
 0x170   : > { %v1254_v4 = vpop.permute.xlu1 %1253 }
 0x171   : > { %v1238_v37 = vpop.permute.xlu0 %1237  ;;  %v2026_v30 = vsel %vm1994_vm6, %v1993_v35, %v1254_v4 }
 0x172   : > { %v2010_v8 = vsel %vm1994_vm6, %v1977_v59, %v1238_v37 }
 0x174   : > { %v1380_v28 = vpop.permute.xlu1 %1379 }
 0x175   : > { %v1364_v3 = vpop.permute.xlu0 %1363  ;;  %v2057_v52 = vsel %vm2027_vm7, %v2024_v21, %v1380_v28 }
 0x176   : > { %v2041_v26 = vsel %vm2027_vm7, %v2008_v46, %v1364_v3 }
 0x178   : > { %v1382_v29 = vpop.permute.xlu1 %1381 }
 0x179   : > { %v1366_v32 = vpop.permute.xlu0 %1365  ;;  %v2059_v38 = vsel %vm2027_vm7, %v2026_v30, %v1382_v29 }
 0x17a   : > { %v2043_v62 = vsel %vm2027_vm7, %v2010_v8, %v1366_v32 }
 0x17c   : > { %v1492_v44 = vpop.permute.xlu1 %1491 }
 0x17d   : > { %v1476_v47 = vpop.permute.xlu0 %1475  ;;  %v2090_v9 = vsel %vm2060_vm8, %v2057_v52, %v1492_v44 }
 0x17e   : > { %v2074_v42 = vsel %vm2060_vm8, %v2041_v26, %v1476_v47 }
 0x180   : > { %v1494_v0 = vpop.permute.xlu1 %1493 }
 0x181   : > { %v1478_v57 = vpop.permute.xlu0 %1477  ;;  %v2092_v49 = vsel %vm2060_vm8, %v2059_v38, %v1494_v0 }
 0x182   : > { %v2076_v58 = vsel %vm2060_vm8, %v2043_v62, %v1478_v57 }
 0x184   : > { %v1764_v33 = vpop.permute.xlu1 %1763 }
 0x185   : > { %v1748_v60 = vpop.permute.xlu0 %1747  ;;  %v2123_v50 = vsel %vm2093_vm9, %v2090_v9, %v1764_v33 }
 0x186   : > { %v2107_v34 = vsel %vm2093_vm9, %v2074_v42, %v1748_v60 }
 0x188   : > { %v1766_v40 = vpop.permute.xlu1 %1765 }
 0x189   : > { %v1750_v20 = vpop.permute.xlu0 %1749  ;;  %v2125_v63 = vsel %vm2093_vm9, %v2092_v49, %v1766_v40 }
 0x18a   : > { %v2109_v14 = vsel %vm2093_vm9, %v2076_v58, %v1750_v20 }
 0x18c   : > { %v1892_v12 = vpop.permute.xlu1 %1891 }
 0x18d   : > { %v2156_v22 = vsel %vm2126_vm10, %v2123_v50, %v1892_v12  ;;  %v1876_v56 = vpop.permute.xlu0 %1875 }
 0x18e   : > { %v2140_v1 = vsel %vm2126_vm10, %v2107_v34, %v1876_v56  ;;  %3193 = vmatprep.mubr.msk.bf16.mxu1 %vm2186_vm11, %v2156_v22 }
 0x18f   : > { %3177 = vmatprep.mubr.msk.bf16.mxu0 %vm2186_vm11, %v2140_v1 }
 0x190   : > { %v1894_v16 = vpop.permute.xlu1 %1893 }
 0x191   : > { %v2158_v43 = vsel %vm2126_vm10, %v2125_v63, %v1894_v16  ;;  %v1878_v2 = vpop.permute.xlu0 %1877 }
 0x192   : > { %v2142_v55 = vsel %vm2126_vm10, %v2109_v14, %v1878_v2  ;;  %3194 = vmatmul.mubr.msk.bf16.gmra.mrb[12].mxu1 %vm2186_vm11, %v2158_v43 }
 0x193   : > { %3178 = vmatmul.mubr.msk.bf16.gmra.mrb[12].mxu0 %vm2186_vm11, %v2142_v55 }
 0x1a9   : > { %v3183_v23 = vpop.f32.mrb[0].mxu1 }
 0x1aa   : > { %v3167_v31 = vpop.f32.mrb[0].mxu0  ;;  %v2330_v41 = vadd.f32 %v3183_v23, %v4799_v19  ;;  %v2321_v48 = vpop.f32.mrb[1].mxu1 }
 0x1ab   : > { %v2266_v17 = vadd.f32 %v3167_v31, %v4799_v19  ;;  %v2257_v10 = vpop.f32.mrb[1].mxu0  ;;  %v2322_v25 = vadd.f32 %v4799_v19, %v2321_v48  ;;  %v3184_v7 = vpop.f32.mrb[2].mxu1 }
 0x1ac   : > { %v2258_v18 = vadd.f32 %v4799_v19, %v2257_v10  ;;  %v3168_v6 = vpop.f32.mrb[2].mxu0  ;;  %v2333_v61 = vadd.f32 %v3184_v7, %v4799_v19  ;;  %v2324_v5 = vpop.f32.mrb[3].mxu1  ;;  %v2402_v28 = vmax.f32 %v2330_v41, 0.0 }
 0x1ad   : > { %v2269_v13 = vadd.f32 %v3168_v6, %v4799_v19  ;;  %v2260_v4 = vpop.f32.mrb[3].mxu0  ;;  %v2325_v37 = vadd.f32 %v4799_v19, %v2324_v5  ;;  %v2386_v32 = vmax.f32 %v2266_v17, 0.0  ;;  %v2400_v44 = vmax.f32 %v2322_v25, 0.0 }
 0x1ae   : > { %v2403_v3 = vmax.f32 %v2333_v61, 0.0  ;;  %v2261_v29 = vadd.f32 %v4799_v19, %v2260_v4  ;;  %v2384_v57 = vmax.f32 %v2258_v18, 0.0 }
 0x1af   : > { %v2387_v47 = vmax.f32 %v2269_v13, 0.0  ;;  %v2401_v0 = vmax.f32 %v2325_v37, 0.0 }
 0x1b0   : > { %v3093_v33 = vpack.c.bf16 %v2403_v3, %v2402_v28  ;;  %v2385_v60 = vmax.f32 %v2261_v29, 0.0 }
 0x1b1   : > { %v3053_v24 = vpack.c.bf16 %v2387_v47, %v2386_v32  ;;  %v3088_v27 = vpack.c.bf16 %v2401_v0, %v2400_v44 }
 0x1b2   : > { %3133 = vst [vmem:[%s4812_s5 + $0x48] sm:$0xff] %v3093_v33   ;;  %v3048_v54 = vpack.c.bf16 %v2385_v60, %v2384_v57 }
 0x1b3   : > { %3125 = vst [vmem:[%s4812_s5 + $0x8] sm:$0xff] %v3053_v24   ;;  %3132 = vst [vmem:[%s4812_s5 + $0x40] sm:$0xff] %v3088_v27  }
 0x1b4   : > { %3049 = vst [vmem:[%s4812_s5] sm:$0xff] %v3048_v54  }
 0x1e9   : > { %v3187_v11 = vpop.f32.mrb[4].mxu1 }
 0x1ea   : > { %v3171_v53 = vpop.f32.mrb[4].mxu0  ;;  %v2346_v40 = vadd.f32 %v3187_v11, %v4799_v19  ;;  %v2337_v51 = vpop.f32.mrb[5].mxu1 }
 0x1eb   : > { %v2282_v21 = vadd.f32 %v3171_v53, %v4799_v19  ;;  %v2273_v20 = vpop.f32.mrb[5].mxu0  ;;  %v2338_v36 = vadd.f32 %v4799_v19, %v2337_v51  ;;  %v3188_v46 = vpop.f32.mrb[6].mxu1 }
 0x1ec   : > { %v2274_v52 = vadd.f32 %v4799_v19, %v2273_v20  ;;  %v3172_v15 = vpop.f32.mrb[6].mxu0  ;;  %v2349_v45 = vadd.f32 %v3188_v46, %v4799_v19  ;;  %v2340_v26 = vpop.f32.mrb[7].mxu1  ;;  %v2406_v42 = vmax.f32 %v2346_v40, 0.0 }
 0x1ed   : > { %v2285_v9 = vadd.f32 %v3172_v15, %v4799_v19  ;;  %v2276_v39 = vpop.f32.mrb[7].mxu0  ;;  %v2341_v35 = vadd.f32 %v4799_v19, %v2340_v26  ;;  %v2390_v59 = vmax.f32 %v2282_v21, 0.0  ;;  %v2404_v30 = vmax.f32 %v2338_v36, 0.0 }
 0x1ee   : > { %v2407_v50 = vmax.f32 %v2349_v45, 0.0  ;;  %v2277_v12 = vadd.f32 %v4799_v19, %v2276_v39  ;;  %v2388_v56 = vmax.f32 %v2274_v52, 0.0 }
 0x1ef   : > { %v2391_v34 = vmax.f32 %v2285_v9, 0.0  ;;  %v2405_v22 = vmax.f32 %v2341_v35, 0.0 }
 0x1f0   : > { %v3103_v8 = vpack.c.bf16 %v2407_v50, %v2406_v42  ;;  %v2389_v38 = vmax.f32 %v2277_v12, 0.0 }
 0x1f1   : > { %v3063_v1 = vpack.c.bf16 %v2391_v34, %v2390_v59  ;;  %v3098_v62 = vpack.c.bf16 %v2405_v22, %v2404_v30 }
 0x1f2   : > { %3135 = vst [vmem:[%s4812_s5 + $0x58] sm:$0xff] %v3103_v8   ;;  %v3058_v49 = vpack.c.bf16 %v2389_v38, %v2388_v56 }
 0x1f3   : > { %3127 = vst [vmem:[%s4812_s5 + $0x18] sm:$0xff] %v3063_v1   ;;  %3134 = vst [vmem:[%s4812_s5 + $0x50] sm:$0xff] %v3098_v62  }
 0x1f4   : > { %3126 = vst [vmem:[%s4812_s5 + $0x10] sm:$0xff] %v3058_v49  }
 0x229   : > { %v3191_v58 = vpop.f32.mrb[8].mxu1 }
 0x22a   : > { %v3175_v63 = vpop.f32.mrb[8].mxu0  ;;  %v2362_v16 = vadd.f32 %v3191_v58, %v4799_v19  ;;  %v2353_v14 = vpop.f32.mrb[9].mxu1 }
 0x22b   : > { %v2298_v43 = vadd.f32 %v3175_v63, %v4799_v19  ;;  %v2289_v2 = vpop.f32.mrb[9].mxu0  ;;  %v2354_v55 = vadd.f32 %v4799_v19, %v2353_v14  ;;  %v3192_v23 = vpop.f32.mrb[10].mxu1 }
 0x22c   : > { %v2290_v31 = vadd.f32 %v4799_v19, %v2289_v2  ;;  %v3176_v41 = vpop.f32.mrb[10].mxu0  ;;  %v2365_v48 = vadd.f32 %v3192_v23, %v4799_v19  ;;  %v2356_v17 = vpop.f32.mrb[11].mxu1  ;;  %v2410_v18 = vmax.f32 %v2362_v16, 0.0 }
 0x22d   : > { %v2301_v10 = vadd.f32 %v3176_v41, %v4799_v19  ;;  %v2292_v25 = vpop.f32.mrb[11].mxu0  ;;  %v2357_v7 = vadd.f32 %v4799_v19, %v2356_v17  ;;  %v2394_v5 = vmax.f32 %v2298_v43, 0.0  ;;  %v2408_v13 = vmax.f32 %v2354_v55, 0.0 }
 0x22e   : > { %v2411_v6 = vmax.f32 %v2365_v48, 0.0  ;;  %v2293_v61 = vadd.f32 %v4799_v19, %v2292_v25  ;;  %v2392_v28 = vmax.f32 %v2290_v31, 0.0 }
 0x22f   : > { %v2395_v4 = vmax.f32 %v2301_v10, 0.0  ;;  %v2409_v37 = vmax.f32 %v2357_v7, 0.0 }
 0x230   : > { %v3113_v3 = vpack.c.bf16 %v2411_v6, %v2410_v18  ;;  %v2393_v29 = vmax.f32 %v2293_v61, 0.0 }
 0x231   : > { %v3073_v32 = vpack.c.bf16 %v2395_v4, %v2394_v5  ;;  %v3108_v44 = vpack.c.bf16 %v2409_v37, %v2408_v13 }
 0x232   : > { %3137 = vst [vmem:[%s4812_s5 + $0x68] sm:$0xff] %v3113_v3   ;;  %v3068_v47 = vpack.c.bf16 %v2393_v29, %v2392_v28 }
 0x233   : > { %3129 = vst [vmem:[%s4812_s5 + $0x28] sm:$0xff] %v3073_v32   ;;  %3136 = vst [vmem:[%s4812_s5 + $0x60] sm:$0xff] %v3108_v44  }
 0x234   : > { %3128 = vst [vmem:[%s4812_s5 + $0x20] sm:$0xff] %v3068_v47  }
 0x265   : > { %v3195_v0 = vpop.f32.mrb[12].mxu1 }
 0x266   : > { %v3179_v57 = vpop.f32.mrb[12].mxu0  ;;  %v2378_v33 = vadd.f32 %v3195_v0, %v4799_v19  ;;  %v2369_v60 = vpop.f32.mrb[13].mxu1 }
 0x267   : > { %v2314_v24 = vadd.f32 %v3179_v57, %v4799_v19  ;;  %v2305_v27 = vpop.f32.mrb[13].mxu0  ;;  %v2370_v54 = vadd.f32 %v4799_v19, %v2369_v60  ;;  %v3196_v11 = vpop.f32.mrb[14].mxu1 }
 0x268   : > { %v2306_v53 = vadd.f32 %v4799_v19, %v2305_v27  ;;  %v3180_v40 = vpop.f32.mrb[14].mxu0  ;;  %v2381_v51 = vadd.f32 %v3196_v11, %v4799_v19  ;;  %v2372_v21 = vpop.f32.mrb[15].mxu1  ;;  %v2414_v52 = vmax.f32 %v2378_v33, 0.0 }
 0x269   : > { %v2317_v20 = vadd.f32 %v3180_v40, %v4799_v19  ;;  %v2308_v36 = vpop.f32.mrb[15].mxu0  ;;  %v2373_v46 = vadd.f32 %v4799_v19, %v2372_v21  ;;  %v2398_v26 = vmax.f32 %v2314_v24, 0.0  ;;  %v2412_v9 = vmax.f32 %v2370_v54, 0.0 }
 0x26a   : > { %v2415_v15 = vmax.f32 %v2381_v51, 0.0  ;;  %v2309_v45 = vadd.f32 %v4799_v19, %v2308_v36  ;;  %v2396_v42 = vmax.f32 %v2306_v53, 0.0 }
 0x26b   : > { %v2399_v39 = vmax.f32 %v2317_v20, 0.0  ;;  %v2413_v35 = vmax.f32 %v2373_v46, 0.0 }
 0x26c   : > { %v3123_v50 = vpack.c.bf16 %v2415_v15, %v2414_v52  ;;  %v2397_v12 = vmax.f32 %v2309_v45, 0.0 }
 0x26d   : > { %v3083_v59 = vpack.c.bf16 %v2399_v39, %v2398_v26  ;;  %v3118_v30 = vpack.c.bf16 %v2413_v35, %v2412_v9 }
 0x26e   : > { %3139 = vst [vmem:[%s4812_s5 + $0x78] sm:$0xff] %v3123_v50   ;;  %v3078_v19 = vpack.c.bf16 %v2397_v12, %v2396_v42 }
 0x26f   : > { %3131 = vst [vmem:[%s4812_s5 + $0x38] sm:$0xff] %v3083_v59   ;;  %3138 = vst [vmem:[%s4812_s5 + $0x70] sm:$0xff] %v3118_v30  }
 0x270   : > { %3130 = vst [vmem:[%s4812_s5 + $0x30] sm:$0xff] %v3078_v19  }
 0x271   : > { %3430 = shalt.err (!%p3427_p5)
}
 0x272   : > { %s3431_s26 = scalar_lea.hbm %s4855_s11, 2048  ;;  %s3435_s29 = scalar_lea.hbm %s4915_s3, 4096 }
 0x273   : > { %p3432_p6 = scmp.ne.s32.totalorder %s4855_s11, %s3431_s26  ;;  %p3436_p10 = scmp.lt.u32.totalorder %s4855_s11, %s4915_s3 }
 0x274   : > { %p3437_p11 = scmp.lt.u32.totalorder %s3435_s29, %s3431_s26  ;;  %p3439_p13 = scmp.lt.u32.totalorder %s3431_s26, %s4855_s11 }
 0x275   : > { %p3433_p7 = pnand %p3432_p6, %p3567_p4 }
 0x276   : > { %p3438_p12 = por %p3437_p11, %p3436_p10 }
 0x277   : > { %p3434_p9 = pneg %p3433_p7 }
 0x278   : > { %p3440_p0 = por %p3439_p13, %p3438_p12 }
 0x27a   : > { %p3441_p1 = pnand %p3440_p0, %p3434_p9 }
 0x27c   : > { %3444 = shalt.err (!%p3441_p1)
}
 0x27d   : > { %s3506_s5 = smov 64  }
 0x27e   : > { %3206 = dma.vmem_to_hbm [thread:$0]  (%p3567_p4), %s4858_s8, 2048, %s4855_s11, %s4865_s15, %s3506_s5, %s3506_s5, %s3499_s6  }
 0x27f PF: > { %p3212_p2 = scmp.ge.s32.totalorder %s3495_s17, 2  ;;  %s2608_s7 = sand.u32 1, %s3475_s12  }
 0x280   : > { %s2609_s9 = scalar_lea.sflag [#allocation3], %s2608_s7 }
 0x281   : > { %p3209_p3 = pnand %p3212_p2, %p3574_p8 }
 0x283   : > { %3470 = dma.done.wait (!%p3209_p3), %s2609_s9, 2048  }
 0x284   : > { %3472 = vsyncadd (!%p3209_p3), %s2609_s9, 4294965248  ;;  %s16_s17 = sadd.s32 1, %s3495_s17   ;;  %s4930_s12 = smov %s3479_s13 }
 0x285   : > { %p13_p5 = scmp.ge.s32.totalorder %s16_s17, 4   ;;  %s4931_s13 = smov %s3483_s14 }
 0x286   : > { %s4932_s14 = smov %s3580_s25  ;;  %s4933_s15 = smov %s3491_s16 }
 0x287   : > { %s4934_s16 = smov %s4936_s20  ;;  %15 = sbr.rel (!%p13_p5) target bundleno = 4 (0x4), region = 70 }
 0x28e   :  { %2614 = vsyncpa [#allocation3], 1 }
 0x28f   :  { %2616 = vsyncpa [#allocation3 + $0x1], 1 }

// kernel: tpu_custom_call.1
= control target key start
LH: loop header
LB: loop body
LE: loop exit
PB: predicated region body
PF: predicated region fallthrough
CT: control target
= control target key end

     0   :  { %8 = vsyncpa [#allocation3], 0  ;;  %s8649_s0 = inlined_call_operand.vmem [shape: bf16[2,18,18,4], index: 0, kind: input, shape index: {}]   ;;  %s8650_s1 = inlined_call_operand.vmem [shape: bf16[36,128], index: 1, kind: input, shape index: {}]   ;;  %s8651_s2 = inlined_call_operand.vmem [shape: f32[1,128], index: 2, kind: input, shape index: {}]   ;;  %s8652_s3 = inlined_call_operand.hbm [shape: bf16[2,16,16,128], index: 3, kind: output, shape index: {}]  }
   0x1   :  { %10 = vsyncpa [#allocation3 + $0x1], 0  ;;  %s6664_s12 = smov 0   ;;  %s6666_s13 = smov 0  }
   0x2   :  { %s6668_s14 = smov 0   ;;  %s6670_s15 = smov 0  }
   0x3   :  { %s6672_s16 = smov 0   ;;  %s6674_s17 = smov 0  }
   0x4 LB: > { %s4997_s18 = sadd.s32 4294967295, %s6639_s17   ;;  %s4998_s19 = sadd.s32 4294967294, %s6639_s17   ;;  %s6639_s17 = sphi %s6674_s17, %s16_s17   ;;  %s6635_s16 = sphi %s6672_s16, %s8723_s16   ;;  %s6631_s15 = sphi %s6670_s15, %s8722_s15   ;;  %s6627_s14 = sphi %s6668_s14, %s8721_s14   ;;  %s6623_s13 = sphi %s6666_s13, %s8720_s13   ;;  %s6619_s12 = sphi %s6664_s12, %s8719_s12  }
   0x5   : > { %s28_s20 = sadd.s32 1, %s6635_s16  ;;  %s105_s21 = sadd.s32 1, %s6627_s14 }
   0x6   : > { %p30_p0 = scmp.ge.s32.totalorder %s28_s20, 2  ;;  %p115_p1 = scmp.ne.s32.totalorder %s6627_s14, %s6623_s13 }
   0x7   : > { %p116_p2 = scmp.eq.s32.totalorder %s4997_s18, 1  ;;  %p121_p3 = scmp.ne.s32.totalorder %s6623_s13, %s6619_s12 }
   0x8   : > { %s8725_s20 = smov (%p30_p0, %s28_s20), 0  ;;  %p122_p5 = scmp.eq.s32.totalorder %s4998_s19, 1 }
   0x9   : > { %p6704_p4 = por %p116_p2, %p115_p1  ;;  %s100_s23 = ssub.s32 %s6635_s16, %s8725_s20 }
   0xa   : > { %p5001_p6 = scmp.ge.s32.totalorder %s6639_s17, 1  ;;  %p103_p7 = scmp.eq.s32.totalorder %s100_s23, 0 }
   0xb   : > { %p6711_p8 = por %p122_p5, %p121_p3  ;;  %p154_p9 = scmp.lt.s32.totalorder %s6639_s17, 3 }
   0xc   : > { %s6717_s25 = scalar_select %p103_p7, %s6627_s14, %s105_s21  }
   0xd   : > { %p155_p10 = pnand %p5001_p6, %p154_p9 }
   0xf   : > { %158 = sbr.rel (%p155_p10) target bundleno = 613 (0x265), region = 32 }
  0x16   : > { %v6423_v0 = vld [vmem:[%s8650_s1] ss:$0 sps:$4 sm:$0xcc]   ;;  %vm879_vm0 = vcmask 1041408   ;;  %v2489_v1 = vld [vmem:[%s8650_s1 + $0x8] sm:$0x3] }
  0x17   : > { %p178_p11 = scmp.lt.s32.totalorder %s6631_s15, 1  ;;  %v829_v2 = vrot.slane %v6423_v0, 2  ;;  %6359 = vmatprep.subr.msk.bf16.mxu0 %vm879_vm0, %v2489_v1  ;;  %v6728_v3 = vsel %vm879_vm0, %v2489_v1, 0  ;;  %v389_v4 = vld [vmem:[%s8650_s1] sm:$0x3]  ;;  %vm830_vm3 = vcmask 31744  }
  0x18   : > { %8662 = vst [vmem:[#allocation5_spill] sm:$0xff] %v6728_v3  ;;  %5928 = vmatpush3.bf16.msra.mxu0 %v6728_v3  ;;  %v6738_v5 = vld [vmem:[%s8650_s1 + $0x8] ss:$0 sps:$4 sm:$0xcc]   ;;  %vm390_vm1 = vsmask.f32 3328 }
  0x19   : > { %s179_s5 = scalar_select %p178_p11, %s6631_s15, 1  ;;  %6355 = vmatprep.subr.msk.bf16.mxu1 %vm879_vm0, %v829_v2  ;;  %v881_v6 = vsel %vm879_vm0, %v829_v2, 0  ;;  %v2978_v7 = vrot.slane %v6738_v5, 2  ;;  %vm391_vm2 = vsmask.f32 7440  ;;  %v6763_v19 = vsel %vm879_vm0, %v389_v4, 0 }
  0x1a   : > { %5792 = vmatpush3.bf16.msra.mxu1 %v881_v6  ;;  %v6768_v24 = vld [vmem:[%s8650_s1 + $0xc] sm:$0x3]  ;;  %vm6777_vm4 = vmor %vm390_vm1, %vm391_vm2  ;;  %vm1368_vm5 = vcmask 1042432   ;;  %vm1369_vm6 = vcmask 1046532   ;;  %s5542_s21 = sshll.u32 %s6631_s15, 11  ;;  %s6641_s30 = smov [#allocation2]  }
  0x1b   : > { %s6365_s8 = smul.u32 216, %s179_s5  ;;  %6356 = vmatprep.subr.msk.bf16.mxu1 %vm879_vm0, %v389_v4  ;;  %6361 = vmatprep.subr.msk.bf16.mxu0 %vm879_vm0, %v2978_v7  ;;  %v6783_v39 = vsel %vm879_vm0, %v6768_v24, 0  ;;  %v6804_v4 = vsel %vm879_vm0, %v2978_v7, 0  ;;  %vm7013_vm7 = vmor %vm1368_vm5, %vm1369_vm6  ;;  %s8595_s28 = scalar_lea.hbm %s8652_s3, %s5542_s21 }
  0x1c   : > { %s6565_s4 = sshll.u32 %s6641_s30, 4  ;;  %s6566_s4 = int_to_ptr.vmem [resolvable:$false] %s6565_s4 }
  0x1d   : > { %s6747_s11 = scalar_lea.vmem %s8649_s0, %s6365_s8  ;;  %s6567_s5 = scalar_lea.vmem %s6566_s4, 4096 }
  0x1e   : > { %v189_v8 = vld [vmem:[%s6747_s11] sm:$0xf]  ;;  %v190_v9 = vld [vmem:[%s6747_s11 + $0x4] sm:$0xf]  ;;  %v221_v10 = vld [vmem:[%s6747_s11 + $0x8] sm:$0x1] }
  0x1f   : > { %v394_v11 = vshrl.u32 %v189_v8, 16  ;;  %v397_v12 = vshll.u32 %v189_v8, 16  ;;  %v403_v13 = vshll.u32 %v190_v9, 16  ;;  %v407_v14 = vshrl.u32 %v190_v9, 16  ;;  %v5004_v15 = vld [vmem:[%s6747_s11 + $0xc] sm:$0xf] }
  0x20   : > { %v413_v16 = vshll.u32 %v221_v10, 16  ;;  %v6757_v17 = vld [vmem:[%s6747_s11 + $0x10] sm:$0xf]  ;;  %v6760_v18 = vld [vmem:[%s6747_s11 + $0x14] sm:$0x1]  ;;  %v2106_v26 = vshrl.u32 %v5004_v15, 16 }
  0x21   : > { %v396_v20 = vrot.slane %v394_v11, 4  ;;  %v399_v21 = vrot.slane %v397_v12, 5  ;;  %v405_v22 = vrot.slane %v403_v13, 5  ;;  %v409_v23 = vrot.slane %v407_v14, 4  ;;  %v191_v33 = vld [vmem:[%s6747_s11 + $0xc] sm:$0xf] }
  0x22   : > { %v415_v25 = vrot.slane %v413_v16, 5  ;;  %v2109_v27 = vshll.u32 %v5004_v15, 16  ;;  %v2115_v28 = vshll.u32 %v6757_v17, 16  ;;  %v2119_v31 = vshrl.u32 %v6757_v17, 16  ;;  %v192_v34 = vld [vmem:[%s6747_s11 + $0x10] sm:$0xf] }
  0x23   : > { %v400_v29 = vor.u32 %v399_v21, %v396_v20  ;;  %v410_v30 = vor.u32 %v409_v23, %v405_v22  ;;  %v2125_v32 = vshll.u32 %v6760_v18, 16  ;;  %v2108_v36 = vrot.slane %v2106_v26, 4  ;;  %v222_v45 = vld [vmem:[%s6747_s11 + $0x14] sm:$0x1]  ;;  %v5006_v57 = vld [vmem:[%s6747_s11 + $0x18] sm:$0xf] }
  0x24   : > { %v2111_v37 = vrot.slane %v2109_v27, 5  ;;  %v2117_v38 = vrot.slane %v2115_v28, 5  ;;  %v2121_v42 = vrot.slane %v2119_v31, 4  ;;  %v418_v46 = vshrl.u32 %v191_v33, 16  ;;  %v6792_v62 = vld [vmem:[%s6747_s11 + $0x1c] sm:$0xf] }
  0x25   : > { %v401_v40 = vrot.slane %v400_v29, 4  ;;  %v411_v41 = vrot.slane %v410_v30, 4  ;;  %v2127_v43 = vrot.slane %v2125_v32, 5  ;;  %v421_v47 = vshll.u32 %v191_v33, 16  ;;  %v6799_v2 = vld [vmem:[%s6747_s11 + $0x20] sm:$0x1] }
  0x26   : > { %v2112_v44 = vor.u32 %v2111_v37, %v2108_v36  ;;  %v427_v48 = vshll.u32 %v192_v34, 16  ;;  %v2122_v51 = vor.u32 %v2121_v42, %v2117_v38  ;;  %v431_v52 = vshrl.u32 %v192_v34, 16  ;;  %v193_v15 = vld [vmem:[%s6747_s11 + $0x18] sm:$0xf]  ;;  %v194_v21 = vld [vmem:[%s6747_s11 + $0x1c] sm:$0xf] }
  0x27   : > { %v406_v49 = vsel %vm6777_vm4, %v401_v40, %v405_v22  ;;  %v416_v50 = vsel %vm6777_vm4, %v411_v41, %v415_v25  ;;  %v420_v55 = vrot.slane %v418_v46, 4  ;;  %v423_v56 = vrot.slane %v421_v47, 5  ;;  %v223_v27 = vld [vmem:[%s6747_s11 + $0x20] sm:$0x1]  ;;  %v5008_v32 = vld [vmem:[%s6747_s11 + $0x24] sm:$0xf] }
  0x28   : > { %v5132_v53 = vcombine.low %v406_v49, %v416_v50  ;;  %v2113_v54 = vrot.slane %v2112_v44, 4  ;;  %v2123_v58 = vrot.slane %v2122_v51, 4  ;;  %v429_v59 = vrot.slane %v427_v48, 5  ;;  %v6827_v47 = vld [vmem:[%s6747_s11 + $0x28] sm:$0xf] }
  0x29   : > { %v433_v60 = vrot.slane %v431_v52, 4  ;;  %v437_v61 = vshll.u32 %v222_v45, 16  ;;  %v2819_v0 = vrot.slane %v6760_v18, 5  ;;  %v424_v1 = vor.u32 %v423_v56, %v420_v55  ;;  %v7565_v3 = vld [vmem:[%s6747_s11 + $0xac] sm:$0xf] }
  0x2a   : > { %5793 = vmatprep.mubr.msk.bf16.mxu1 %vm830_vm3, %v5132_v53  ;;  %v2118_v63 = vsel %vm6777_vm4, %v2113_v54, %v2117_v38  ;;  %v2128_v6 = vsel %vm6777_vm4, %v2123_v58, %v2127_v43  ;;  %v2130_v10 = vshrl.u32 %v5006_v57, 16  ;;  %v2133_v13 = vshll.u32 %v5006_v57, 16  ;;  %v1483_v43 = vld [vmem:[%s8650_s1 + $0x4] sm:$0x3]  ;;  %v6831_v53 = vld [vmem:[%s6747_s11 + $0x2c] sm:$0x1] }
  0x2b   : > { %v434_v8 = vor.u32 %v433_v60, %v429_v59  ;;  %v439_v9 = vrot.slane %v437_v61, 5  ;;  %v5278_v11 = vcombine.low %v2118_v63, %v2128_v6  ;;  %v425_v12 = vrot.slane %v424_v1, 4  ;;  %v195_v58 = vld [vmem:[%s6747_s11 + $0x24] sm:$0xf]  ;;  %8674 = vst [vmem:[#allocation13_spill] sm:$0xff] %v7565_v3 }
  0x2c   : > { %v2139_v14 = vshll.u32 %v6792_v62, 16  ;;  %v2132_v20 = vrot.slane %v2130_v10, 4  ;;  %v2143_v5 = vshrl.u32 %v6792_v62, 16  ;;  %v2149_v7 = vshll.u32 %v6799_v2, 16 }
  0x2d   : > { %v435_v16 = vrot.slane %v434_v8, 4  ;;  %5929 = vmatprep.mubr.msk.bf16.mxu0 %vm830_vm3, %v5278_v11  ;;  %v430_v22 = vsel %vm6777_vm4, %v425_v12, %v429_v59  ;;  %v2135_v23 = vrot.slane %v2133_v13, 5  ;;  %v2823_v26 = vrot.slane %v6792_v62, 5 }
  0x2e   : > { %v2141_v25 = vrot.slane %v2139_v14, 5  ;;  %v2145_v29 = vrot.slane %v2143_v5, 4  ;;  %v2151_v30 = vrot.slane %v2149_v7, 5  ;;  %v2826_v31 = vrot.slane %v6799_v2, 5  ;;  %v5010_v7 = vld [vmem:[%s6747_s11 + $0x30] sm:$0xf] }
  0x2f   : > { %v440_v28 = vsel %vm6777_vm4, %v435_v16, %v439_v9  ;;  %v2136_v34 = vor.u32 %v2135_v23, %v2132_v20  ;;  %v442_v36 = vshrl.u32 %v193_v15, 16  ;;  %v445_v37 = vshll.u32 %v193_v15, 16  ;;  %v196_v9 = vld [vmem:[%s6747_s11 + $0x28] sm:$0xf]  ;;  %v224_v20 = vld [vmem:[%s6747_s11 + $0x2c] sm:$0x1] }
  0x30   : > { %v5133_v33 = vcombine.low %v430_v22, %v440_v28  ;;  %v2146_v38 = vor.u32 %v2145_v29, %v2141_v25  ;;  %v451_v40 = vshll.u32 %v194_v21, 16  ;;  %v455_v41 = vshrl.u32 %v194_v21, 16 }
  0x31   : > { %v461_v42 = vshll.u32 %v223_v27, 16  ;;  %v2137_v44 = vrot.slane %v2136_v34, 4  ;;  %v444_v45 = vrot.slane %v442_v36, 4  ;;  %v447_v46 = vrot.slane %v445_v37, 5 }
  0x32   : > { %5794 = vmatmul.mubr.msk.bf16.vlgmr.msra.gmra.mrb[0].mxu1 %vm830_vm3, %v5133_v33  ;;  %v2154_v48 = vshrl.u32 %v5008_v32, 16  ;;  %v2147_v49 = vrot.slane %v2146_v38, 4  ;;  %v453_v50 = vrot.slane %v451_v40, 5  ;;  %v457_v51 = vrot.slane %v455_v41, 4  ;;  %v6860_v41 = vld [vmem:[%s6747_s11 + $0x38] sm:$0x1] }
  0x33   : > { %5826 = vmatpush3.bf16.msra.mxu1 %v6763_v19  ;;  %v463_v52 = vrot.slane %v461_v42, 5  ;;  %v2142_v54 = vsel %vm6777_vm4, %v2137_v44, %v2141_v25  ;;  %v448_v55 = vor.u32 %v447_v46, %v444_v45  ;;  %v2157_v57 = vshll.u32 %v5008_v32, 16  ;;  %v6852_v32 = vld [vmem:[%s6747_s11 + $0x34] sm:$0xf] }
  0x34   : > { %v2156_v56 = vrot.slane %v2154_v48, 4  ;;  %6357 = vmatprep.subr.msk.bf16.mxu1 %vm879_vm0, %v1483_v43  ;;  %v2152_v59 = vsel %vm6777_vm4, %v2147_v49, %v2151_v30  ;;  %v458_v19 = vor.u32 %v457_v51, %v453_v50  ;;  %v2163_v60 = vshll.u32 %v6827_v47, 16  ;;  %v6863_v43 = vld [vmem:[%s6747_s11 + $0x30] sm:$0xf] }
  0x35   : > { %v2167_v61 = vshrl.u32 %v6827_v47, 16  ;;  %v5279_v63 = vcombine.low %v2142_v54, %v2152_v59  ;;  %v449_v1 = vrot.slane %v448_v55, 4  ;;  %v2159_v6 = vrot.slane %v2157_v57, 5 }
  0x36   : > { %v2173_v8 = vshll.u32 %v6831_v53, 16  ;;  %v459_v10 = vrot.slane %v458_v19, 4  ;;  %v2165_v11 = vrot.slane %v2163_v60, 5  ;;  %v466_v13 = vshrl.u32 %v195_v58, 16  ;;  %v225_v60 = vld [vmem:[%s6747_s11 + $0x38] sm:$0x1] }
  0x37   : > { %v2169_v12 = vrot.slane %v2167_v61, 4  ;;  %5930 = vmatmul.mubr.msk.bf16.vlgmr.msra.gmra.mrb[0].mxu0 %vm830_vm3, %v5279_v63  ;;  %v454_v14 = vsel %vm6777_vm4, %v449_v1, %v453_v50  ;;  %v2160_v15 = vor.u32 %v2159_v6, %v2156_v56  ;;  %v469_v5 = vshll.u32 %v195_v58, 16 }
  0x38   : > { %v2175_v16 = vrot.slane %v2173_v8, 5  ;;  %5962 = vmatpush3.bf16.msra.mxu0 %v6804_v4  ;;  %v464_v21 = vsel %vm6777_vm4, %v459_v10, %v463_v52  ;;  %v468_v23 = vrot.slane %v466_v13, 4  ;;  %v475_v25 = vshll.u32 %v196_v9, 16  ;;  %v6869_v52 = vld [vmem:[%s6747_s11 + $0x34] sm:$0xf] }
  0x39   : > { %v2170_v22 = vor.u32 %v2169_v12, %v2165_v11  ;;  %v5134_v27 = vcombine.low %v454_v14, %v464_v21  ;;  %v2161_v28 = vrot.slane %v2160_v15, 4  ;;  %v471_v29 = vrot.slane %v469_v5, 5  ;;  %6362 = vmatprep.subr.msk.bf16.mxu0 %vm879_vm0, %v6768_v24  ;;  %v6885_v14 = vld [vmem:[%s6747_s11 + $0x40] sm:$0xf] }
  0x3a   : > { %v479_v30 = vshrl.u32 %v196_v9, 16  ;;  %v477_v34 = vrot.slane %v475_v25, 5  ;;  %v485_v4 = vshll.u32 %v224_v20, 16  ;;  %v2178_v36 = vshrl.u32 %v5010_v7, 16  ;;  %v5012_v9 = vld [vmem:[%s6747_s11 + $0x3c] sm:$0xf] }
  0x3b   : > { %v2171_v33 = vrot.slane %v2170_v22, 4  ;;  %5797 = vmatprep.mubr.msk.bf16.mxu1 %vm830_vm3, %v5134_v27  ;;  %v2166_v37 = vsel %vm6777_vm4, %v2161_v28, %v2165_v11  ;;  %v472_v38 = vor.u32 %v471_v29, %v468_v23  ;;  %v2181_v42 = vshll.u32 %v5010_v7, 16  ;;  %v6890_v23 = vld [vmem:[%s6747_s11 + $0x44] sm:$0x1] }
  0x3c   : > { %v481_v40 = vrot.slane %v479_v30, 4  ;;  %v487_v44 = vrot.slane %v485_v4, 5  ;;  %v2180_v45 = vrot.slane %v2178_v36, 4  ;;  %v2187_v46 = vshll.u32 %v6852_v32, 16 }
  0x3d   : > { %v2176_v24 = vsel %vm6777_vm4, %v2171_v33, %v2175_v16  ;;  %v473_v49 = vrot.slane %v472_v38, 4  ;;  %v2183_v51 = vrot.slane %v2181_v42, 5  ;;  %v2191_v55 = vshrl.u32 %v6852_v32, 16 }
  0x3e   : > { %v5280_v48 = vcombine.low %v2166_v37, %v2176_v24  ;;  %v482_v50 = vor.u32 %v481_v40, %v477_v34  ;;  %v2189_v54 = vrot.slane %v2187_v46, 5  ;;  %v2197_v56 = vshll.u32 %v6860_v41, 16  ;;  %v6896_v37 = vld [vmem:[%s6747_s11 + $0x3c] sm:$0xf] }
  0x3f   : > { %v490_v57 = vshrl.u32 %v6863_v43, 16  ;;  %v478_v58 = vsel %vm6777_vm4, %v473_v49, %v477_v34  ;;  %v2184_v19 = vor.u32 %v2183_v51, %v2180_v45  ;;  %v493_v61 = vshll.u32 %v6863_v43, 16 }
  0x40   : > { %5933 = vmatprep.mubr.msk.bf16.mxu0 %vm830_vm3, %v5280_v48  ;;  %v483_v59 = vrot.slane %v482_v50, 4  ;;  %v2193_v63 = vrot.slane %v2191_v55, 4  ;;  %v2199_v1 = vrot.slane %v2197_v56, 5  ;;  %v499_v8 = vshll.u32 %v6869_v52, 16 }
  0x41   : > { %v492_v6 = vrot.slane %v490_v57, 4  ;;  %v2185_v11 = vrot.slane %v2184_v19, 4  ;;  %v495_v12 = vrot.slane %v493_v61, 5  ;;  %v503_v13 = vshrl.u32 %v6869_v52, 16 }
  0x42   : > { %v488_v10 = vsel %vm6777_vm4, %v483_v59, %v487_v44  ;;  %v2194_v16 = vor.u32 %v2193_v63, %v2189_v54  ;;  %v501_v20 = vrot.slane %v499_v8, 5  ;;  %v509_v5 = vshll.u32 %v225_v60, 16  ;;  %v6902_v44 = vld [vmem:[%s6747_s11 + $0x40] sm:$0xf]  ;;  %v5014_v60 = vld [vmem:[%s6747_s11 + $0x48] sm:$0xf] }
  0x43   : > { %v5135_v15 = vcombine.low %v478_v58, %v488_v10  ;;  %v2190_v7 = vsel %vm6777_vm4, %v2185_v11, %v2189_v54  ;;  %v496_v21 = vor.u32 %v495_v12, %v492_v6  ;;  %v505_v22 = vrot.slane %v503_v13, 4  ;;  %v226_v54 = vld [vmem:[%s6747_s11 + $0x44] sm:$0x1]  ;;  %v6916_v8 = vld [vmem:[%s6747_s11 + $0x4c] sm:$0xf] }
  0x44   : > { %v2202_v25 = vshrl.u32 %v5012_v9, 16  ;;  %v2195_v27 = vrot.slane %v2194_v16, 4  ;;  %v511_v28 = vrot.slane %v509_v5, 5  ;;  %v2205_v29 = vshll.u32 %v5012_v9, 16  ;;  %v6922_v16 = vld [vmem:[%s6747_s11 + $0x50] sm:$0x1] }
  0x45   : > { %5798 = vmatmul.mubr.msk.bf16.gmra.mrb[4].mxu1 %vm830_vm3, %v5135_v15  ;;  %v2211_v30 = vshll.u32 %v6885_v14, 16  ;;  %v497_v33 = vrot.slane %v496_v21, 4  ;;  %v506_v34 = vor.u32 %v505_v22, %v501_v20  ;;  %v2215_v36 = vshrl.u32 %v6885_v14, 16 }
  0x46   : > { %v2204_v4 = vrot.slane %v2202_v25, 4  ;;  %v2200_v38 = vsel %vm6777_vm4, %v2195_v27, %v2199_v1  ;;  %v2207_v40 = vrot.slane %v2205_v29, 5  ;;  %v2221_v24 = vshll.u32 %v6890_v23, 16  ;;  %v6928_v27 = vld [vmem:[%s6747_s11 + $0x48] sm:$0xf] }
  0x47   : > { %v2213_v42 = vrot.slane %v2211_v30, 5  ;;  %v5281_v45 = vcombine.low %v2190_v7, %v2200_v38  ;;  %v502_v46 = vsel %vm6777_vm4, %v497_v33, %v501_v20  ;;  %v507_v48 = vrot.slane %v506_v34, 4  ;;  %v6931_v34 = vld [vmem:[%s6747_s11 + $0x4c] sm:$0xf] }
  0x48   : > { %v2217_v49 = vrot.slane %v2215_v36, 4  ;;  %v2208_v50 = vor.u32 %v2207_v40, %v2204_v4  ;;  %v2223_v51 = vrot.slane %v2221_v24, 5  ;;  %v514_v55 = vshrl.u32 %v6896_v37, 16 }
  0x49   : > { %v517_v56 = vshll.u32 %v6896_v37, 16  ;;  %5934 = vmatmul.mubr.msk.bf16.gmra.mrb[4].mxu0 %vm830_vm3, %v5281_v45  ;;  %v512_v57 = vsel %vm6777_vm4, %v507_v48, %v511_v28  ;;  %v523_v59 = vshll.u32 %v6902_v44, 16  ;;  %v527_v19 = vshrl.u32 %v6902_v44, 16  ;;  %v227_v45 = vld [vmem:[%s6747_s11 + $0x50] sm:$0x1] }
  0x4a   : > { %v2218_v58 = vor.u32 %v2217_v49, %v2213_v42  ;;  %v5136_v61 = vcombine.low %v502_v46, %v512_v57  ;;  %v2209_v63 = vrot.slane %v2208_v50, 4  ;;  %v516_v1 = vrot.slane %v514_v55, 4  ;;  %v5016_v55 = vld [vmem:[%s6747_s11 + $0x54] sm:$0xf] }
  0x4b   : > { %v519_v6 = vrot.slane %v517_v56, 5  ;;  %v525_v10 = vrot.slane %v523_v59, 5  ;;  %v529_v11 = vrot.slane %v527_v19, 4  ;;  %v533_v12 = vshll.u32 %v226_v54, 16  ;;  %v6946_v19 = vld [vmem:[%s6747_s11 + $0x58] sm:$0xf] }
  0x4c   : > { %v2219_v9 = vrot.slane %v2218_v58, 4  ;;  %5801 = vmatprep.mubr.msk.bf16.mxu1 %vm830_vm3, %v5136_v61  ;;  %v2214_v13 = vsel %vm6777_vm4, %v2209_v63, %v2213_v42  ;;  %v2226_v20 = vshrl.u32 %v5014_v60, 16  ;;  %v2229_v5 = vshll.u32 %v5014_v60, 16 }
  0x4d   : > { %v520_v15 = vor.u32 %v519_v6, %v516_v1  ;;  %v530_v21 = vor.u32 %v529_v11, %v525_v10  ;;  %v535_v22 = vrot.slane %v533_v12, 5  ;;  %v2235_v25 = vshll.u32 %v6916_v8, 16 }
  0x4e   : > { %v2224_v7 = vsel %vm6777_vm4, %v2219_v9, %v2223_v51  ;;  %v2228_v30 = vrot.slane %v2226_v20, 4  ;;  %v2231_v33 = vrot.slane %v2229_v5, 5  ;;  %v2239_v38 = vshrl.u32 %v6916_v8, 16 }
  0x4f   : > { %v5282_v28 = vcombine.low %v2214_v13, %v2224_v7  ;;  %v521_v29 = vrot.slane %v520_v15, 4  ;;  %v531_v4 = vrot.slane %v530_v21, 4  ;;  %v2237_v36 = vrot.slane %v2235_v25, 5 }
  0x50   : > { %v2245_v40 = vshll.u32 %v6922_v16, 16  ;;  %v2232_v24 = vor.u32 %v2231_v33, %v2228_v30  ;;  %v538_v46 = vshrl.u32 %v6928_v27, 16  ;;  %v541_v48 = vshll.u32 %v6928_v27, 16 }
  0x51   : > { %5937 = vmatprep.mubr.msk.bf16.mxu0 %vm830_vm3, %v5282_v28  ;;  %v526_v42 = vsel %vm6777_vm4, %v521_v29, %v525_v10  ;;  %v536_v49 = vsel %vm6777_vm4, %v531_v4, %v535_v22  ;;  %v2241_v50 = vrot.slane %v2239_v38, 4  ;;  %v547_v54 = vshll.u32 %v6931_v34, 16  ;;  %v6953_v10 = vld [vmem:[%s6747_s11 + $0x5c] sm:$0x1]  ;;  %v6958_v28 = vld [vmem:[%s6747_s11 + $0x54] sm:$0xf] }
  0x52   : > { %v2247_v51 = vrot.slane %v2245_v40, 5  ;;  %v5137_v56 = vcombine.low %v526_v42, %v536_v49  ;;  %v2233_v57 = vrot.slane %v2232_v24, 4  ;;  %v540_v58 = vrot.slane %v538_v46, 4 }
  0x53   : > { %v543_v59 = vrot.slane %v541_v48, 5  ;;  %v2242_v60 = vor.u32 %v2241_v50, %v2237_v36  ;;  %v549_v61 = vrot.slane %v547_v54, 5  ;;  %v551_v63 = vshrl.u32 %v6931_v34, 16 }
  0x54   : > { %v557_v1 = vshll.u32 %v227_v45, 16  ;;  %5802 = vmatmul.mubr.msk.bf16.gmra.mrb[8].mxu1 %vm830_vm3, %v5137_v56  ;;  %v2238_v6 = vsel %vm6777_vm4, %v2233_v57, %v2237_v36  ;;  %v2250_v11 = vshrl.u32 %v5016_v55, 16  ;;  %v2253_v12 = vshll.u32 %v5016_v55, 16  ;;  %v6964_v36 = vld [vmem:[%s6747_s11 + $0x58] sm:$0xf] }
  0x55   : > { %v544_v9 = vor.u32 %v543_v59, %v540_v58  ;;  %v2243_v13 = vrot.slane %v2242_v60, 4  ;;  %v553_v15 = vrot.slane %v551_v63, 4  ;;  %v2259_v5 = vshll.u32 %v6946_v19, 16  ;;  %v228_v45 = vld [vmem:[%s6747_s11 + $0x5c] sm:$0x1] }
  0x56   : > { %v559_v20 = vrot.slane %v557_v1, 5  ;;  %v2252_v21 = vrot.slane %v2250_v11, 4  ;;  %v2255_v22 = vrot.slane %v2253_v12, 5  ;;  %v2263_v25 = vshrl.u32 %v6946_v19, 16  ;;  %v5018_v57 = vld [vmem:[%s6747_s11 + $0x60] sm:$0xf] }
  0x57   : > { %v545_v7 = vrot.slane %v544_v9, 4  ;;  %v2248_v29 = vsel %vm6777_vm4, %v2243_v13, %v2247_v51  ;;  %v554_v30 = vor.u32 %v553_v15, %v549_v61  ;;  %v2261_v33 = vrot.slane %v2259_v5, 5  ;;  %v6978_v63 = vld [vmem:[%s6747_s11 + $0x64] sm:$0xf]  ;;  %v6983_v5 = vld [vmem:[%s6747_s11 + $0x68] sm:$0x1] }
  0x58   : > { %v2269_v4 = vshll.u32 %v6953_v10, 16  ;;  %v5283_v38 = vcombine.low %v2238_v6, %v2248_v29  ;;  %v2256_v42 = vor.u32 %v2255_v22, %v2252_v21  ;;  %v2265_v24 = vrot.slane %v2263_v25, 4  ;;  %v6991_v29 = vld [vmem:[%s6747_s11 + $0x60] sm:$0xf] }
  0x59   : > { %v550_v40 = vsel %vm6777_vm4, %v545_v7, %v549_v61  ;;  %v555_v46 = vrot.slane %v554_v30, 4  ;;  %v562_v49 = vshrl.u32 %v6958_v28, 16  ;;  %v565_v50 = vshll.u32 %v6958_v28, 16 }
  0x5a   : > { %v2271_v48 = vrot.slane %v2269_v4, 5  ;;  %5938 = vmatmul.mubr.msk.bf16.gmra.mrb[8].mxu0 %vm830_vm3, %v5283_v38  ;;  %v2257_v51 = vrot.slane %v2256_v42, 4  ;;  %v2266_v54 = vor.u32 %v2265_v24, %v2261_v33  ;;  %v571_v55 = vshll.u32 %v6964_v36, 16 }
  0x5b   : > { %v575_v56 = vshrl.u32 %v6964_v36, 16  ;;  %v560_v58 = vsel %vm6777_vm4, %v555_v46, %v559_v20  ;;  %v564_v59 = vrot.slane %v562_v49, 4  ;;  %v567_v60 = vrot.slane %v565_v50, 5 }
  0x5c   : > { %v581_v61 = vshll.u32 %v228_v45, 16  ;;  %v5138_v1 = vcombine.low %v550_v40, %v560_v58  ;;  %v2262_v6 = vsel %vm6777_vm4, %v2257_v51, %v2261_v33  ;;  %v2267_v9 = vrot.slane %v2266_v54, 4  ;;  %v6994_v40 = vld [vmem:[%s6747_s11 + $0x64] sm:$0xf] }
  0x5d   : > { %v573_v11 = vrot.slane %v571_v55, 5  ;;  %v568_v12 = vor.u32 %v567_v60, %v564_v59  ;;  %v577_v13 = vrot.slane %v575_v56, 4  ;;  %v2274_v7 = vshrl.u32 %v5018_v57, 16  ;;  %v5052_v59 = vld [vmem:[%s6747_s11 + $0xc] sm:$0xe] }
  0x5e   : > { %v583_v15 = vrot.slane %v581_v61, 5  ;;  %5805 = vmatprep.mubr.msk.bf16.mxu1 %vm830_vm3, %v5138_v1  ;;  %v2272_v20 = vsel %vm6777_vm4, %v2267_v9, %v2271_v48  ;;  %v2277_v21 = vshll.u32 %v5018_v57, 16  ;;  %v2283_v22 = vshll.u32 %v6978_v63, 16  ;;  %v229_v57 = vld [vmem:[%s6747_s11 + $0x68] sm:$0x1] }
  0x5f   : > { %v2287_v25 = vshrl.u32 %v6978_v63, 16  ;;  %v5284_v30 = vcombine.low %v2262_v6, %v2272_v20  ;;  %v569_v33 = vrot.slane %v568_v12, 4  ;;  %v578_v4 = vor.u32 %v577_v13, %v573_v11  ;;  %v7009_v9 = vld [vmem:[%s6747_s11 + $0x6c] sm:$0xf] }
  0x60   : > { %v2276_v38 = vrot.slane %v2274_v7, 4  ;;  %v2279_v42 = vrot.slane %v2277_v21, 5  ;;  %v2285_v24 = vrot.slane %v2283_v22, 5  ;;  %v2293_v46 = vshll.u32 %v6983_v5, 16 }
  0x61   : > { %v2289_v45 = vrot.slane %v2287_v25, 4  ;;  %5941 = vmatprep.mubr.msk.bf16.mxu0 %vm830_vm3, %v5284_v30  ;;  %v574_v48 = vsel %vm6777_vm4, %v569_v33, %v573_v11  ;;  %v579_v49 = vrot.slane %v578_v4, 4  ;;  %v586_v50 = vshrl.u32 %v6991_v29, 16 }
  0x62   : > { %v589_v51 = vshll.u32 %v6991_v29, 16  ;;  %v2280_v54 = vor.u32 %v2279_v42, %v2276_v38  ;;  %v2295_v56 = vrot.slane %v2293_v46, 5  ;;  %v595_v58 = vshll.u32 %v6994_v40, 16  ;;  %v7024_v38 = vld [vmem:[%s6747_s11 + $0x70] sm:$0xf] }
  0x63   : > { %v2290_v55 = vor.u32 %v2289_v45, %v2285_v24  ;;  %v584_v60 = vsel %vm6777_vm4, %v579_v49, %v583_v15  ;;  %v588_v61 = vrot.slane %v586_v50, 4  ;;  %v599_v6 = vshrl.u32 %v6994_v40, 16  ;;  %v230_v50 = vld [vmem:[%s6747_s11 + $0x74] sm:$0x1] }
  0x64   : > { %v591_v1 = vrot.slane %v589_v51, 5  ;;  %v5139_v11 = vcombine.low %v574_v48, %v584_v60  ;;  %v2281_v12 = vrot.slane %v2280_v54, 4  ;;  %v597_v7 = vrot.slane %v595_v58, 5  ;;  %v5053_v51 = vld [vmem:[%s6747_s11 + $0x18] sm:$0xe] }
  0x65   : > { %v2291_v13 = vrot.slane %v2290_v55, 4  ;;  %v601_v21 = vrot.slane %v599_v6, 4  ;;  %v605_v22 = vshll.u32 %v229_v57, 16  ;;  %v5310_v25 = vrot.slane %v5052_v59, 9 }
  0x66   : > { %v592_v20 = vor.u32 %v591_v1, %v588_v61  ;;  %5806 = vmatmul.mubr.msk.bf16.gmra.mrb[12].mxu1 %vm830_vm3, %v5139_v11  ;;  %v2286_v30 = vsel %vm6777_vm4, %v2281_v12, %v2285_v24  ;;  %v2816_v4 = vrot.slane %v6757_v17, 5  ;;  %v610_v42 = vshrl.u32 %v7009_v9, 16  ;;  %v7042_v11 = vld [vmem:[%s6747_s11 + $0x78] sm:$0xf] }
  0x67   : > { %v2296_v33 = vsel %vm6777_vm4, %v2291_v13, %v2295_v56  ;;  %v602_v48 = vor.u32 %v601_v21, %v597_v7  ;;  %v607_v49 = vrot.slane %v605_v22, 5  ;;  %v613_v56 = vshll.u32 %v7009_v9, 16  ;;  %v7047_v21 = vld [vmem:[%s6747_s11 + $0x7c] sm:$0xf]  ;;  %v231_v22 = vld [vmem:[%s6747_s11 + $0x80] sm:$0x1] }
  0x68   : > { %v5285_v45 = vcombine.low %v2286_v30, %v2296_v33  ;;  %v593_v46 = vrot.slane %v592_v20, 4  ;;  %v2817_v54 = vsel %vm7013_vm7, %v5310_v25, %v2816_v4  ;;  %v2818_v24 = vrot.slane %v2816_v4, 4 }
  0x69   : > { %v612_v55 = vrot.slane %v610_v42, 4  ;;  %v603_v57 = vrot.slane %v602_v48, 4  ;;  %v619_v58 = vshll.u32 %v7024_v38, 16  ;;  %v623_v59 = vshrl.u32 %v7024_v38, 16 }
  0x6a   : > { %5942 = vmatmul.mubr.msk.bf16.gmra.mrb[12].mxu0 %vm830_vm3, %v5285_v45  ;;  %v598_v17 = vsel %vm6777_vm4, %v593_v46, %v597_v7  ;;  %v2820_v60 = vsel %vm7013_vm7, %v2818_v24, %v2819_v0  ;;  %v615_v61 = vrot.slane %v613_v56, 5  ;;  %v629_v1 = vshll.u32 %v230_v50, 16 }
  0x6b   : > { %v5311_v6 = vrot.slane %v5053_v51, 9  ;;  %v608_v12 = vsel %vm6777_vm4, %v603_v57, %v607_v49  ;;  %v5326_v13 = vcombine.low %v2817_v54, %v2820_v60  ;;  %v621_v7 = vrot.slane %v619_v58, 5  ;;  %v5054_v51 = vld [vmem:[%s6747_s11 + $0x24] sm:$0xe] }
  0x6c   : > { %v625_v20 = vrot.slane %v623_v59, 4  ;;  %v5140_v25 = vcombine.low %v598_v17, %v608_v12  ;;  %v616_v18 = vor.u32 %v615_v61, %v612_v55  ;;  %v631_v30 = vrot.slane %v629_v1, 5  ;;  %v7070_v58 = vld [vmem:[%s6747_s11 + $0x84] sm:$0xf]  ;;  %v7073_v59 = vld [vmem:[%s6747_s11 + $0x88] sm:$0xf] }
  0x6d   : > { %v2824_v0 = vsel %vm7013_vm7, %v5311_v6, %v2823_v26  ;;  %5963 = vmatprep.mubr.msk.bf16.mxu0 %vm830_vm3, %v5326_v13  ;;  %v2825_v4 = vrot.slane %v2823_v26, 4  ;;  %v634_v42 = vshrl.u32 %v7042_v11, 16  ;;  %v637_v45 = vshll.u32 %v7042_v11, 16 }
  0x6e   : > { %v626_v33 = vor.u32 %v625_v20, %v621_v7  ;;  %5809 = vmatprep.mubr.msk.bf16.mxu1 %vm830_vm3, %v5140_v25  ;;  %v617_v46 = vrot.slane %v616_v18, 4  ;;  %v643_v48 = vshll.u32 %v7047_v21, 16  ;;  %v647_v49 = vshrl.u32 %v7047_v21, 16  ;;  %v232_v20 = vld [vmem:[%s6747_s11 + $0x8c] sm:$0x1] }
  0x6f   : > { %v653_v50 = vshll.u32 %v231_v22, 16  ;;  %v2827_v62 = vsel %vm7013_vm7, %v2825_v4, %v2826_v31  ;;  %v636_v26 = vrot.slane %v634_v42, 4  ;;  %v639_v24 = vrot.slane %v637_v45, 5 }
  0x70   : > { %v627_v54 = vrot.slane %v626_v33, 4  ;;  %v622_v55 = vsel %vm6777_vm4, %v617_v46, %v621_v7  ;;  %v5327_v56 = vcombine.low %v2824_v0, %v2827_v62  ;;  %v645_v17 = vrot.slane %v643_v48, 5 }
  0x71   : > { %v649_v57 = vrot.slane %v647_v49, 4  ;;  %v640_v2 = vor.u32 %v639_v24, %v636_v26  ;;  %v655_v61 = vrot.slane %v653_v50, 5  ;;  %v5312_v1 = vrot.slane %v5054_v51, 9  ;;  %v7097_v51 = vld [vmem:[%s6747_s11 + $0x90] sm:$0xf] }
  0x72   : > { %v632_v60 = vsel %vm6777_vm4, %v627_v54, %v631_v30  ;;  %5964 = vmatmul.mubr.msk.bf16.vlgmr.msra.gmra.mrb[0].mxu0 %vm830_vm3, %v5327_v56  ;;  %v2830_v12 = vrot.slane %v6827_v47, 5  ;;  %v2833_v13 = vrot.slane %v6831_v53, 5  ;;  %v658_v22 = vshrl.u32 %v7070_v58, 16  ;;  %v7100_v54 = vld [vmem:[%s6747_s11 + $0x94] sm:$0xf] }
  0x73   : > { %v5141_v31 = vcombine.low %v622_v55, %v632_v60  ;;  %v650_v6 = vor.u32 %v649_v57, %v645_v17  ;;  %5996 = vmatpush3.bf16.msra.mxu0 %v6783_v39  ;;  %v641_v7 = vrot.slane %v640_v2, 4  ;;  %v661_v25 = vshll.u32 %v7070_v58, 16  ;;  %v5055_v39 = vld [vmem:[%s6747_s11 + $0x30] sm:$0xe] }
  0x74   : > { %v667_v18 = vshll.u32 %v7073_v59, 16  ;;  %v2831_v47 = vsel %vm7013_vm7, %v5312_v1, %v2830_v12  ;;  %v2832_v0 = vrot.slane %v2830_v12, 4  ;;  %v671_v53 = vshrl.u32 %v7073_v59, 16 }
  0x75   : > { %5810 = vmatmul.mubr.msk.bf16.gmra.mrb[16].mxu1 %vm830_vm3, %v5141_v31  ;;  %v651_v30 = vrot.slane %v650_v6, 4  ;;  %v646_v33 = vsel %vm6777_vm4, %v641_v7, %v645_v17  ;;  %v660_v4 = vrot.slane %v658_v22, 4  ;;  %v663_v42 = vrot.slane %v661_v25, 5  ;;  %v5056_v7 = vld [vmem:[%s6747_s11 + $0x3c] sm:$0xe] }
  0x76   : > { %v669_v45 = vrot.slane %v667_v18, 5  ;;  %v2834_v48 = vsel %vm7013_vm7, %v2832_v0, %v2833_v13  ;;  %v673_v49 = vrot.slane %v671_v53, 4  ;;  %v677_v50 = vshll.u32 %v232_v20, 16 }
  0x77   : > { %v656_v46 = vsel %vm6777_vm4, %v651_v30, %v655_v61  ;;  %v5328_v26 = vcombine.low %v2831_v47, %v2834_v48  ;;  %v664_v24 = vor.u32 %v663_v42, %v660_v4  ;;  %v5313_v55 = vrot.slane %v5055_v39, 9  ;;  %v233_v61 = vld [vmem:[%s6747_s11 + $0x98] sm:$0x1]  ;;  %v7121_v39 = vld [vmem:[%s6747_s11 + $0x9c] sm:$0xf] }
  0x78   : > { %v5142_v62 = vcombine.low %v646_v33, %v656_v46  ;;  %v674_v56 = vor.u32 %v673_v49, %v669_v45  ;;  %v679_v17 = vrot.slane %v677_v50, 5  ;;  %v2837_v57 = vrot.slane %v6852_v32, 5  ;;  %v7124_v33 = vld [vmem:[%s6747_s11 + $0xa0] sm:$0xf] }
  0x79   : > { %v2840_v60 = vrot.slane %v6860_v41, 5  ;;  %5967 = vmatprep.mubr.msk.bf16.mxu0 %vm830_vm3, %v5328_v26  ;;  %v665_v2 = vrot.slane %v664_v24, 4  ;;  %v682_v1 = vshrl.u32 %v7097_v51, 16  ;;  %v685_v31 = vshll.u32 %v7097_v51, 16  ;;  %v234_v24 = vld [vmem:[%s6747_s11 + $0xa4] sm:$0x1] }
  0x7a   : > { %5813 = vmatprep.mubr.msk.bf16.mxu1 %vm830_vm3, %v5142_v62  ;;  %v691_v6 = vshll.u32 %v7100_v54, 16  ;;  %v675_v12 = vrot.slane %v674_v56, 4  ;;  %v2838_v32 = vsel %vm7013_vm7, %v5313_v55, %v2837_v57  ;;  %v2839_v13 = vrot.slane %v2837_v57, 4 }
  0x7b   : > { %v695_v41 = vshrl.u32 %v7100_v54, 16  ;;  %v670_v20 = vsel %vm6777_vm4, %v665_v2, %v669_v45  ;;  %v684_v22 = vrot.slane %v682_v1, 4  ;;  %v687_v25 = vrot.slane %v685_v31, 5  ;;  %v5057_v2 = vld [vmem:[%s6747_s11 + $0x48] sm:$0xe] }
  0x7c   : > { %v693_v18 = vrot.slane %v691_v6, 5  ;;  %v680_v30 = vsel %vm6777_vm4, %v675_v12, %v679_v17  ;;  %v2841_v47 = vsel %vm7013_vm7, %v2839_v13, %v2840_v60  ;;  %v701_v53 = vshll.u32 %v233_v61, 16 }
  0x7d   : > { %v697_v0 = vrot.slane %v695_v41, 4  ;;  %v5143_v4 = vcombine.low %v670_v20, %v680_v30  ;;  %v5329_v42 = vcombine.low %v2838_v32, %v2841_v47  ;;  %v688_v46 = vor.u32 %v687_v25, %v684_v22  ;;  %v7148_v20 = vld [vmem:[%s6747_s11 + $0xac] sm:$0xf] }
  0x7e   : > { %v5314_v45 = vrot.slane %v5056_v7, 9  ;;  %v703_v49 = vrot.slane %v701_v53, 5  ;;  %v2844_v50 = vrot.slane %v6885_v14, 5  ;;  %v2847_v62 = vrot.slane %v6890_v23, 5  ;;  %v7145_v7 = vld [vmem:[%s6747_s11 + $0xa8] sm:$0xf] }
  0x7f   : > { %v698_v48 = vor.u32 %v697_v0, %v693_v18  ;;  %5814 = vmatmul.mubr.msk.bf16.gmra.mrb[20].mxu1 %vm830_vm3, %v5143_v4  ;;  %5968 = vmatmul.mubr.msk.bf16.gmra.mrb[4].mxu0 %vm830_vm3, %v5329_v42  ;;  %v689_v26 = vrot.slane %v688_v46, 4  ;;  %v706_v55 = vshrl.u32 %v7121_v39, 16  ;;  %v709_v56 = vshll.u32 %v7121_v39, 16  ;;  %v235_v46 = vld [vmem:[%s6747_s11 + $0xb0] sm:$0x1] }
  0x80   : > { %v715_v17 = vshll.u32 %v7124_v33, 16  ;;  %v2845_v14 = vsel %vm7013_vm7, %v5314_v45, %v2844_v50  ;;  %v2846_v60 = vrot.slane %v2844_v50, 4  ;;  %v719_v23 = vshrl.u32 %v7124_v33, 16 }
  0x81   : > { %v699_v57 = vrot.slane %v698_v48, 4  ;;  %v694_v61 = vsel %vm6777_vm4, %v689_v26, %v693_v18  ;;  %v708_v1 = vrot.slane %v706_v55, 4  ;;  %v711_v31 = vrot.slane %v709_v56, 5  ;;  %v5058_v26 = vld [vmem:[%s6747_s11 + $0x54] sm:$0xe] }
  0x82   : > { %v717_v6 = vrot.slane %v715_v17, 5  ;;  %v2848_v32 = vsel %vm7013_vm7, %v2846_v60, %v2847_v62  ;;  %v721_v13 = vrot.slane %v719_v23, 4  ;;  %v725_v41 = vshll.u32 %v234_v24, 16 }
  0x83   : > { %v704_v12 = vsel %vm6777_vm4, %v699_v57, %v703_v49  ;;  %v5330_v25 = vcombine.low %v2845_v14, %v2848_v32  ;;  %v712_v30 = vor.u32 %v711_v31, %v708_v1  ;;  %v5315_v18 = vrot.slane %v5057_v2, 9  ;;  %v7169_v2 = vld [vmem:[%s6747_s11 + $0xb4] sm:$0xf] }
  0x84   : > { %v5144_v22 = vcombine.low %v694_v61, %v704_v12  ;;  %v722_v47 = vor.u32 %v721_v13, %v717_v6  ;;  %v727_v0 = vrot.slane %v725_v41, 5  ;;  %v2851_v53 = vrot.slane %v6916_v8, 5  ;;  %v7172_v61 = vld [vmem:[%s6747_s11 + $0xb8] sm:$0xf] }
  0x85   : > { %v2854_v4 = vrot.slane %v6922_v16, 5  ;;  %5971 = vmatprep.mubr.msk.bf16.mxu0 %vm830_vm3, %v5330_v25  ;;  %v713_v42 = vrot.slane %v712_v30, 4  ;;  %v730_v45 = vshrl.u32 %v7145_v7, 16  ;;  %v733_v48 = vshll.u32 %v7145_v7, 16  ;;  %v236_v30 = vld [vmem:[%s6747_s11 + $0xbc] sm:$0x1] }
  0x86   : > { %5817 = vmatprep.mubr.msk.bf16.mxu1 %vm830_vm3, %v5144_v22  ;;  %v739_v49 = vshll.u32 %v7148_v20, 16  ;;  %v723_v50 = vrot.slane %v722_v47, 4  ;;  %v2852_v8 = vsel %vm7013_vm7, %v5315_v18, %v2851_v53  ;;  %v2853_v62 = vrot.slane %v2851_v53, 4 }
  0x87   : > { %v743_v16 = vshrl.u32 %v7148_v20, 16  ;;  %v718_v24 = vsel %vm6777_vm4, %v713_v42, %v717_v6  ;;  %v732_v55 = vrot.slane %v730_v45, 4  ;;  %v735_v56 = vrot.slane %v733_v48, 5  ;;  %v5059_v42 = vld [vmem:[%s6747_s11 + $0x60] sm:$0xe] }
  0x88   : > { %v741_v17 = vrot.slane %v739_v49, 5  ;;  %v728_v57 = vsel %vm6777_vm4, %v723_v50, %v727_v0  ;;  %v2855_v14 = vsel %vm7013_vm7, %v2853_v62, %v2854_v4  ;;  %v749_v23 = vshll.u32 %v235_v46, 16  ;;  %v5021_v50 = vld [vmem:[%s6747_s11 + $0x70] sm:$0xf] }
  0x89   : > { %v745_v60 = vrot.slane %v743_v16, 4  ;;  %v5145_v1 = vcombine.low %v718_v24, %v728_v57  ;;  %v5331_v31 = vcombine.low %v2852_v8, %v2855_v14  ;;  %v736_v12 = vor.u32 %v735_v56, %v732_v55  ;;  %v5044_v24 = vld [vmem:[%s6747_s11 + $0x74] sm:$0x1]  ;;  %v5060_v55 = vld [vmem:[%s6747_s11 + $0x6c] sm:$0xe] }
  0x8a   : > { %v5316_v6 = vrot.slane %v5058_v26, 9  ;;  %v751_v13 = vrot.slane %v749_v23, 5  ;;  %v2858_v41 = vrot.slane %v6946_v19, 5  ;;  %v2861_v22 = vrot.slane %v6953_v10, 5 }
  0x8b   : > { %v746_v32 = vor.u32 %v745_v60, %v741_v17  ;;  %5818 = vmatmul.mubr.msk.bf16.gmra.mrb[24].mxu1 %vm830_vm3, %v5145_v1  ;;  %5972 = vmatmul.mubr.msk.bf16.gmra.mrb[8].mxu0 %vm830_vm3, %v5331_v31  ;;  %v737_v25 = vrot.slane %v736_v12, 4  ;;  %v754_v18 = vshrl.u32 %v7169_v2, 16  ;;  %v757_v47 = vshll.u32 %v7169_v2, 16 }
  0x8c   : > { %v763_v0 = vshll.u32 %v7172_v61, 16  ;;  %v2859_v19 = vsel %vm7013_vm7, %v5316_v6, %v2858_v41  ;;  %v2860_v10 = vrot.slane %v2858_v41, 4  ;;  %v767_v4 = vshrl.u32 %v7172_v61, 16 }
  0x8d   : > { %v747_v53 = vrot.slane %v746_v32, 4  ;;  %v742_v46 = vsel %vm6777_vm4, %v737_v25, %v741_v17  ;;  %v756_v45 = vrot.slane %v754_v18, 4  ;;  %v759_v48 = vrot.slane %v757_v47, 5  ;;  %v5061_v18 = vld [vmem:[%s6747_s11 + $0x78] sm:$0xe] }
  0x8e   : > { %v765_v49 = vrot.slane %v763_v0, 5  ;;  %v2862_v62 = vsel %vm7013_vm7, %v2860_v10, %v2861_v22  ;;  %v769_v16 = vrot.slane %v767_v4, 4  ;;  %v773_v26 = vshll.u32 %v236_v30, 16  ;;  %v5023_v4 = vld [vmem:[%s6747_s11 + $0x7c] sm:$0xf] }
  0x8f   : > { %v752_v8 = vsel %vm6777_vm4, %v747_v53, %v751_v13  ;;  %v5332_v57 = vcombine.low %v2859_v19, %v2862_v62  ;;  %v760_v14 = vor.u32 %v759_v48, %v756_v45  ;;  %v5317_v60 = vrot.slane %v5059_v42, 9  ;;  %v6475_v53 = vld [vmem:[%s6747_s11] sm:$0xf]  ;;  %v7212_v19 = vld [vmem:[%s6747_s11 + $0x4] sm:$0xf] }
  0x90   : > { %v5146_v56 = vcombine.low %v742_v46, %v752_v8  ;;  %v770_v23 = vor.u32 %v769_v16, %v765_v49  ;;  %v775_v17 = vrot.slane %v773_v26, 5  ;;  %v2865_v1 = vrot.slane %v6978_v63, 5  ;;  %v5045_v42 = vld [vmem:[%s6747_s11 + $0x80] sm:$0x1]  ;;  %v5062_v8 = vld [vmem:[%s6747_s11 + $0x84] sm:$0xe] }
  0x91   : > { %v2868_v31 = vrot.slane %v6983_v5, 5  ;;  %5975 = vmatprep.mubr.msk.bf16.mxu0 %vm830_vm3, %v5332_v57  ;;  %v761_v12 = vrot.slane %v760_v14, 4  ;;  %v5318_v6 = vrot.slane %v5060_v55, 9  ;;  %v2872_v32 = vrot.slane %v5021_v50, 5  ;;  %v5046_v50 = vld [vmem:[%s6747_s11 + $0x8c] sm:$0x1] }
  0x92   : > { %5821 = vmatprep.mubr.msk.bf16.mxu1 %vm830_vm3, %v5146_v56  ;;  %v2875_v13 = vrot.slane %v5044_v24, 5  ;;  %v771_v41 = vrot.slane %v770_v23, 4  ;;  %v2866_v22 = vsel %vm7013_vm7, %v5317_v60, %v2865_v1  ;;  %v2867_v63 = vrot.slane %v2865_v1, 4  ;;  %v5027_v26 = vld [vmem:[%s6747_s11 + $0x94] sm:$0xf] }
  0x93   : > { %v766_v5 = vsel %vm6777_vm4, %v761_v12, %v765_v49  ;;  %v2873_v25 = vsel %vm7013_vm7, %v5318_v6, %v2872_v32  ;;  %v2874_v30 = vrot.slane %v2872_v32, 4  ;;  %v5165_v10 = vcombine.low %v6475_v53, %v7212_v19  ;;  %v5025_v49 = vld [vmem:[%s6747_s11 + $0x88] sm:$0xf]  ;;  %v5047_v56 = vld [vmem:[%s6747_s11 + $0x98] sm:$0x1] }
  0x94   : > { %v776_v47 = vsel %vm6777_vm4, %v771_v41, %v775_v17  ;;  %v2869_v0 = vsel %vm7013_vm7, %v2867_v63, %v2868_v31  ;;  %v5319_v16 = vrot.slane %v5061_v18, 9  ;;  %v2879_v24 = vrot.slane %v5023_v4, 5  ;;  %v5063_v23 = vld [vmem:[%s6747_s11 + $0x90] sm:$0xe]  ;;  %v5029_v12 = vld [vmem:[%s6747_s11 + $0xa0] sm:$0xf] }
  0x95   : > { %v5147_v46 = vcombine.low %v766_v5, %v776_v47  ;;  %v5333_v45 = vcombine.low %v2866_v22, %v2869_v0  ;;  %v2876_v48 = vsel %vm7013_vm7, %v2874_v30, %v2875_v13  ;;  %v2882_v55 = vrot.slane %v5045_v42, 5  ;;  %v6477_v6 = vld [vmem:[%s6747_s11 + $0xc] sm:$0xf]  ;;  %v7234_v32 = vld [vmem:[%s6747_s11 + $0x10] sm:$0xf] }
  0x96   : > { %v5334_v62 = vcombine.low %v2873_v25, %v2876_v48  ;;  %v5320_v57 = vrot.slane %v5062_v8, 9  ;;  %v2886_v14 = vrot.slane %v5025_v49, 5  ;;  %v2889_v60 = vrot.slane %v5046_v50, 5  ;;  %v5048_v63 = vld [vmem:[%s6747_s11 + $0xa4] sm:$0x1] }
  0x97   : > { %5822 = vmatmul.mubr.msk.bf16.gmra.mrb[28].mxu1 %vm830_vm3, %v5147_v46  ;;  %5976 = vmatmul.mubr.msk.bf16.gmra.mrb[12].mxu0 %vm830_vm3, %v5333_v45  ;;  %v2880_v17 = vsel %vm7013_vm7, %v5319_v16, %v2879_v24  ;;  %v2881_v1 = vrot.slane %v2879_v24, 4  ;;  %v2893_v31 = vrot.slane %v5027_v26, 5  ;;  %v5166_v13 = vcombine.low %v6477_v6, %v7234_v32  ;;  %v5064_v5 = vld [vmem:[%s6747_s11 + $0x9c] sm:$0xe]  ;;  %v6479_v30 = vld [vmem:[%s6747_s11 + $0x18] sm:$0xf] }
  0x98   : > { %5827 = vmatprep.mubr.msk.bf16.mxu1 %vm830_vm3, %v5165_v10  ;;  %5979 = vmatprep.mubr.msk.bf16.mxu0 %vm830_vm3, %v5334_v62  ;;  %v2887_v41 = vsel %vm7013_vm7, %v5320_v57, %v2886_v14  ;;  %v2888_v22 = vrot.slane %v2886_v14, 4  ;;  %v7245_v18 = vld [vmem:[%s6747_s11 + $0x1c] sm:$0xf]  ;;  %v5321_v0 = vrot.slane %v5063_v23, 9  ;;  %v2896_v53 = vrot.slane %v5047_v56, 5 }
  0x99   : > { %v2883_v25 = vsel %vm7013_vm7, %v2881_v1, %v2882_v55  ;;  %v5167_v47 = vcombine.low %v6479_v30, %v7245_v18  ;;  %v2895_v42 = vrot.slane %v2893_v31, 4  ;;  %v2900_v46 = vrot.slane %v5029_v12, 5  ;;  %v6481_v45 = vld [vmem:[%s8650_s1 + $0x4] sm:$0x3]  ;;  %v5031_v62 = vld [vmem:[%s6747_s11 + $0xac] sm:$0xf] }
  0x9a   : > { %v5335_v10 = vcombine.low %v2880_v17, %v2883_v25  ;;  %v2890_v4 = vsel %vm7013_vm7, %v2888_v22, %v2889_v60  ;;  %v1581_v48 = vsel %vm879_vm0, %v6481_v45, 0  ;;  %v5322_v50 = vrot.slane %v5064_v5, 9  ;;  %v5033_v26 = vld [vmem:[%s6747_s11 + $0xb8] sm:$0xf]  ;;  %v5049_v56 = vld [vmem:[%s6747_s11 + $0xb0] sm:$0x1] }
  0x9b   : > { %v5336_v49 = vcombine.low %v2887_v41, %v2890_v4  ;;  %v2903_v8 = vrot.slane %v5048_v63, 5  ;;  %v2902_v16 = vrot.slane %v2900_v46, 4  ;;  %v2894_v24 = vsel %vm7013_vm7, %v5321_v0, %v2893_v31  ;;  %v5065_v23 = vld [vmem:[%s6747_s11 + $0xa8] sm:$0xe]  ;;  %v5050_v31 = vld [vmem:[%s6747_s11 + $0xbc] sm:$0x1] }
  0x9c   : > { %v2897_v55 = vsel %vm7013_vm7, %v2895_v42, %v2896_v53  ;;  %v2907_v57 = vrot.slane %v5031_v62, 5  ;;  %v2901_v14 = vsel %vm7013_vm7, %v5322_v50, %v2900_v46  ;;  %v2914_v17 = vrot.slane %v5033_v26, 5  ;;  %v7273_v1 = vld [vmem:[%s8650_s1 + $0xc] ss:$0 sps:$4 sm:$0xcc]  }
  0x9d   : > { %v2904_v60 = vsel %vm7013_vm7, %v2902_v16, %v2903_v8  ;;  %v5066_v12 = vld [vmem:[%s6747_s11 + $0xb4] sm:$0xe]  ;;  %v6482_v6 = vld [vmem:[%s6747_s11 + $0x24] sm:$0xf]  ;;  %v5337_v22 = vcombine.low %v2894_v24, %v2897_v55  ;;  %v5169_v63 = vcombine.low %v6863_v43, %v6869_v52  ;;  %v5323_v25 = vrot.slane %v5065_v23, 9 }
  0x9e   : > { %v5338_v5 = vcombine.low %v2901_v14, %v2904_v60  ;;  %v2909_v30 = vrot.slane %v2907_v57, 4  ;;  %v5324_v0 = vrot.slane %v5066_v12, 9  ;;  %v2916_v53 = vrot.slane %v2914_v17, 4  ;;  %v5035_v4 = vld [vmem:[%s6747_s11 + $0xc4] sm:$0xf] }
  0x9f   : > { %5828 = vmatmul.mubr.msk.bf16.vlgmr.msra.gmra.mrb[0].mxu1 %vm830_vm3, %v5166_v13  ;;  %5980 = vmatmul.mubr.msk.bf16.gmra.mrb[16].mxu0 %vm830_vm3, %v5335_v10  ;;  %v7279_v13 = vld [vmem:[%s6747_s11 + $0x28] sm:$0xf]  ;;  %v2917_v10 = vrot.slane %v5050_v31, 5  ;;  %v3984_v42 = vrot.slane %v7273_v1, 2  ;;  %v2908_v43 = vsel %vm7013_vm7, %v5323_v25, %v2907_v57  ;;  %v2921_v46 = vrot.slane %v5035_v4, 5 }
  0xa0   : > { %5860 = vmatpush3.bf16.msra.mxu1 %v1581_v48  ;;  %5831 = vmatprep.mubr.msk.bf16.mxu1 %vm830_vm3, %v5167_v47  ;;  %v5168_v41 = vcombine.low %v6482_v6, %v7279_v13  ;;  %v2910_v47 = vrot.slane %v5049_v56, 5  ;;  %v2915_v45 = vsel %vm7013_vm7, %v5324_v0, %v2914_v17  ;;  %v5067_v50 = vld [vmem:[%s6747_s11 + $0xc0] sm:$0xe]  ;;  %v5170_v8 = vcombine.low %v6896_v37, %v6902_v44  ;;  %v7310_v57 = vld [vmem:[%s8650_s1 + $0x4] ss:$0 sps:$4 sm:$0xcc]  }
  0xa1   : > { %5983 = vmatprep.mubr.msk.bf16.mxu0 %vm830_vm3, %v5336_v49  ;;  %v2918_v48 = vsel %vm7013_vm7, %v2916_v53, %v2917_v10  ;;  %v5051_v49 = vld [vmem:[%s6747_s11 + $0xc8] sm:$0x1]  ;;  %6363 = vmatprep.subr.msk.bf16.mxu0 %vm879_vm0, %v3984_v42  ;;  %v5171_v16 = vcombine.low %v6928_v27, %v6931_v34  ;;  %v5325_v24 = vrot.slane %v5067_v50, 9  ;;  %v2923_v55 = vrot.slane %v2921_v46, 4  ;;  %v5068_v27 = vld [vmem:[%s6747_s11 + $0x18] sm:$0xf] }
  0xa2   : > { %v2911_v52 = vsel %vm7013_vm7, %v2909_v30, %v2910_v47  ;;  %v5340_v26 = vcombine.low %v2915_v45, %v2918_v48  ;;  %v2924_v56 = vrot.slane %v5051_v49, 5  ;;  %v7320_v34 = vld [vmem:[%s6747_s11 + $0x1c] sm:$0xf]  ;;  %v5172_v14 = vcombine.low %v6958_v28, %v6964_v36  ;;  %v5070_v28 = vld [vmem:[%s6747_s11 + $0x24] sm:$0xf] }
  0xa3   : > { %v5339_v62 = vcombine.low %v2908_v43, %v2911_v52  ;;  %v2922_v37 = vsel %vm7013_vm7, %v5325_v24, %v2921_v46  ;;  %v1860_v23 = vrot.slane %v7310_v57, 2  ;;  %v5173_v17 = vcombine.low %v6991_v29, %v6994_v40  ;;  %v7337_v36 = vld [vmem:[%s6747_s11 + $0x28] sm:$0xf]  ;;  %v5072_v29 = vld [vmem:[%s6747_s11 + $0x30] sm:$0xf] }
  0xa4   : > { %v2925_v44 = vsel %vm7013_vm7, %v2923_v55, %v2924_v56  ;;  %v5359_v1 = vcombine.low %v5068_v27, %v7320_v34  ;;  %v7341_v40 = vld [vmem:[%s6747_s11 + $0x34] sm:$0xf]  ;;  %v5174_v31 = vcombine.low %v7009_v9, %v7024_v38  ;;  %v5360_v12 = vcombine.low %v5070_v28, %v7337_v36  ;;  %v5074_v9 = vld [vmem:[%s6747_s11 + $0x3c] sm:$0xf]  ;;  %v7360_v38 = vld [vmem:[%s6747_s11 + $0x40] sm:$0xf] }
  0xa5   : > { %v5341_v60 = vcombine.low %v2922_v37, %v2925_v44  ;;  %6358 = vmatprep.subr.msk.bf16.mxu1 %vm879_vm0, %v1860_v23  ;;  %v5175_v6 = vcombine.low %v7042_v11, %v7047_v21  ;;  %v5076_v11 = vld [vmem:[%s6747_s11 + $0x48] sm:$0xf]  ;;  %v7365_v21 = vld [vmem:[%s6747_s11 + $0x4c] sm:$0xf]  ;;  %v3549_v30 = vshrl.u32 %v5068_v27, 16  ;;  %v3552_v47 = vshll.u32 %v5068_v27, 16 }
  0xa6   : > { %v3573_v0 = vshrl.u32 %v5070_v28, 16  ;;  %v3576_v53 = vshll.u32 %v5070_v28, 16  ;;  %v5176_v10 = vcombine.low %v7070_v58, %v7073_v59  ;;  %v5362_v4 = vcombine.low %v5074_v9, %v7360_v38  ;;  %v7381_v48 = vld [vmem:[%s6747_s11 + $0x14] sm:$0x1]  ;;  %v5080_v37 = vld [vmem:[%s6747_s11 + $0x60] sm:$0xf] }
  0xa7   : > { %5832 = vmatmul.mubr.msk.bf16.gmra.mrb[4].mxu1 %vm830_vm3, %v5168_v41  ;;  %5984 = vmatmul.mubr.msk.bf16.gmra.mrb[20].mxu0 %vm830_vm3, %v5337_v22  ;;  %v4034_v41 = vsel %vm879_vm0, %v3984_v42, 0  ;;  %v5361_v22 = vcombine.low %v5072_v29, %v7341_v40  ;;  %v3597_v42 = vshrl.u32 %v5072_v29, 16  ;;  %v3600_v43 = vshll.u32 %v5072_v29, 16  ;;  %v5078_v59 = vld [vmem:[%s6747_s11 + $0x54] sm:$0xf] }
  0xa8   : > { %5835 = vmatprep.mubr.msk.bf16.mxu1 %vm830_vm3, %v5169_v63  ;;  %5987 = vmatprep.mubr.msk.bf16.mxu0 %vm830_vm3, %v5338_v5  ;;  %v7353_v63 = vld [vmem:[%s8650_s1 + $0x10] sm:$0x3]  ;;  %v7370_v5 = vld [vmem:[%s6747_s11 + $0x8] sm:$0x1]  ;;  %v5177_v52 = vcombine.low %v7097_v51, %v7100_v54  ;;  %v5363_v46 = vcombine.low %v5076_v11, %v7365_v21  ;;  %v1380_v45 = vrot.slane %v7234_v32, 5  ;;  %v1383_v49 = vrot.slane %v7381_v48, 5 }
  0xa9   : > { %v1376_v25 = vrot.slane %v7370_v5, 5  ;;  %v3621_v58 = vshrl.u32 %v5074_v9, 16  ;;  %v3624_v54 = vshll.u32 %v5074_v9, 16  ;;  %v7396_v24 = vrot.slane %v3576_v53, 5  ;;  %v238_v53 = vld [vmem:[%s6747_s11 + $0xc] sm:$0xe] }
  0xaa   : > { %v3645_v56 = vshrl.u32 %v5076_v11, 16  ;;  %v7402_v44 = vrot.slane %v3597_v42, 4  ;;  %v7404_v27 = vrot.slane %v3600_v43, 5  ;;  %v3648_v28 = vshll.u32 %v5076_v11, 16  ;;  %v7433_v42 = vld [vmem:[%s6747_s11 + $0x70] sm:$0xf] }
  0xab   : > { %v3669_v29 = vshrl.u32 %v5078_v59, 16  ;;  %v7503_v48 = vld [vmem:[%s6747_s11 + $0x94] sm:$0xf] }
  0xac   : > { %v7435_v43 = vrot.slane %v3648_v28, 5  ;;  %8668 = vst [vmem:[#allocation7_spill] sm:$0xff] %v7503_v48  ;;  %v6487_v32 = vld [vmem:[%s6747_s11 + $0x34] sm:$0xf] }
  0xaf   : > { %5836 = vmatmul.mubr.msk.bf16.gmra.mrb[8].mxu1 %vm830_vm3, %v5170_v8  ;;  %5988 = vmatmul.mubr.msk.bf16.gmra.mrb[24].mxu0 %vm830_vm3, %v5339_v62  ;;  %v7386_v8 = vrot.slane %v3549_v30, 4  ;;  %v7388_v62 = vrot.slane %v3552_v47, 5  ;;  %v7423_v30 = vld [vmem:[%s6747_s11 + $0x6c] sm:$0xf]  ;;  %v5179_v47 = vcombine.low %v7145_v7, %v7148_v20  ;;  %v1394_v7 = vrot.slane %v7279_v13, 5 }
  0xb0   : > { %5839 = vmatprep.mubr.msk.bf16.mxu1 %vm830_vm3, %v5171_v16  ;;  %5991 = vmatprep.mubr.msk.bf16.mxu0 %vm830_vm3, %v5340_v26  ;;  %v7392_v16 = vld [vmem:[%s6747_s11 + $0x58] sm:$0xf]  ;;  %v7394_v26 = vrot.slane %v3573_v0, 4  ;;  %v3693_v0 = vshrl.u32 %v5080_v37, 16  ;;  %v3720_v20 = vshll.u32 %v7423_v30, 16 }
  0xb1   : > { %v5364_v9 = vcombine.low %v5078_v59, %v7392_v16 }
  0xb2   : > { %v7452_v28 = vrot.slane %v3693_v0, 4 }
  0xb7   : > { %5840 = vmatmul.mubr.msk.bf16.gmra.mrb[12].mxu1 %vm830_vm3, %v5172_v14  ;;  %5992 = vmatmul.mubr.msk.bf16.gmra.mrb[28].mxu0 %vm830_vm3, %v5341_v60  ;;  %v7410_v60 = vld [vmem:[%s6747_s11 + $0x64] sm:$0xf]  ;;  %v6490_v14 = vld [vmem:[%s6747_s11 + $0x40] sm:$0xf] }
  0xb8   : > { %5843 = vmatprep.mubr.msk.bf16.mxu1 %vm830_vm3, %v5173_v17  ;;  %5997 = vmatprep.mubr.msk.bf16.mxu0 %vm830_vm3, %v5359_v1  ;;  %v1373_v17 = vrot.slane %v7212_v19, 5  ;;  %v7413_v1 = vrot.slane %v3621_v58, 4  ;;  %v7425_v19 = vrot.slane %v3645_v56, 4  ;;  %v3717_v58 = vshrl.u32 %v7423_v30, 16 }
  0xb9   : > { %v5198_v56 = vrot.slane %v238_v53, 9  ;;  %v1408_v55 = vrot.slane %v6490_v14, 5 }
  0xbb   : > { %v7483_v5 = vsel %vm7013_vm7, %v5198_v56, %v1380_v45  ;;  %v6486_v56 = vld [vmem:[%s6747_s11 + $0x20] sm:$0x1] }
  0xbf   : > { %5844 = vmatmul.mubr.msk.bf16.gmra.mrb[16].mxu1 %vm830_vm3, %v5174_v31  ;;  %5998 = vmatmul.mubr.msk.bf16.vlgmr.msra.gmra.mrb[0].mxu0 %vm830_vm3, %v5360_v12  ;;  %v3672_v31 = vshll.u32 %v5078_v59, 16  ;;  %v237_v12 = vld [vmem:[%s6747_s11] sm:$0xe]  ;;  %v5084_v59 = vld [vmem:[%s6747_s11 + $0x78] sm:$0xf] }
  0xc0   : > { %6030 = vmatpush3.bf16.msra.mxu0 %v4034_v41  ;;  %5847 = vmatprep.mubr.msk.bf16.mxu1 %vm830_vm3, %v5175_v6  ;;  %v7416_v6 = vrot.slane %v3624_v54, 5  ;;  %v7446_v54 = vld [vmem:[%s6747_s11 + $0x7c] sm:$0xf] }
  0xc1   : > { %6001 = vmatprep.mubr.msk.bf16.mxu0 %vm830_vm3, %v5361_v22  ;;  %6364 = vmatprep.subr.msk.bf16.mxu0 %vm879_vm0, %v7353_v63  ;;  %v5178_v22 = vcombine.low %v7121_v39, %v7124_v33  ;;  %v5197_v39 = vrot.slane %v237_v12, 9  ;;  %v1375_v33 = vrot.slane %v1373_v17, 4  ;;  %v3741_v12 = vshrl.u32 %v5084_v59, 16 }
  0xc2   : > { %v5367_v0 = vcombine.low %v5084_v59, %v7446_v54 }
  0xc7   : > { %5848 = vmatmul.mubr.msk.bf16.gmra.mrb[20].mxu1 %vm830_vm3, %v5176_v10  ;;  %6002 = vmatmul.mubr.msk.bf16.gmra.mrb[4].mxu0 %vm830_vm3, %v5362_v4  ;;  %v5365_v10 = vcombine.low %v5080_v37, %v7410_v60  ;;  %v3696_v4 = vshll.u32 %v5080_v37, 16  ;;  %v1382_v37 = vrot.slane %v1380_v45, 4 }
  0xc8   : > { %5851 = vmatprep.mubr.msk.bf16.mxu1 %vm830_vm3, %v5177_v52  ;;  %6005 = vmatprep.mubr.msk.bf16.mxu0 %vm830_vm3, %v5363_v46  ;;  %v7437_v52 = vrot.slane %v3669_v29, 4  ;;  %v7439_v46 = vrot.slane %v3672_v31, 5  ;;  %v5180_v29 = vcombine.low %v7169_v2, %v7172_v61  ;;  %v5366_v31 = vcombine.low %v7423_v30, %v7433_v42  ;;  %v7469_v61 = vld [vmem:[%s6747_s11 + $0x84] sm:$0xf] }
  0xc9   : > { %v7460_v53 = vrot.slane %v3696_v4, 5  ;;  %v1377_v2 = vsel %vm7013_vm7, %v1375_v33, %v1376_v25  ;;  %v7472_v30 = vrot.slane %v3717_v58, 4  ;;  %v239_v4 = vld [vmem:[%s6747_s11 + $0x18] sm:$0xe]  ;;  %v7492_v25 = vld [vmem:[%s6747_s11 + $0x88] sm:$0xf] }
  0xca   : > { %v7496_v33 = vld [vmem:[%s6747_s11 + $0x90] sm:$0xf]  ;;  %v3768_v45 = vshll.u32 %v7469_v61, 16 }
  0xcb   : > { %v3789_v13 = vshrl.u32 %v7496_v33, 16 }
  0xcc   : > { %v7527_v57 = vrot.slane %v3768_v45, 5 }
  0xce   : > { %8671 = vst [vmem:[#allocation10_spill] sm:$0xff] %v7527_v57 }
  0xcf   : > { %5852 = vmatmul.mubr.msk.bf16.gmra.mrb[24].mxu1 %vm830_vm3, %v5178_v22  ;;  %6006 = vmatmul.mubr.msk.bf16.gmra.mrb[8].mxu0 %vm830_vm3, %v5364_v9  ;;  %v1374_v22 = vsel %vm7013_vm7, %v5197_v39, %v1373_v17  ;;  %v1387_v9 = vrot.slane %v7245_v18, 5  ;;  %v7477_v17 = vrot.slane %v3720_v20, 5  ;;  %v7489_v18 = vsel %vm7013_vm7, %v1382_v37, %v1383_v49 }
  0xd0   : > { %5855 = vmatprep.mubr.msk.bf16.mxu1 %vm830_vm3, %v5179_v47  ;;  %6009 = vmatprep.mubr.msk.bf16.mxu0 %vm830_vm3, %v5365_v10  ;;  %v3744_v10 = vshll.u32 %v5084_v59, 16  ;;  %v3765_v39 = vshrl.u32 %v7469_v61, 16  ;;  %v5213_v58 = vcombine.low %v1374_v22, %v1377_v2  ;;  %v7498_v59 = vrot.slane %v3741_v12, 4  ;;  %v240_v47 = vld [vmem:[%s6747_s11 + $0x24] sm:$0xe] }
  0xd1   : > { %v5199_v20 = vrot.slane %v239_v4, 9  ;;  %v1389_v49 = vrot.slane %v1387_v9, 4  ;;  %v1390_v37 = vrot.slane %v6486_v56, 5  ;;  %v5214_v12 = vcombine.low %v7483_v5, %v7489_v18  ;;  %v7540_v56 = vld [vmem:[%s6747_s11 + $0x9c] sm:$0xf] }
  0xd2   : > { %8667 = vst [vmem:[#allocation6_spill] sm:$0xff] %v7498_v59  ;;  %v7508_v11 = vrot.slane %v3744_v10, 5  ;;  %v7515_v22 = vsel %vm879_vm0, %v1860_v23, 0  ;;  %v5368_v2 = vcombine.low %v7469_v61, %v7492_v25  ;;  %v7519_v4 = vrot.slane %v3765_v39, 4  ;;  %v241_v10 = vld [vmem:[%s6747_s11 + $0x30] sm:$0xe] }
  0xd3   : > { %v1401_v5 = vrot.slane %v6487_v32, 5  ;;  %v5369_v23 = vcombine.low %v7496_v33, %v7503_v48  ;;  %v3792_v61 = vshll.u32 %v7496_v33, 16  ;;  %v5200_v18 = vrot.slane %v240_v47, 9  ;;  %v6488_v32 = vld [vmem:[%s6747_s11 + $0x2c] sm:$0x1] }
  0xd4   : > { %8669 = vst [vmem:[#allocation8_spill] sm:$0xff] %v7508_v11  ;;  %8670 = vst [vmem:[#allocation9_spill] sm:$0xff] %v7519_v4  ;;  %v1388_v39 = vsel %vm7013_vm7, %v5199_v20, %v1387_v9  ;;  %v1397_v45 = vrot.slane %v6488_v32, 5  ;;  %v7543_v33 = vld [vmem:[%s6747_s11 + $0xa0] sm:$0xf]  ;;  %v5201_v9 = vrot.slane %v241_v10, 9 }
  0xd5   : > { %v7548_v20 = vrot.slane %v3789_v13, 4  ;;  %v1403_v41 = vrot.slane %v1401_v5, 4  ;;  %v242_v32 = vld [vmem:[%s6747_s11 + $0x3c] sm:$0xe]  ;;  %v7553_v50 = vrot.slane %v3792_v61, 5  ;;  %v7557_v47 = vsel %vm7013_vm7, %v5200_v18, %v1394_v7 }
  0xd6   : > { %v7562_v10 = vld [vmem:[%s6747_s11 + $0xa8] sm:$0xf]  ;;  %v7575_v18 = vld [vmem:[%s6747_s11 + $0xb4] sm:$0xf]  ;;  %v7583_v13 = vsel %vm7013_vm7, %v5201_v9, %v1401_v5  ;;  %v7644_v48 = vld [vmem:[%s6747_s11 + $0x20] sm:$0x1] }
  0xd7   : > { %5856 = vmatmul.mubr.msk.bf16.gmra.mrb[28].mxu1 %vm830_vm3, %v5180_v29  ;;  %6010 = vmatmul.mubr.msk.bf16.gmra.mrb[12].mxu0 %vm830_vm3, %v5366_v31  ;;  %v1391_v29 = vsel %vm7013_vm7, %v1389_v49, %v1390_v37  ;;  %v1396_v31 = vrot.slane %v1394_v7, 4  ;;  %8672 = vst [vmem:[#allocation11_spill] sm:$0xff] %v7548_v20  ;;  %v6489_v49 = vld [vmem:[%s6747_s11 + $0x38] sm:$0x1]  ;;  %8673 = vst [vmem:[#allocation12_spill] sm:$0xff] %v7553_v50  ;;  %v3840_v7 = vshll.u32 %v7562_v10, 16 }
  0xd8   : > { %5861 = vmatprep.mubr.msk.bf16.mxu1 %vm830_vm3, %v5213_v58  ;;  %6013 = vmatprep.mubr.msk.bf16.mxu0 %vm830_vm3, %v5367_v0  ;;  %v3813_v0 = vshrl.u32 %v7540_v56, 16  ;;  %v3816_v58 = vshll.u32 %v7540_v56, 16  ;;  %v1404_v37 = vrot.slane %v6489_v49, 5  ;;  %v5215_v51 = vcombine.low %v1388_v39, %v1391_v29  ;;  %v6491_v20 = vld [vmem:[%s6747_s11 + $0x44] sm:$0x1] }
  0xd9   : > { %v7569_v14 = vsel %vm7013_vm7, %v1396_v31, %v1397_v45  ;;  %v3837_v39 = vshrl.u32 %v7562_v10, 16  ;;  %v5202_v31 = vrot.slane %v242_v32, 9  ;;  %v7586_v45 = vld [vmem:[%s6747_s11 + $0xb8] sm:$0xf]  ;;  %v1410_v50 = vrot.slane %v1408_v55, 4 }
  0xda   : > { %v7577_v29 = vrot.slane %v3813_v0, 4  ;;  %v7579_v49 = vrot.slane %v3816_v58, 5  ;;  %v7590_v61 = vsel %vm7013_vm7, %v1403_v41, %v1404_v37  ;;  %v1411_v57 = vrot.slane %v6491_v20, 5  ;;  %v243_v0 = vld [vmem:[%s6747_s11 + $0x48] sm:$0xe] }
  0xdb   : > { %v5216_v5 = vcombine.low %v7557_v47, %v7569_v14  ;;  %v5371_v9 = vcombine.low %v7562_v10, %v7565_v3  ;;  %v244_v32 = vld [vmem:[%s6747_s11 + $0x54] sm:$0xe]  ;;  %v6493_v41 = vld [vmem:[%s6747_s11 + $0x58] sm:$0xf]  ;;  %v3558_v20 = vshll.u32 %v7320_v34, 16 }
  0xdc   : > { %8675 = vst [vmem:[#allocation14_spill] sm:$0xff] %v7577_v29  ;;  %8676 = vst [vmem:[#allocation15_spill] sm:$0xff] %v7579_v49  ;;  %v6492_v29 = vld [vmem:[%s6747_s11 + $0x4c] sm:$0xf]  ;;  %v1422_v37 = vrot.slane %v6493_v41, 5 }
  0xdd   : > { %v1415_v58 = vrot.slane %v6492_v29, 5  ;;  %v6494_v10 = vld [vmem:[%s6747_s11 + $0x64] sm:$0xf]  ;;  %v5217_v29 = vcombine.low %v7583_v13, %v7590_v61  ;;  %v245_v41 = vld [vmem:[%s6747_s11 + $0x60] sm:$0xe]  ;;  %v7631_v13 = vsel %vm7013_vm7, %v1410_v50, %v1411_v57 }
  0xde   : > { %v1429_v14 = vrot.slane %v6494_v10, 5  ;;  %v6496_v61 = vld [vmem:[%s6747_s11 + $0x50] sm:$0x1]  ;;  %v5204_v10 = vrot.slane %v244_v32, 9  ;;  %v1424_v47 = vrot.slane %v1422_v37, 4  ;;  %v5205_v3 = vrot.slane %v245_v41, 9 }
  0xdf   : > { %5862 = vmatmul.mubr.msk.bf16.vlgmr.msra.gmra.mrb[0].mxu1 %vm830_vm3, %v5214_v12  ;;  %6014 = vmatmul.mubr.msk.bf16.gmra.mrb[16].mxu0 %vm830_vm3, %v5368_v2  ;;  %v7606_v12 = vrot.slane %v3837_v39, 4  ;;  %v7608_v2 = vrot.slane %v3840_v7, 5  ;;  %v5203_v39 = vrot.slane %v243_v0, 9  ;;  %v7622_v7 = vld [vmem:[%s6747_s11 + $0xc0] sm:$0xf]  ;;  %v3582_v41 = vshll.u32 %v7337_v36, 16 }
  0xe0   : > { %5894 = vmatpush3.bf16.msra.mxu1 %v7515_v22  ;;  %5865 = vmatprep.mubr.msk.bf16.mxu1 %vm830_vm3, %v5215_v51  ;;  %v7617_v22 = vsel %vm7013_vm7, %v5202_v31, %v1408_v55  ;;  %v1417_v55 = vrot.slane %v1415_v58, 4  ;;  %v1418_v31 = vrot.slane %v6496_v61, 5  ;;  %v7635_v0 = vld [vmem:[%s6747_s11 + $0xc4] sm:$0xf]  ;;  %v6497_v51 = vld [vmem:[%s6747_s11 + $0x5c] sm:$0x1]  ;;  %v3555_v61 = vor.u32 %v7388_v62, %v7386_v8 }
  0xe1   : > { %8677 = vst [vmem:[#allocation16_spill] sm:$0xff] %v7606_v12  ;;  %8678 = vst [vmem:[#allocation17_spill] sm:$0xff] %v7608_v2  ;;  %6017 = vmatprep.mubr.msk.bf16.mxu0 %vm830_vm3, %v5369_v23  ;;  %v6495_v23 = vld [vmem:[%s8650_s1 + $0x8] sm:$0x3]  ;;  %v1425_v2 = vrot.slane %v6497_v51, 5  ;;  %v7638_v12 = vrot.slane %v3558_v20, 5  ;;  %v5373_v20 = vcombine.low %v7622_v7, %v7635_v0  ;;  %v7662_v8 = vsel %vm7013_vm7, %v5204_v10, %v1422_v37 }
  0xe2   : > { %6360 = vmatprep.subr.msk.bf16.mxu1 %vm879_vm0, %v6495_v23  ;;  %v8679_v23 = vshrl.u32 %v7320_v34, 16  ;;  %v1431_v4 = vrot.slane %v1429_v14, 4  ;;  %v6498_v50 = vld [vmem:[%s6747_s11 + $0x68] sm:$0x1]  ;;  %v246_v51 = vld [vmem:[%s6747_s11 + $0x6c] sm:$0xe]  ;;  %v1419_v59 = vsel %vm7013_vm7, %v1417_v55, %v1418_v31  ;;  %v8680_v62 = vcombine.low %v7540_v56, %v7543_v33 }
  0xe3   : > { %v1432_v57 = vrot.slane %v6498_v50, 5  ;;  %v6499_v11 = vld [vmem:[%s6747_s11 + $0x70] sm:$0xf]  ;;  %v1416_v50 = vsel %vm7013_vm7, %v5203_v39, %v1415_v58  ;;  %v7674_v58 = vld [vmem:[%s6747_s11 + $0xcc] sm:$0xf]  ;;  %v3568_v39 = vshll.u32 %v7644_v48, 16  ;;  %v7686_v56 = vsel %vm7013_vm7, %v5205_v3, %v1429_v14 }
  0xe4   : > { %v3564_v49 = vrot.slane %v8679_v23, 4  ;;  %v1436_v34 = vrot.slane %v6499_v11, 5  ;;  %v5218_v23 = vcombine.low %v7617_v22, %v7631_v13  ;;  %v7671_v11 = vsel %vm7013_vm7, %v1424_v47, %v1425_v2  ;;  %v7677_v22 = vld [vmem:[%s6747_s11 + $0xd0] sm:$0xf]  ;;  %v7694_v10 = vld [vmem:[%s6747_s11 + $0x2c] sm:$0x1] }
  0xe5   : > { %v7690_v2 = vsel %vm7013_vm7, %v1431_v4, %v1432_v57  ;;  %v3556_v47 = vrot.slane %v3555_v61, 4  ;;  %v5206_v13 = vrot.slane %v246_v51, 9  ;;  %8681 = vst [vmem:[#allocation18_spill] sm:$0xff] %v7694_v10  ;;  %v5219_v14 = vcombine.low %v1416_v50, %v1419_v59  ;;  %v247_v32 = vld [vmem:[%s6747_s11 + $0x78] sm:$0xe] }
  0xe6   : > { %v3565_v37 = vor.u32 %v3564_v49, %v7638_v12  ;;  %v1438_v55 = vrot.slane %v1436_v34, 4  ;;  %v6500_v49 = vld [vmem:[%s6747_s11 + $0x74] sm:$0x1]  ;;  %v3579_v61 = vor.u32 %v7396_v24, %v7394_v26  ;;  %v6501_v57 = vld [vmem:[%s6747_s11 + $0x7c] sm:$0xf] }
  0xe7   : > { %5866 = vmatmul.mubr.msk.bf16.gmra.mrb[4].mxu1 %vm830_vm3, %v5216_v5  ;;  %6018 = vmatmul.mubr.msk.bf16.gmra.mrb[20].mxu0 %vm830_vm3, %v8680_v62  ;;  %v3606_v5 = vshll.u32 %v7341_v40, 16  ;;  %v1439_v31 = vrot.slane %v6500_v49, 5  ;;  %v3570_v62 = vrot.slane %v3568_v39, 5  ;;  %v3561_v50 = vsel %vm6777_vm4, %v3556_v47, %v7638_v12  ;;  %v7719_v24 = vld [vmem:[%s6747_s11 + $0x38] sm:$0x1] }
  0xe8   : > { %5869 = vmatprep.mubr.msk.bf16.mxu1 %vm830_vm3, %v5217_v29  ;;  %6021 = vmatprep.mubr.msk.bf16.mxu0 %vm830_vm3, %v5371_v9  ;;  %v7696_v29 = vrot.slane %v3582_v41, 5  ;;  %v8682_v9 = vshrl.u32 %v7337_v36, 16  ;;  %v3566_v51 = vrot.slane %v3565_v37, 4  ;;  %v8683_v41 = vshrl.u32 %v7341_v40, 16  ;;  %8684 = vst [vmem:[#allocation19_spill] sm:$0xff] %v7719_v24 }
  0xe9   : > { %v7706_v49 = vrot.slane %v3606_v5, 5  ;;  %v1443_v26 = vrot.slane %v6501_v57, 5  ;;  %v7723_v40 = vsel %vm7013_vm7, %v5206_v13, %v1436_v34  ;;  %v7727_v37 = vsel %vm7013_vm7, %v1438_v55, %v1439_v31  ;;  %v6502_v34 = vld [vmem:[%s6747_s11 + $0x88] sm:$0xf] }
  0xea   : > { %v3588_v3 = vrot.slane %v8682_v9, 4  ;;  %v3612_v36 = vrot.slane %v8683_v41, 4  ;;  %v3592_v9 = vshll.u32 %v7694_v10, 16  ;;  %v3630_v12 = vshll.u32 %v7360_v38, 16  ;;  %v248_v41 = vld [vmem:[%s6747_s11 + $0x84] sm:$0xe] }
  0xeb   : > { %v7731_v5 = vrot.slane %v3579_v61, 4  ;;  %v7735_v47 = vsel %vm879_vm0, %v7353_v63, 0  ;;  %v3603_v57 = vor.u32 %v7404_v27, %v7402_v44  ;;  %v1450_v13 = vrot.slane %v6502_v34, 5  ;;  %v6503_v34 = vld [vmem:[%s6747_s11 + $0x80] sm:$0x1] }
  0xec   : > { %v3589_v39 = vor.u32 %v3588_v3, %v7696_v29  ;;  %v8685_v55 = vcombine.low %v7575_v18, %v7586_v45  ;;  %v3571_v31 = vsel %vm6777_vm4, %v3566_v51, %v3570_v62  ;;  %v5207_v3 = vrot.slane %v247_v32, 9 }
  0xed   : > { %v3613_v63 = vor.u32 %v3612_v36, %v7706_v49  ;;  %v3616_v61 = vshll.u32 %v7719_v24, 16  ;;  %v3594_v27 = vrot.slane %v3592_v9, 5  ;;  %v7755_v32 = vrot.slane %v3630_v12, 5  ;;  %v6504_v24 = vld [vmem:[%s6747_s11 + $0x8c] sm:$0x1] }
  0xee   : > { %v3590_v51 = vrot.slane %v3589_v39, 4  ;;  %v8686_v62 = vshrl.u32 %v7360_v38, 16  ;;  %v3604_v59 = vrot.slane %v3603_v57, 4  ;;  %v5208_v4 = vrot.slane %v248_v41, 9  ;;  %v7762_v9 = vld [vmem:[%s6747_s11 + $0x44] sm:$0x1] }
  0xef   : > { %5870 = vmatmul.mubr.msk.bf16.gmra.mrb[8].mxu1 %vm830_vm3, %v5218_v23  ;;  %6022 = vmatmul.mubr.msk.bf16.gmra.mrb[24].mxu0 %vm830_vm3, %v8685_v55  ;;  %v1445_v23 = vrot.slane %v1443_v26, 4  ;;  %v1446_v55 = vrot.slane %v6503_v34, 5  ;;  %v1453_v44 = vrot.slane %v6504_v24, 5  ;;  %v5391_v10 = vcombine.low %v3561_v50, %v3571_v31  ;;  %v249_v41 = vld [vmem:[%s6747_s11 + $0x90] sm:$0xe] }
  0xf0   : > { %5873 = vmatprep.mubr.msk.bf16.mxu1 %vm830_vm3, %v5219_v14  ;;  %6025 = vmatprep.mubr.msk.bf16.mxu0 %vm830_vm3, %v5373_v20  ;;  %v3636_v36 = vrot.slane %v8686_v62, 4  ;;  %v3654_v14 = vshll.u32 %v7365_v21, 16  ;;  %v1452_v20 = vrot.slane %v1450_v13, 4  ;;  %v3614_v34 = vrot.slane %v3613_v63, 4  ;;  %v6505_v50 = vld [vmem:[%s6747_s11 + $0x94] sm:$0xf] }
  0xf1   : > { %v3618_v39 = vrot.slane %v3616_v61, 5  ;;  %v3627_v12 = vor.u32 %v7416_v6, %v7413_v1  ;;  %v3585_v38 = vsel %vm6777_vm4, %v7731_v5, %v7696_v29  ;;  %v7772_v57 = vsel %vm7013_vm7, %v5207_v3, %v1443_v26  ;;  %v7783_v6 = vld [vmem:[%s6747_s11 + $0x50] sm:$0x1] }
  0xf2   : > { %v7776_v24 = vsel %vm7013_vm7, %v1445_v23, %v1446_v55  ;;  %v1457_v31 = vrot.slane %v6505_v50, 5  ;;  %v3637_v63 = vor.u32 %v3636_v36, %v7755_v32  ;;  %v3640_v1 = vshll.u32 %v7762_v9, 16 }
  0xf3   : > { %v7785_v61 = vrot.slane %v3654_v14, 5  ;;  %v8687_v29 = vshrl.u32 %v7365_v21, 16  ;;  %v3595_v5 = vsel %vm6777_vm4, %v3590_v51, %v3594_v27  ;;  %v3609_v3 = vsel %vm6777_vm4, %v3604_v59, %v7706_v49 }
  0xf4   : > { %v7796_v23 = vsel %vm7013_vm7, %v5208_v4, %v1450_v13  ;;  %v7800_v55 = vsel %vm7013_vm7, %v1452_v20, %v1453_v44  ;;  %v8688_v62 = vcombine.low %v7662_v8, %v7671_v11  ;;  %v8689_v21 = vcombine.low %v7674_v58, %v7677_v22  ;;  %v6506_v11 = vld [vmem:[%s6747_s11 + $0x98] sm:$0x1] }
  0xf5   : > { %v3660_v26 = vrot.slane %v8687_v29, 4  ;;  %v3619_v49 = vsel %vm6777_vm4, %v3614_v34, %v3618_v39  ;;  %v3628_v59 = vrot.slane %v3627_v12, 4  ;;  %v5209_v4 = vrot.slane %v249_v41, 9  ;;  %v6507_v12 = vld [vmem:[%s6747_s11 + $0xa0] sm:$0xf] }
  0xf6   : > { %v3678_v13 = vshll.u32 %v7392_v16, 16  ;;  %v8690_v44 = vcombine.low %v7686_v56, %v7690_v2  ;;  %v1459_v8 = vrot.slane %v1457_v31, 4  ;;  %v1460_v27 = vrot.slane %v6506_v11, 5 }
  0xf7   : > { %5874 = vmatmul.mubr.msk.bf16.gmra.mrb[12].mxu1 %vm830_vm3, %v8688_v62  ;;  %6026 = vmatmul.mubr.msk.bf16.gmra.mrb[28].mxu0 %vm830_vm3, %v8689_v21  ;;  %v3651_v51 = vor.u32 %v7435_v43, %v7425_v19  ;;  %v3664_v36 = vshll.u32 %v7783_v6, 16  ;;  %v3638_v14 = vrot.slane %v3637_v63, 4  ;;  %v3642_v20 = vrot.slane %v3640_v1, 5  ;;  %v250_v43 = vld [vmem:[%s6747_s11 + $0x9c] sm:$0xe] }
  0xf8   : > { %5877 = vmatprep.mubr.msk.bf16.mxu1 %vm830_vm3, %v8690_v44  ;;  %6031 = vmatprep.mubr.msk.bf16.mxu0 %vm830_vm3, %v5391_v10  ;;  %v3661_v34 = vor.u32 %v3660_v26, %v7785_v61  ;;  %v3702_v56 = vshll.u32 %v7410_v60, 16  ;;  %v5392_v2 = vcombine.low %v3585_v38, %v3595_v5  ;;  %v5223_v10 = vcombine.low %v7772_v57, %v7776_v24  ;;  %v7846_v5 = vld [vmem:[%s6747_s11 + $0x5c] sm:$0x1]  ;;  %v7858_v44 = vld [vmem:[%s6747_s11 + $0x68] sm:$0x1] }
  0xf9   : > { %v5224_v39 = vcombine.low %v7796_v23, %v7800_v55  ;;  %v1464_v41 = vrot.slane %v6507_v12, 5  ;;  %v5393_v50 = vcombine.low %v3609_v3, %v3619_v49  ;;  %v7831_v19 = vsel %vm7013_vm7, %v5209_v4, %v1457_v31 }
  0xfa   : > { %v7834_v63 = vrot.slane %v3678_v13, 5  ;;  %v8691_v1 = vshrl.u32 %v7392_v16, 16  ;;  %v3633_v57 = vsel %vm6777_vm4, %v3628_v59, %v7755_v32  ;;  %v7843_v24 = vsel %vm7013_vm7, %v1459_v8, %v1460_v27  ;;  %v6508_v59 = vld [vmem:[%s6747_s11 + $0xa4] sm:$0x1] }
  0xfb   : > { %v3652_v29 = vrot.slane %v3651_v51, 4  ;;  %v3666_v26 = vrot.slane %v3664_v36, 5  ;;  %v3643_v31 = vsel %vm6777_vm4, %v3638_v14, %v3642_v20  ;;  %v3662_v16 = vrot.slane %v3661_v34, 4  ;;  %v251_v51 = vld [vmem:[%s6747_s11 + $0xa8] sm:$0xe] }
  0xfc   : > { %v3684_v38 = vrot.slane %v8691_v1, 4  ;;  %v7850_v3 = vrot.slane %v3702_v56, 5  ;;  %v8692_v62 = vshrl.u32 %v7410_v60, 16  ;;  %v5210_v32 = vrot.slane %v250_v43, 9  ;;  %v6509_v36 = vld [vmem:[%s6747_s11 + $0xac] sm:$0xf] }
  0xfd   : > { %v1466_v49 = vrot.slane %v1464_v41, 4  ;;  %v1467_v4 = vrot.slane %v6508_v59, 5  ;;  %v3675_v13 = vor.u32 %v7439_v46, %v7437_v52  ;;  %v8693_v8 = vcombine.low %v7723_v40, %v7727_v37  ;;  %v6511_v59 = vld [vmem:[%s6747_s11 + $0xb8] sm:$0xf] }
  0xfe   : > { %v3708_v21 = vrot.slane %v8692_v62, 4  ;;  %v5225_v60 = vcombine.low %v7831_v19, %v7843_v24  ;;  %v3685_v11 = vor.u32 %v3684_v38, %v7834_v63  ;;  %v3688_v27 = vshll.u32 %v7846_v5, 16  ;;  %v6510_v19 = vld [vmem:[%s6747_s11 + $0xb0] sm:$0x1] }
  0xff   : > { %5878 = vmatmul.mubr.msk.bf16.gmra.mrb[16].mxu1 %vm830_vm3, %v8693_v8  ;;  %6032 = vmatmul.mubr.msk.bf16.vlgmr.msra.gmra.mrb[0].mxu0 %vm830_vm3, %v5392_v2  ;;  %v1471_v14 = vrot.slane %v6509_v36, 5  ;;  %v5394_v52 = vcombine.low %v3633_v57, %v3643_v31  ;;  %v3657_v46 = vsel %vm6777_vm4, %v3652_v29, %v7785_v61  ;;  %v3699_v40 = vor.u32 %v7460_v53, %v7452_v28  ;;  %v7899_v31 = vld [vmem:[%s6747_s11 + $0x74] sm:$0x1]  ;;  %v252_v8 = vld [vmem:[%s6747_s11 + $0xb4] sm:$0xe]  ;;  %v8697_v36 = vld [vmem:[#allocation8_spill] sm:$0xff] }
 0x100   : > { %6064 = vmatpush3.bf16.msra.mxu0 %v7735_v47  ;;  %5881 = vmatprep.mubr.msk.bf16.mxu1 %vm830_vm3, %v5223_v10  ;;  %v3726_v37 = vshll.u32 %v7433_v42, 16  ;;  %v3667_v20 = vsel %vm6777_vm4, %v3662_v16, %v3666_v26  ;;  %v3709_v47 = vor.u32 %v3708_v21, %v7850_v3  ;;  %v3712_v34 = vshll.u32 %v7858_v44, 16 }
 0x101   : > { %6035 = vmatprep.mubr.msk.bf16.mxu0 %vm830_vm3, %v5393_v50  ;;  %v3750_v56 = vshll.u32 %v7446_v54, 16  ;;  %v7887_v61 = vsel %vm7013_vm7, %v5210_v32, %v1464_v41  ;;  %v7891_v28 = vsel %vm7013_vm7, %v1466_v49, %v1467_v4  ;;  %v3676_v53 = vrot.slane %v3675_v13, 4  ;;  %v7914_v13 = vld [vmem:[%s6747_s11 + $0x80] sm:$0x1] }
 0x102   : > { %v5211_v2 = vrot.slane %v251_v51, 9  ;;  %v3686_v10 = vrot.slane %v3685_v11, 4  ;;  %v3690_v12 = vrot.slane %v3688_v27, 5  ;;  %v1473_v50 = vrot.slane %v1471_v14, 4  ;;  %v8696_v51 = vld [vmem:[#allocation6_spill] sm:$0xff] }
 0x103   : > { %v1474_v43 = vrot.slane %v6510_v19, 5  ;;  %v5395_v1 = vcombine.low %v3657_v46, %v3667_v20  ;;  %v3700_v38 = vrot.slane %v3699_v40, 4  ;;  %v7894_v57 = vrot.slane %v3726_v37, 5 }
 0x104   : > { %v8694_v41 = vshrl.u32 %v7433_v42, 16  ;;  %v3710_v29 = vrot.slane %v3709_v47, 4  ;;  %v3714_v26 = vrot.slane %v3712_v34, 5  ;;  %v7901_v16 = vrot.slane %v3750_v56, 5 }
 0x105   : > { %v8695_v62 = vshrl.u32 %v7446_v54, 16  ;;  %v5226_v32 = vcombine.low %v7887_v61, %v7891_v28  ;;  %v3681_v49 = vsel %vm6777_vm4, %v3676_v53, %v7834_v63  ;;  %v1472_v42 = vsel %vm7013_vm7, %v5211_v2, %v1471_v14  ;;  %v7945_v61 = vld [vmem:[%s6747_s11 + $0x8c] sm:$0x1] }
 0x106   : > { %v3732_v24 = vrot.slane %v8694_v41, 4  ;;  %v1478_v4 = vrot.slane %v6511_v59, 5  ;;  %v3691_v54 = vsel %vm6777_vm4, %v3686_v10, %v3690_v12  ;;  %v1475_v63 = vsel %vm7013_vm7, %v1473_v50, %v1474_v43 }
 0x107   : > { %v3756_v21 = vrot.slane %v8695_v62, 4  ;;  %5882 = vmatmul.mubr.msk.bf16.gmra.mrb[20].mxu1 %vm830_vm3, %v5224_v39  ;;  %6036 = vmatmul.mubr.msk.bf16.gmra.mrb[4].mxu0 %vm830_vm3, %v5394_v52  ;;  %v3723_v11 = vor.u32 %v7477_v17, %v7472_v30  ;;  %v3774_v27 = vshll.u32 %v7492_v25, 16  ;;  %v3705_v23 = vsel %vm6777_vm4, %v3700_v38, %v7850_v3  ;;  %v8698_v52 = vld [vmem:[#allocation7_spill] sm:$0xff]  ;;  %v6512_v3 = vld [vmem:[%s6747_s11 + $0xbc] sm:$0x1]  ;;  %v8701_v62 = vld [vmem:[#allocation9_spill] sm:$0xff] }
 0x108   : > { %5885 = vmatprep.mubr.msk.bf16.mxu1 %vm830_vm3, %v5225_v60  ;;  %6039 = vmatprep.mubr.msk.bf16.mxu0 %vm830_vm3, %v5395_v1  ;;  %v3733_v55 = vor.u32 %v3732_v24, %v7894_v57  ;;  %v3736_v39 = vshll.u32 %v7899_v31, 16  ;;  %v3747_v14 = vor.u32 %v8697_v36, %v8696_v51  ;;  %v3715_v30 = vsel %vm6777_vm4, %v3710_v29, %v3714_v26  ;;  %v8705_v36 = vld [vmem:[#allocation13_spill] sm:$0xff] }
 0x109   : > { %v3757_v17 = vor.u32 %v3756_v21, %v7901_v16  ;;  %v3760_v60 = vshll.u32 %v7914_v13, 16  ;;  %v3798_v46 = vshll.u32 %v8698_v52, 16  ;;  %v5396_v40 = vcombine.low %v3681_v49, %v3691_v54  ;;  %v8702_v21 = vld [vmem:[#allocation10_spill] sm:$0xff] }
 0x10a   : > { %v5227_v37 = vcombine.low %v1472_v42, %v1475_v63  ;;  %v5212_v20 = vrot.slane %v252_v8, 9  ;;  %v1481_v47 = vrot.slane %v6512_v3, 5  ;;  %v1480_v34 = vrot.slane %v1478_v4, 4  ;;  %v7962_v42 = vld [vmem:[%s6747_s11 + $0x98] sm:$0x1] }
 0x10b   : > { %v3724_v56 = vrot.slane %v3723_v11, 4  ;;  %v7947_v28 = vrot.slane %v3774_v27, 5  ;;  %v8699_v53 = vshrl.u32 %v7492_v25, 16  ;;  %v5397_v10 = vcombine.low %v3705_v23, %v3715_v30  ;;  %v8703_v27 = vld [vmem:[#allocation11_spill] sm:$0xff] }
 0x10c   : > { %v3734_v12 = vrot.slane %v3733_v55, 4  ;;  %v3738_v50 = vrot.slane %v3736_v39, 5  ;;  %v3748_v19 = vrot.slane %v3747_v14, 4  ;;  %v3758_v43 = vrot.slane %v3757_v17, 4 }
 0x10d   : > { %v3780_v2 = vrot.slane %v8699_v53, 4  ;;  %v3762_v1 = vrot.slane %v3760_v60, 5  ;;  %v7951_v38 = vrot.slane %v3798_v46, 5  ;;  %v8700_v41 = vshrl.u32 %v8698_v52, 16 }
 0x10e   : > { %v3864_v29 = vshll.u32 %v7575_v18, 16  ;;  %v1479_v26 = vsel %vm7013_vm7, %v5212_v20, %v1478_v4  ;;  %v3771_v25 = vor.u32 %v8702_v21, %v8701_v62  ;;  %v3784_v49 = vshll.u32 %v7945_v61, 16  ;;  %v8710_v62 = vld [vmem:[#allocation15_spill] sm:$0xff] }
 0x10f   : > { %v3804_v24 = vrot.slane %v8700_v41, 4  ;;  %5886 = vmatmul.mubr.msk.bf16.gmra.mrb[24].mxu1 %vm830_vm3, %v5226_v32  ;;  %6040 = vmatmul.mubr.msk.bf16.gmra.mrb[8].mxu0 %vm830_vm3, %v5396_v40  ;;  %v1482_v59 = vsel %vm7013_vm7, %v1480_v34, %v1481_v47  ;;  %v3729_v54 = vsel %vm6777_vm4, %v3724_v56, %v7894_v57  ;;  %v3781_v4 = vor.u32 %v3780_v2, %v7947_v28  ;;  %v8704_v57 = vld [vmem:[#allocation12_spill] sm:$0xff]  ;;  %v6514_v56 = vld [vmem:[%s6747_s11 + $0x10] sm:$0xf] }
 0x110   : > { %v3822_v63 = vshll.u32 %v7543_v33, 16  ;;  %v3874_v8 = vshrl.u32 %v7586_v45, 16  ;;  %5889 = vmatprep.mubr.msk.bf16.mxu1 %vm830_vm3, %v5227_v37  ;;  %6043 = vmatprep.mubr.msk.bf16.mxu0 %vm830_vm3, %v5397_v10  ;;  %v3739_v32 = vsel %vm6777_vm4, %v3734_v12, %v3738_v50  ;;  %v3753_v11 = vsel %vm6777_vm4, %v3748_v19, %v7901_v16  ;;  %v6513_v34 = vld [vmem:[%s6747_s11 + $0xc] sm:$0xf]  ;;  %v8000_v10 = vld [vmem:[%s6747_s11 + $0xa4] sm:$0x1] }
 0x111   : > { %v3795_v23 = vor.u32 %v8704_v57, %v8703_v27  ;;  %v3763_v55 = vsel %vm6777_vm4, %v3758_v43, %v3762_v1  ;;  %v3805_v39 = vor.u32 %v3804_v24, %v7951_v38  ;;  %v3808_v51 = vshll.u32 %v7962_v42, 16 }
 0x112   : > { %v3846_v14 = vshll.u32 %v8705_v36, 16  ;;  %v8706_v30 = vshrl.u32 %v7575_v18, 16  ;;  %v5228_v60 = vcombine.low %v1479_v26, %v1482_v59  ;;  %v3772_v16 = vrot.slane %v3771_v25, 4  ;;  %v8709_v26 = vld [vmem:[#allocation14_spill] sm:$0xff]  ;;  %v8015_v25 = vld [vmem:[%s6747_s11 + $0xb0] sm:$0x1] }
 0x113   : > { %v3786_v52 = vrot.slane %v3784_v49, 5  ;;  %v5398_v46 = vcombine.low %v3729_v54, %v3739_v32  ;;  %v3782_v40 = vrot.slane %v3781_v4, 4  ;;  %v7992_v37 = vrot.slane %v3822_v63, 5  ;;  %v8711_v63 = vld [vmem:[#allocation16_spill] sm:$0xff]  ;;  %v8712_v32 = vld [vmem:[#allocation17_spill] sm:$0xff] }
 0x114   : > { %v7990_v17 = vrot.slane %v8706_v30, 4  ;;  %v8707_v20 = vshrl.u32 %v7543_v33, 16  ;;  %v3885_v47 = vshrl.u32 %v7622_v7, 16  ;;  %v5245_v53 = vcombine.low %v6513_v34, %v6514_v56  ;;  %v8047_v34 = vld [vmem:[%s6747_s11 + $0xbc] sm:$0x1] }
 0x115   : > { %v5399_v2 = vcombine.low %v3753_v11, %v3763_v55  ;;  %v3796_v18 = vrot.slane %v3795_v23, 4  ;;  %v3806_v12 = vrot.slane %v3805_v39, 4  ;;  %v3810_v50 = vrot.slane %v3808_v51, 5  ;;  %v6515_v39 = vld [vmem:[%s6747_s11 + $0x18] sm:$0xf] }
 0x116   : > { %v3828_v3 = vrot.slane %v8707_v20, 4  ;;  %v8002_v19 = vrot.slane %v3846_v14, 5  ;;  %v8708_v43 = vshrl.u32 %v8705_v36, 16  ;;  %v8006_v41 = vrot.slane %v3864_v29, 5  ;;  %v6516_v51 = vld [vmem:[%s6747_s11 + $0x1c] sm:$0xf] }
 0x117   : > { %v3888_v33 = vshll.u32 %v7622_v7, 16  ;;  %v3777_v24 = vsel %vm6777_vm4, %v3772_v16, %v7947_v28  ;;  %v3819_v21 = vor.u32 %v8710_v62, %v8709_v26  ;;  %5890 = vmatmul.mubr.msk.bf16.gmra.mrb[28].mxu1 %vm830_vm3, %v5228_v60  ;;  %6044 = vmatmul.mubr.msk.bf16.gmra.mrb[12].mxu0 %vm830_vm3, %v5398_v46  ;;  %v3787_v29 = vsel %vm6777_vm4, %v3782_v40, %v3786_v52  ;;  %v6517_v40 = vld [vmem:[%s6747_s11 + $0x24] sm:$0xf]  ;;  %v6518_v20 = vld [vmem:[%s6747_s11 + $0x28] sm:$0xf]  ;;  %v8713_v62 = vld [vmem:[#allocation5_spill] sm:$0xff] }
 0x118   : > { %v3852_v1 = vrot.slane %v8708_v43, 4  ;;  %v3829_v7 = vor.u32 %v3828_v3, %v7992_v37  ;;  %v3832_v49 = vshll.u32 %v8000_v10, 16  ;;  %v3870_v28 = vshll.u32 %v7586_v45, 16  ;;  %5895 = vmatprep.mubr.msk.bf16.mxu1 %vm830_vm3, %v5245_v53  ;;  %6047 = vmatprep.mubr.msk.bf16.mxu0 %vm830_vm3, %v5399_v2 }
 0x119   : > { %v8024_v59 = vrot.slane %v3885_v47, 4  ;;  %v3898_v54 = vshrl.u32 %v7635_v0, 16  ;;  %v3801_v4 = vsel %vm6777_vm4, %v3796_v18, %v7951_v38  ;;  %v3843_v11 = vor.u32 %v8712_v32, %v8711_v63 }
 0x11a   : > { %v3811_v27 = vsel %vm6777_vm4, %v3806_v12, %v3810_v50  ;;  %v3853_v45 = vor.u32 %v3852_v1, %v8002_v19  ;;  %v3856_v57 = vshll.u32 %v8015_v25, 16  ;;  %v3894_v23 = vshll.u32 %v7635_v0, 16  ;;  %v8059_v1 = vld [vmem:[%s6747_s11 + $0xc8] sm:$0x1] }
 0x11b   : > { %v3890_v55 = vrot.slane %v3888_v33, 5  ;;  %v5246_v36 = vcombine.low %v6515_v39, %v6516_v51  ;;  %v5400_v38 = vcombine.low %v3777_v24, %v3787_v29  ;;  %v3820_v14 = vrot.slane %v3819_v21, 4 }
 0x11c   : > { %v3830_v30 = vrot.slane %v3829_v7, 4  ;;  %v3834_v60 = vrot.slane %v3832_v49, 5  ;;  %v8041_v16 = vrot.slane %v3870_v28, 5  ;;  %v3876_v52 = vrot.slane %v3874_v8, 4  ;;  %v6519_v49 = vld [vmem:[%s6747_s11 + $0x30] sm:$0xf] }
 0x11d   : > { %v3909_v46 = vshrl.u32 %v7674_v58, 16  ;;  %v5247_v3 = vcombine.low %v6517_v40, %v6518_v20  ;;  %v5401_v47 = vcombine.low %v3801_v4, %v3811_v27  ;;  %v3844_v0 = vrot.slane %v3843_v11, 4  ;;  %v6520_v28 = vld [vmem:[%s6747_s11 + $0x34] sm:$0xf]  ;;  %v6524_v20 = vld [vmem:[%s6747_s11 + $0x48] sm:$0xf] }
 0x11e   : > { %v3854_v56 = vrot.slane %v3853_v45, 4  ;;  %v3858_v53 = vrot.slane %v3856_v57, 5  ;;  %v8049_v2 = vrot.slane %v3894_v23, 5  ;;  %v3900_v18 = vrot.slane %v3898_v54, 4  ;;  %v6521_v45 = vld [vmem:[%s6747_s11 + $0x3c] sm:$0xf] }
 0x11f   : > { %v3912_v12 = vshll.u32 %v7674_v58, 16  ;;  %v3922_v50 = vshrl.u32 %v7677_v22, 16  ;;  %v3825_v8 = vsel %vm6777_vm4, %v3820_v14, %v7992_v37  ;;  %v3867_v43 = vor.u32 %v8006_v41, %v7990_v17  ;;  %5896 = vmatmul.mubr.msk.bf16.vlgmr.msra.gmra.mrb[0].mxu1 %vm830_vm3, %v5246_v36  ;;  %6048 = vmatmul.mubr.msk.bf16.gmra.mrb[16].mxu0 %vm830_vm3, %v5400_v38  ;;  %v6522_v57 = vld [vmem:[%s6747_s11 + $0x40] sm:$0xf] }
 0x120   : > { %v3835_v58 = vsel %vm6777_vm4, %v3830_v30, %v3834_v60  ;;  %v3877_v33 = vor.u32 %v3876_v52, %v8041_v16  ;;  %v3880_v24 = vshll.u32 %v8047_v34, 16  ;;  %v3918_v37 = vshll.u32 %v7677_v22, 16  ;;  %6098 = vmatpush3.bf16.msra.mxu1 %v8713_v62  ;;  %5899 = vmatprep.mubr.msk.bf16.mxu1 %vm830_vm3, %v5247_v3  ;;  %v6525_v3 = vld [vmem:[%s6747_s11 + $0x4c] sm:$0xf] }
 0x121   : > { %v3911_v26 = vrot.slane %v3909_v46, 4  ;;  %v3849_v17 = vsel %vm6777_vm4, %v3844_v0, %v8002_v19  ;;  %6051 = vmatprep.mubr.msk.bf16.mxu0 %vm830_vm3, %v5401_v47  ;;  %v3859_v41 = vsel %vm6777_vm4, %v3854_v56, %v3858_v53  ;;  %v3891_v21 = vor.u32 %v3890_v55, %v8024_v59  ;;  %v8086_v55 = vld [vmem:[%s6747_s11 + $0xd4] sm:$0x1]  ;;  %v6523_v46 = vld [vmem:[%s6747_s11 + $0x1c] sm:$0xf] }
 0x122   : > { %v3901_v22 = vor.u32 %v3900_v18, %v8049_v2  ;;  %v3904_v29 = vshll.u32 %v8059_v1, 16  ;;  %v3914_v7 = vrot.slane %v3912_v12, 5  ;;  %v5248_v54 = vcombine.low %v6519_v49, %v6520_v28  ;;  %v8109_v53 = vld [vmem:[%s6747_s11 + $0x78] sm:$0xf]  ;;  %v6526_v12 = vld [vmem:[%s6747_s11 + $0x54] sm:$0xf] }
 0x123   : > { %v5402_v4 = vcombine.low %v3825_v8, %v3835_v58  ;;  %v3868_v19 = vrot.slane %v3867_v43, 4  ;;  %v3878_v63 = vrot.slane %v3877_v33, 4  ;;  %v3882_v32 = vrot.slane %v3880_v24, 5  ;;  %v6530_v28 = vld [vmem:[%s6747_s11 + $0x80] sm:$0x1] }
 0x124   : > { %v8081_v11 = vrot.slane %v3918_v37, 5  ;;  %v3924_v27 = vrot.slane %v3922_v50, 4  ;;  %v5249_v59 = vcombine.low %v6521_v45, %v6522_v57  ;;  %v5403_v23 = vcombine.low %v3849_v17, %v3859_v41  ;;  %v6527_v50 = vld [vmem:[%s6747_s11 + $0x58] sm:$0xf]  ;;  %v5117_v41 = vld [vmem:[%s6747_s11 + $0x24] sm:$0xe] }
 0x125   : > { %v3892_v39 = vrot.slane %v3891_v21, 4  ;;  %v3902_v51 = vrot.slane %v3901_v22, 4  ;;  %v3906_v36 = vrot.slane %v3904_v29, 5  ;;  %v3873_v38 = vsel %vm6777_vm4, %v3868_v19, %v8041_v16  ;;  %v5116_v16 = vld [vmem:[%s6747_s11 + $0x18] sm:$0xe] }
 0x126   : > { %v3883_v14 = vsel %vm6777_vm4, %v3878_v63, %v3882_v32  ;;  %v3915_v30 = vor.u32 %v3914_v7, %v3911_v26  ;;  %v3925_v60 = vor.u32 %v3924_v27, %v8081_v11  ;;  %v3928_v52 = vshll.u32 %v8086_v55, 16  ;;  %v6528_v21 = vld [vmem:[%s6747_s11 + $0x28] sm:$0xf]  ;;  %v8119_v29 = vld [vmem:[%s6747_s11 + $0x7c] sm:$0xf] }
 0x127   : > { %5900 = vmatmul.mubr.msk.bf16.gmra.mrb[4].mxu1 %vm830_vm3, %v5248_v54  ;;  %6052 = vmatmul.mubr.msk.bf16.gmra.mrb[20].mxu0 %vm830_vm3, %v5402_v4  ;;  %v4263_v40 = vrot.slane %v6523_v46, 5  ;;  %v5250_v47 = vcombine.low %v6524_v20, %v6525_v3  ;;  %v3897_v0 = vsel %vm6777_vm4, %v3892_v39, %v8049_v2  ;;  %v3907_v56 = vsel %vm6777_vm4, %v3902_v51, %v3906_v36  ;;  %v5020_v4 = vld [vmem:[%s6747_s11 + $0x6c] sm:$0xf]  ;;  %v8714_v39 = vld [vmem:[#allocation18_spill] sm:$0xff]  ;;  %v6531_v51 = vld [vmem:[%s6747_s11 + $0x34] sm:$0xf] }
 0x128   : > { %5903 = vmatprep.mubr.msk.bf16.mxu1 %vm830_vm3, %v5249_v59  ;;  %6055 = vmatprep.mubr.msk.bf16.mxu0 %vm830_vm3, %v5403_v23  ;;  %v5404_v18 = vcombine.low %v3873_v38, %v3883_v14  ;;  %v5251_v8 = vcombine.low %v6526_v12, %v6527_v50  ;;  %v2322_v43 = vshrl.u32 %v8109_v53, 16  ;;  %v2325_v58 = vshll.u32 %v8109_v53, 16  ;;  %v6533_v46 = vld [vmem:[%s6747_s11 + $0x64] sm:$0xf]  ;;  %v8150_v20 = vld [vmem:[%s6747_s11 + $0x70] sm:$0xf] }
 0x129   : > { %v3916_v33 = vrot.slane %v3915_v30, 4  ;;  %v3926_v2 = vrot.slane %v3925_v60, 4  ;;  %v3930_v24 = vrot.slane %v3928_v52, 5  ;;  %v5424_v37 = vrot.slane %v5116_v16, 9  ;;  %v5118_v52 = vld [vmem:[%s6747_s11 + $0x30] sm:$0xe] }
 0x12a   : > { %v5405_v26 = vcombine.low %v3897_v0, %v3907_v56  ;;  %v4265_v62 = vrot.slane %v4263_v40, 4  ;;  %v4266_v17 = vrot.slane %v7644_v48, 5  ;;  %v4270_v22 = vrot.slane %v6528_v21, 5  ;;  %v6532_v16 = vld [vmem:[%s6747_s11 + $0x60] sm:$0xf] }
 0x12b   : > { %v2331_v7 = vshll.u32 %v8119_v29, 16  ;;  %v2335_v49 = vshrl.u32 %v8119_v29, 16  ;;  %v2341_v54 = vshll.u32 %v6530_v28, 16  ;;  %v2298_v19 = vshrl.u32 %v5020_v4, 16  ;;  %v8156_v56 = vld [vmem:[%s6747_s11 + $0x84] sm:$0xf] }
 0x12c   : > { %v2324_v63 = vrot.slane %v2322_v43, 4  ;;  %v2327_v32 = vrot.slane %v2325_v58, 5  ;;  %v3921_v48 = vsel %vm6777_vm4, %v3916_v33, %v8081_v11  ;;  %v3931_v27 = vsel %vm6777_vm4, %v3926_v2, %v3930_v24  ;;  %v8164_v43 = vld [vmem:[%s6747_s11 + $0x90] sm:$0xf]  ;;  %v8715_v24 = vld [vmem:[#allocation19_spill] sm:$0xff] }
 0x12d   : > { %v4264_v45 = vsel %vm7013_vm7, %v5424_v37, %v4263_v40  ;;  %v5425_v57 = vrot.slane %v5117_v41, 9  ;;  %v4267_v59 = vsel %vm7013_vm7, %v4265_v62, %v4266_v17  ;;  %v4272_v23 = vrot.slane %v4270_v22, 4  ;;  %v5119_v41 = vld [vmem:[%s6747_s11 + $0x3c] sm:$0xe]  ;;  %v6535_v21 = vld [vmem:[%s6747_s11 + $0x40] sm:$0xf] }
 0x12e   : > { %v4273_v11 = vrot.slane %v8714_v39, 5  ;;  %v4277_v36 = vrot.slane %v6531_v51, 5  ;;  %v8140_v38 = vrot.slane %v2331_v7, 5  ;;  %v8142_v14 = vrot.slane %v2335_v49, 4  ;;  %v8179_v49 = vld [vmem:[%s6747_s11 + $0x88] sm:$0xf] }
 0x12f   : > { %5904 = vmatmul.mubr.msk.bf16.gmra.mrb[8].mxu1 %vm830_vm3, %v5250_v47  ;;  %6056 = vmatmul.mubr.msk.bf16.gmra.mrb[24].mxu0 %vm830_vm3, %v5404_v18  ;;  %v8144_v30 = vrot.slane %v2341_v54, 5  ;;  %v2301_v60 = vshll.u32 %v5020_v4, 16  ;;  %v5252_v40 = vcombine.low %v6532_v16, %v6533_v46  ;;  %v5253_v3 = vcombine.low %v5020_v4, %v8150_v20  ;;  %v8184_v54 = vld [vmem:[%s6747_s11 + $0x94] sm:$0xf]  ;;  %v8211_v16 = vld [vmem:[%s6747_s11 + $0xa0] sm:$0xf] }
 0x130   : > { %5907 = vmatprep.mubr.msk.bf16.mxu1 %vm830_vm3, %v5251_v8  ;;  %6059 = vmatprep.mubr.msk.bf16.mxu0 %vm830_vm3, %v5405_v26  ;;  %v8153_v47 = vrot.slane %v2298_v19, 4  ;;  %v2328_v0 = vor.u32 %v2327_v32, %v2324_v63  ;;  %v5406_v18 = vcombine.low %v3921_v48, %v3931_v27  ;;  %v5440_v12 = vcombine.low %v4264_v45, %v4267_v59  ;;  %v5120_v19 = vld [vmem:[%s6747_s11 + $0x48] sm:$0xe]  ;;  %v8198_v45 = vld [vmem:[%s6747_s11 + $0x9c] sm:$0xf] }
 0x131   : > { %v8160_v50 = vsel %vm7013_vm7, %v5425_v57, %v4270_v22  ;;  %v2346_v8 = vshrl.u32 %v8156_v56, 16  ;;  %v4274_v58 = vsel %vm7013_vm7, %v4272_v23, %v4273_v11  ;;  %v5426_v33 = vrot.slane %v5118_v52, 9 }
 0x132   : > { %v4279_v2 = vrot.slane %v4277_v36, 4  ;;  %v4280_v37 = vrot.slane %v8715_v24, 5  ;;  %v8169_v26 = vrot.slane %v2301_v60, 5  ;;  %v5254_v62 = vcombine.low %v8109_v53, %v8119_v29  ;;  %v6538_v53 = vld [vmem:[%s6747_s11 + $0x4c] sm:$0xf] }
 0x133   : > { %v2349_v17 = vshll.u32 %v8156_v56, 16  ;;  %v4284_v22 = vrot.slane %v6535_v21, 5  ;;  %v8176_v7 = vrot.slane %v2328_v0, 4  ;;  %v5255_v28 = vcombine.low %v8156_v56, %v8179_v49  ;;  %v6540_v0 = vld [vmem:[%s6747_s11 + $0x58] sm:$0xf] }
 0x134   : > { %v5256_v4 = vcombine.low %v8164_v43, %v8184_v54  ;;  %v4291_v29 = vrot.slane %v6538_v53, 5  ;;  %v5441_v63 = vcombine.low %v8160_v50, %v4274_v58  ;;  %v8193_v32 = vrot.slane %v2346_v8, 4  ;;  %v8224_v8 = vld [vmem:[%s6747_s11 + $0xa8] sm:$0xf] }
 0x135   : > { %v2370_v48 = vshrl.u32 %v8164_v43, 16  ;;  %v2373_v27 = vshll.u32 %v8164_v43, 16  ;;  %v4278_v57 = vsel %vm7013_vm7, %v5426_v33, %v4277_v36  ;;  %v4281_v59 = vsel %vm7013_vm7, %v4279_v2, %v4280_v37 }
 0x136   : > { %v5427_v23 = vrot.slane %v5119_v41, 9  ;;  %v2394_v39 = vshrl.u32 %v8198_v45, 16  ;;  %v8207_v11 = vrot.slane %v2349_v17, 5  ;;  %v4286_v51 = vrot.slane %v4284_v22, 4 }
 0x137   : > { %5908 = vmatmul.mubr.msk.bf16.gmra.mrb[12].mxu1 %vm830_vm3, %v5252_v40  ;;  %6060 = vmatmul.mubr.msk.bf16.gmra.mrb[28].mxu0 %vm830_vm3, %v5406_v18  ;;  %v4287_v60 = vrot.slane %v7762_v9, 5  ;;  %v5428_v52 = vrot.slane %v5120_v19, 9  ;;  %v5257_v46 = vcombine.low %v8198_v45, %v8211_v16  ;;  %v4293_v40 = vrot.slane %v4291_v29, 4  ;;  %v8242_v19 = vld [vmem:[%s6747_s11 + $0xb4] sm:$0xf] }
 0x138   : > { %5911 = vmatprep.mubr.msk.bf16.mxu1 %vm830_vm3, %v5253_v3  ;;  %6065 = vmatprep.mubr.msk.bf16.mxu0 %vm830_vm3, %v5440_v12  ;;  %v4294_v36 = vrot.slane %v7783_v6, 5  ;;  %v5121_v3 = vld [vmem:[%s6747_s11 + $0x54] sm:$0xe]  ;;  %v4298_v56 = vrot.slane %v6540_v0, 5  ;;  %v5442_v18 = vcombine.low %v4278_v57, %v4281_v59  ;;  %v8218_v12 = vrot.slane %v2370_v48, 4 }
 0x139   : > { %v8220_v50 = vrot.slane %v2373_v27, 5  ;;  %v2397_v9 = vshll.u32 %v8198_v45, 16  ;;  %v4285_v58 = vsel %vm7013_vm7, %v5427_v23, %v4284_v22  ;;  %v8228_v33 = vrot.slane %v2394_v39, 4  ;;  %v8251_v27 = vld [vmem:[%s6747_s11 + $0xac] sm:$0xf] }
 0x13a   : > { %v2418_v6 = vshrl.u32 %v8224_v8, 16  ;;  %v2421_v2 = vshll.u32 %v8224_v8, 16  ;;  %v4288_v24 = vsel %vm7013_vm7, %v4286_v51, %v4287_v60  ;;  %v8236_v37 = vsel %vm7013_vm7, %v5428_v52, %v4291_v29  ;;  %v5122_v59 = vld [vmem:[%s6747_s11 + $0x60] sm:$0xe]  ;;  %v6542_v23 = vld [vmem:[%s6747_s11 + $0x64] sm:$0xf] }
 0x13b   : > { %v5429_v17 = vrot.slane %v5121_v3, 9  ;;  %v4301_v41 = vrot.slane %v7846_v5, 5  ;;  %v4295_v21 = vsel %vm7013_vm7, %v4293_v40, %v4294_v36  ;;  %v4300_v22 = vrot.slane %v4298_v56, 4  ;;  %v8271_v40 = vld [vmem:[%s6747_s11 + $0xb8] sm:$0xf] }
 0x13c   : > { %v2307_v53 = vshll.u32 %v8150_v20, 16  ;;  %v2311_v48 = vshrl.u32 %v8150_v20, 16  ;;  %v8248_v29 = vrot.slane %v2397_v9, 5  ;;  %v2442_v57 = vshrl.u32 %v8242_v19, 16  ;;  %v8276_v36 = vld [vmem:[%s6747_s11 + $0xc0] sm:$0xf] }
 0x13d   : > { %v4305_v20 = vrot.slane %v6542_v23, 5  ;;  %v8262_v39 = vrot.slane %v2421_v2, 5  ;;  %v2445_v51 = vshll.u32 %v8242_v19, 16  ;;  %v5444_v60 = vcombine.low %v8236_v37, %v4295_v21  ;;  %v5123_v3 = vld [vmem:[%s6747_s11 + $0x6c] sm:$0xe] }
 0x13e   : > { %v8268_v52 = vsel %vm7013_vm7, %v5429_v17, %v4298_v56  ;;  %v6544_v0 = vld [vmem:[%s6747_s11 + $0x70] sm:$0xf]  ;;  %v8282_v9 = vsel %vm7013_vm7, %v4300_v22, %v4301_v41  ;;  %v2313_v56 = vrot.slane %v2311_v48, 4  ;;  %v8286_v2 = vrot.slane %v2442_v57, 4  ;;  %v8293_v23 = vld [vmem:[%s6747_s11 + $0xc4] sm:$0xf] }
 0x13f   : > { %5912 = vmatmul.mubr.msk.bf16.gmra.mrb[16].mxu1 %vm830_vm3, %v5254_v62  ;;  %6066 = vmatmul.mubr.msk.bf16.vlgmr.msra.gmra.mrb[0].mxu0 %vm830_vm3, %v5441_v63  ;;  %v5443_v62 = vcombine.low %v4285_v58, %v4288_v24  ;;  %v8260_v63 = vrot.slane %v2418_v6, 4  ;;  %v5430_v58 = vrot.slane %v5122_v59, 9  ;;  %v8284_v6 = vrot.slane %v2307_v53, 5  ;;  %v6546_v59 = vld [vmem:[%s6747_s11 + $0x74] sm:$0x1] }
 0x140   : > { %5915 = vmatprep.mubr.msk.bf16.mxu1 %vm830_vm3, %v5255_v28  ;;  %6069 = vmatprep.mubr.msk.bf16.mxu0 %vm830_vm3, %v5442_v18  ;;  %v4312_v18 = vrot.slane %v6544_v0, 5  ;;  %v4307_v24 = vrot.slane %v4305_v20, 4  ;;  %v4308_v37 = vrot.slane %v7858_v44, 5  ;;  %v2466_v17 = vshrl.u32 %v8276_v36, 16  ;;  %v5124_v41 = vld [vmem:[%s6747_s11 + $0x78] sm:$0xe] }
 0x141   : > { %v8290_v21 = vrot.slane %v2445_v51, 5  ;;  %v5431_v22 = vrot.slane %v5123_v3, 9  ;;  %v2304_v53 = vor.u32 %v8169_v26, %v8153_v47  ;;  %v5445_v48 = vcombine.low %v8268_v52, %v8282_v9  ;;  %v6547_v3 = vld [vmem:[%s6747_s11 + $0x7c] sm:$0xf]  ;;  %v5125_v52 = vld [vmem:[%s6747_s11 + $0x84] sm:$0xe] }
 0x142   : > { %v4314_v57 = vrot.slane %v4312_v18, 4  ;;  %v4315_v44 = vrot.slane %v7899_v31, 5  ;;  %v2317_v51 = vshll.u32 %v6546_v59, 16  ;;  %v4306_v0 = vsel %vm7013_vm7, %v5430_v58, %v4305_v20  ;;  %v6548_v9 = vld [vmem:[%s6747_s11 + $0x88] sm:$0xf] }
 0x143   : > { %v2314_v28 = vor.u32 %v2313_v56, %v8284_v6  ;;  %v4319_v5 = vrot.slane %v6547_v3, 5  ;;  %v2338_v47 = vor.u32 %v8142_v14, %v8140_v38  ;;  %v4309_v31 = vsel %vm7013_vm7, %v4307_v24, %v4308_v37 }
 0x144   : > { %v8317_v26 = vrot.slane %v2466_v17, 4  ;;  %v2469_v20 = vshll.u32 %v8276_v36, 16  ;;  %v4326_v58 = vrot.slane %v6548_v9, 5  ;;  %v8329_v14 = vsel %vm7013_vm7, %v5431_v22, %v4312_v18 }
 0x145   : > { %v2305_v43 = vrot.slane %v2304_v53, 4  ;;  %v8335_v56 = vsel %vm7013_vm7, %v4314_v57, %v4315_v44  ;;  %v2319_v24 = vrot.slane %v2317_v51, 5  ;;  %v5432_v37 = vrot.slane %v5124_v41, 9 }
 0x146   : > { %v4322_v45 = vrot.slane %v7914_v13, 5  ;;  %v4321_v17 = vrot.slane %v4319_v5, 4  ;;  %v5433_v59 = vrot.slane %v5125_v52, 9  ;;  %v4328_v3 = vrot.slane %v4326_v58, 4 }
 0x147   : > { %5916 = vmatmul.mubr.msk.bf16.gmra.mrb[20].mxu1 %vm830_vm3, %v5256_v4  ;;  %6070 = vmatmul.mubr.msk.bf16.gmra.mrb[4].mxu0 %vm830_vm3, %v5443_v62  ;;  %v2355_v4 = vshll.u32 %v8179_v49, 16  ;;  %v2359_v62 = vshrl.u32 %v8179_v49, 16  ;;  %v4329_v18 = vrot.slane %v7945_v61, 5  ;;  %v2379_v22 = vshll.u32 %v8184_v54, 16 }
 0x148   : > { %5919 = vmatprep.mubr.msk.bf16.mxu1 %vm830_vm3, %v5257_v46  ;;  %6073 = vmatprep.mubr.msk.bf16.mxu0 %vm830_vm3, %v5444_v60  ;;  %v2315_v46 = vrot.slane %v2314_v28, 4  ;;  %v2339_v60 = vrot.slane %v2338_v47, 4  ;;  %v2383_v49 = vshrl.u32 %v8184_v54, 16  ;;  %v5446_v53 = vcombine.low %v4306_v0, %v4309_v31  ;;  %v5126_v47 = vld [vmem:[%s6747_s11 + $0x90] sm:$0xe] }
 0x149   : > { %v5447_v57 = vcombine.low %v8329_v14, %v8335_v56  ;;  %v8343_v41 = vrot.slane %v2355_v4, 5  ;;  %v2361_v13 = vrot.slane %v2359_v62, 4  ;;  %v2310_v28 = vsel %vm6777_vm4, %v2305_v43, %v8284_v6 }
 0x14a   : > { %v4320_v44 = vsel %vm7013_vm7, %v5432_v37, %v4319_v5  ;;  %v2334_v61 = vsel %vm6777_vm4, %v8176_v7, %v8140_v38  ;;  %v2352_v54 = vor.u32 %v8207_v11, %v8193_v32  ;;  %v2320_v51 = vsel %vm6777_vm4, %v2315_v46, %v2319_v24  ;;  %v6549_v32 = vld [vmem:[%s6747_s11 + $0x8c] sm:$0x1]  ;;  %v6551_v37 = vld [vmem:[%s6747_s11 + $0x98] sm:$0x1]  ;;  %v5127_v46 = vld [vmem:[%s6747_s11 + $0x9c] sm:$0xe] }
 0x14b   : > { %v4323_v0 = vsel %vm7013_vm7, %v4321_v17, %v4322_v45  ;;  %v2344_v6 = vsel %vm6777_vm4, %v2339_v60, %v8144_v30  ;;  %v8365_v5 = vsel %vm7013_vm7, %v5433_v59, %v4326_v58  ;;  %v8716_v38 = vcombine.low %v8224_v8, %v8251_v27  ;;  %v6552_v17 = vld [vmem:[%s6747_s11 + $0xa0] sm:$0xf] }
 0x14c   : > { %v8375_v7 = vsel %vm7013_vm7, %v4328_v3, %v4329_v18  ;;  %v2365_v11 = vshll.u32 %v6549_v32, 16  ;;  %v8378_v30 = vrot.slane %v2379_v22, 5  ;;  %v2385_v31 = vrot.slane %v2383_v49, 4 }
 0x14d   : > { %v8717_v52 = vcombine.low %v8242_v19, %v8271_v40  ;;  %v2362_v8 = vor.u32 %v2361_v13, %v8343_v41  ;;  %v2403_v58 = vshll.u32 %v8211_v16, 16  ;;  %v2407_v14 = vshrl.u32 %v8211_v16, 16 }
 0x14e   : > { %v5448_v43 = vcombine.low %v4320_v44, %v4323_v0  ;;  %v2353_v4 = vrot.slane %v2352_v54, 4  ;;  %v5434_v62 = vrot.slane %v5126_v47, 9  ;;  %v2376_v19 = vor.u32 %v8220_v50, %v8218_v12 }
 0x14f   : > { %5920 = vmatmul.mubr.msk.bf16.gmra.mrb[24].mxu1 %vm830_vm3, %v8716_v38  ;;  %6074 = vmatmul.mubr.msk.bf16.gmra.mrb[8].mxu0 %vm830_vm3, %v5445_v48  ;;  %v6550_v48 = vld [vmem:[%s6747_s11 + $0x94] sm:$0xf]  ;;  %v5286_v56 = vcombine.low %v2310_v28, %v2320_v51  ;;  %v8391_v24 = vcombine.low %v2334_v61, %v2344_v6  ;;  %v2389_v45 = vshll.u32 %v6551_v37, 16  ;;  %v4340_v60 = vrot.slane %v6552_v17, 5  ;;  %v5128_v6 = vld [vmem:[%s6747_s11 + $0xa8] sm:$0xe] }
 0x150   : > { %5923 = vmatprep.mubr.msk.bf16.mxu1 %vm830_vm3, %v8717_v52  ;;  %6077 = vmatprep.mubr.msk.bf16.mxu0 %vm830_vm3, %v5446_v53  ;;  %v4333_v9 = vrot.slane %v6550_v48, 5  ;;  %v5449_v59 = vcombine.low %v8365_v5, %v8375_v7  ;;  %v2367_v3 = vrot.slane %v2365_v11, 5  ;;  %v4336_v16 = vrot.slane %v7962_v42, 5  ;;  %v6553_v5 = vld [vmem:[%s6747_s11 + $0xac] sm:$0xf] }
 0x151   : > { %v2386_v18 = vor.u32 %v2385_v31, %v8378_v30  ;;  %v2363_v22 = vrot.slane %v2362_v8, 4  ;;  %v8400_v50 = vrot.slane %v2403_v58, 5  ;;  %v2409_v49 = vrot.slane %v2407_v14, 4 }
 0x152   : > { %v4335_v12 = vrot.slane %v4333_v9, 4  ;;  %v2358_v53 = vsel %vm6777_vm4, %v2353_v4, %v8343_v41  ;;  %v4334_v13 = vsel %vm7013_vm7, %v5434_v62, %v4333_v9  ;;  %v2377_v28 = vrot.slane %v2376_v19, 4 }
 0x153   : > { %v5435_v44 = vrot.slane %v5127_v46, 9  ;;  %v2391_v61 = vrot.slane %v2389_v45, 5  ;;  %v4342_v42 = vrot.slane %v4340_v60, 4  ;;  %v4343_v54 = vrot.slane %v8000_v10, 5 }
 0x154   : > { %v2400_v51 = vor.u32 %v8248_v29, %v8228_v33  ;;  %v8718_v0 = vcombine.low %v8276_v36, %v8293_v23  ;;  %v2387_v41 = vrot.slane %v2386_v18, 4  ;;  %v4347_v47 = vrot.slane %v6553_v5, 5  ;;  %v5129_v36 = vld [vmem:[%s6747_s11 + $0xb4] sm:$0xe] }
 0x155   : > { %v2427_v38 = vshll.u32 %v8251_v27, 16  ;;  %v2431_v7 = vshrl.u32 %v8251_v27, 16  ;;  %v2368_v10 = vsel %vm6777_vm4, %v2363_v22, %v2367_v3  ;;  %v4337_v33 = vsel %vm7013_vm7, %v4335_v12, %v4336_v16  ;;  %v6555_v16 = vld [vmem:[%s6747_s11 + $0xb0] sm:$0x1] }
 0x156   : > { %v2410_v29 = vor.u32 %v2409_v49, %v8400_v50  ;;  %v2382_v11 = vsel %vm6777_vm4, %v2377_v28, %v8378_v30  ;;  %v8432_v27 = vsel %vm7013_vm7, %v5435_v44, %v4340_v60  ;;  %v2451_v31 = vshll.u32 %v8271_v40, 16  ;;  %v6556_v49 = vld [vmem:[%s6747_s11 + $0xb8] sm:$0xf] }
 0x157   : > { %5924 = vmatmul.mubr.msk.bf16.gmra.mrb[28].mxu1 %vm830_vm3, %v8718_v0  ;;  %6078 = vmatmul.mubr.msk.bf16.gmra.mrb[12].mxu0 %vm830_vm3, %v5447_v57  ;;  %v6554_v57 = vld [vmem:[%s6747_s11 + $0xa4] sm:$0x1]  ;;  %v2455_v52 = vshrl.u32 %v8271_v40, 16  ;;  %v4344_v8 = vsel %vm7013_vm7, %v4342_v42, %v4343_v54  ;;  %v2401_v48 = vrot.slane %v2400_v51, 4  ;;  %v5436_v9 = vrot.slane %v5128_v6, 9 }
 0x158   : > { %5945 = vmatprep.mubr.msk.bf16.mxu1 %vm830_vm3, %v5286_v56  ;;  %6081 = vmatprep.mubr.msk.bf16.mxu0 %vm830_vm3, %v5448_v43  ;;  %v2413_v32 = vshll.u32 %v6554_v57, 16  ;;  %v4350_v58 = vrot.slane %v8015_v25, 5  ;;  %v2392_v14 = vsel %vm6777_vm4, %v2387_v41, %v2391_v61  ;;  %v4349_v30 = vrot.slane %v4347_v47, 4  ;;  %v6558_v42 = vld [vmem:[%s6747_s11 + $0xbc] sm:$0x1] }
 0x159   : > { %v8441_v43 = vrot.slane %v2427_v38, 5  ;;  %v2433_v4 = vrot.slane %v2431_v7, 4  ;;  %v5288_v62 = vcombine.low %v2358_v53, %v2368_v10  ;;  %v5450_v19 = vcombine.low %v4334_v13, %v4337_v33 }
 0x15a   : > { %v2411_v56 = vrot.slane %v2410_v29, 4  ;;  %v2415_v40 = vrot.slane %v2413_v32, 5  ;;  %v8445_v37 = vrot.slane %v2469_v20, 5  ;;  %v5451_v25 = vcombine.low %v8432_v27, %v4344_v8 }
 0x15b   : > { %v8448_v45 = vrot.slane %v2451_v31, 5  ;;  %v2457_v46 = vrot.slane %v2455_v52, 4  ;;  %v5289_v17 = vcombine.low %v2382_v11, %v2392_v14  ;;  %v4348_v60 = vsel %vm7013_vm7, %v5436_v9, %v4347_v47  ;;  %v6559_v31 = vld [vmem:[%s6747_s11 + $0xc8] sm:$0x1]  ;;  %v6560_v14 = vld [vmem:[%s6747_s11 + $0xd0] sm:$0xf] }
 0x15c   : > { %v2424_v3 = vor.u32 %v8262_v39, %v8260_v63  ;;  %v2437_v18 = vshll.u32 %v6555_v16, 16  ;;  %v2406_v20 = vsel %vm6777_vm4, %v2401_v48, %v8400_v50  ;;  %v4351_v22 = vsel %vm7013_vm7, %v4349_v30, %v4350_v58  ;;  %v5131_v58 = vld [vmem:[%s6747_s11 + $0xcc] sm:$0xe] }
 0x15d   : > { %v2434_v12 = vor.u32 %v2433_v4, %v8441_v43  ;;  %v4354_v63 = vrot.slane %v6556_v49, 5  ;;  %v2416_v39 = vsel %vm6777_vm4, %v2411_v56, %v2415_v40  ;;  %v2475_v50 = vshll.u32 %v8293_v23, 16 }
 0x15e   : > { %v2479_v13 = vshrl.u32 %v8293_v23, 16  ;;  %v5437_v28 = vrot.slane %v5129_v36, 9  ;;  %v2448_v44 = vor.u32 %v8290_v21, %v8286_v2  ;;  %v2458_v61 = vor.u32 %v2457_v46, %v8448_v45 }
 0x15f   : > { %5946 = vmatmul.mubr.msk.bf16.vlgmr.msra.gmra.mrb[16].mxu1 %vm830_vm3, %v8391_v24  ;;  %6082 = vmatmul.mubr.msk.bf16.gmra.mrb[16].mxu0 %vm830_vm3, %v5449_v59  ;;  %v5130_v24 = vld [vmem:[%s6747_s11 + $0xc0] sm:$0xe]  ;;  %v6557_v59 = vld [vmem:[%s6747_s11 + $0xc4] sm:$0xf]  ;;  %v2461_v54 = vshll.u32 %v6558_v42, 16  ;;  %v5452_v51 = vcombine.low %v4348_v60, %v4351_v22  ;;  %v2425_v0 = vrot.slane %v2424_v3, 4  ;;  %v5290_v5 = vcombine.low %v2406_v20, %v2416_v39 }
 0x160   : > { %5949 = vmatprep.mubr.msk.bf16.mxu1 %vm830_vm3, %v5288_v62  ;;  %6085 = vmatprep.mubr.msk.bf16.mxu0 %vm830_vm3, %v5450_v19  ;;  %v4361_v53 = vrot.slane %v6557_v59, 5  ;;  %v2439_v41 = vrot.slane %v2437_v18, 5  ;;  %v4357_v6 = vrot.slane %v8047_v34, 5  ;;  %v2435_v47 = vrot.slane %v2434_v12, 4  ;;  %s175_s11 = sand.u32 1, %s6623_s13  }
 0x161   : > { %v4356_v38 = vrot.slane %v4354_v63, 4  ;;  %v5438_v7 = vrot.slane %v5130_v24, 9  ;;  %v4364_v23 = vrot.slane %v8059_v1, 5  ;;  %v2477_v33 = vrot.slane %v2475_v50, 5  ;;  %s5002_s18 = sshll.u32 %s175_s11, 7  ;;  %s8603_s15 = scalar_lea.sflag [#allocation3], %s175_s11 }
 0x162   : > { %v4363_v10 = vrot.slane %v4361_v53, 4  ;;  %v2481_v29 = vrot.slane %v2479_v13, 4  ;;  %v2449_v2 = vrot.slane %v2448_v44, 4  ;;  %v2459_v21 = vrot.slane %v2458_v61, 4  ;;  %s8542_s19 = scalar_lea.vmem [#allocation2], %s5002_s18 }
 0x163   : > { %v2463_v57 = vrot.slane %v2461_v54, 5  ;;  %v2430_v32 = vsel %vm6777_vm4, %v2425_v0, %v8441_v43  ;;  %v4355_v34 = vsel %vm7013_vm7, %v5437_v28, %v4354_v63  ;;  %v2440_v1 = vsel %vm6777_vm4, %v2435_v47, %v2439_v41  ;;  %v8533_v54 = vld [vmem:[%s8651_s2] ss:$0 sm:$0xff]  ;;  %s4914_s23 = sshll.u32 %s8542_s19, 4  ;;  %s8597_s23 = int_to_ptr.vmem [resolvable:$true] %s4914_s23 }
 0x164   : > { %v4358_v11 = vsel %vm7013_vm7, %v4356_v38, %v4357_v6  ;;  %v2472_v27 = vor.u32 %v8445_v37, %v8317_v26  ;;  %v2485_v52 = vshll.u32 %v6559_v31, 16  ;;  %v4362_v8 = vsel %vm7013_vm7, %v5438_v7, %v4361_v53  ;;  %s6561_s29 = scalar_lea.vmem %s8597_s23, 2048  ;;  %p6568_p1 = scmp.lt.s32.totalorder %s8597_s23, %s6566_s4 }
 0x165   : > { %v4365_v48 = vsel %vm7013_vm7, %v4363_v10, %v4364_v23  ;;  %v2482_v9 = vor.u32 %v2481_v29, %v2477_v33  ;;  %v4368_v30 = vrot.slane %v6560_v14, 5  ;;  %v2454_v26 = vsel %vm6777_vm4, %v2449_v2, %v8448_v45  ;;  %p6562_p12 = scmp.ne.s32.totalorder %s8597_s23, %s6561_s29  ;;  %p6569_p2 = scmp.lt.s32.totalorder %s6567_s5, %s6561_s29 }
 0x166   : > { %v2464_v43 = vsel %vm6777_vm4, %v2459_v21, %v2463_v57  ;;  %v5291_v4 = vcombine.low %v2430_v32, %v2440_v1  ;;  %v5453_v62 = vcombine.low %v4355_v34, %v4358_v11  ;;  %v5454_v19 = vcombine.low %v4362_v8, %v4365_v48 }
 0x167   : > { %5950 = vmatmul.mubr.msk.bf16.gmra.mrb[20].mxu1 %vm830_vm3, %v5289_v17  ;;  %6086 = vmatmul.mubr.msk.bf16.gmra.mrb[20].mxu0 %vm830_vm3, %v5451_v25  ;;  %v2473_v56 = vrot.slane %v2472_v27, 4  ;;  %v2487_v40 = vrot.slane %v2485_v52, 5  ;;  %v5439_v37 = vrot.slane %v5131_v58, 9  ;;  %v5292_v25 = vcombine.low %v2454_v26, %v2464_v43  ;;  %p6563_p13 = pnand %p6562_p12, %p6704_p4  ;;  %p6570_p3 = por %p6569_p2, %p6568_p1 }
 0x168   : > { %5953 = vmatprep.mubr.msk.bf16.mxu1 %vm830_vm3, %v5290_v5  ;;  %6089 = vmatprep.mubr.msk.bf16.mxu0 %vm830_vm3, %v5452_v51  ;;  %v2483_v46 = vrot.slane %v2482_v9, 4  ;;  %v4370_v17 = vrot.slane %v4368_v30, 4  ;;  %v4371_v60 = vrot.slane %v8086_v55, 5 }
 0x169   : > { %v2478_v45 = vsel %vm6777_vm4, %v2473_v56, %v2477_v33  ;;  %v4369_v16 = vsel %vm7013_vm7, %v5439_v37, %v4368_v30  ;;  %p6564_p0 = pneg %p6563_p13 }
 0x16a   : > { %v2488_v3 = vsel %vm6777_vm4, %v2483_v46, %v2487_v40  ;;  %v4372_v55 = vsel %vm7013_vm7, %v4370_v17, %v4371_v60 }
 0x16b   : > { %v5293_v18 = vcombine.low %v2478_v45, %v2488_v3  ;;  %v5455_v36 = vcombine.low %v4369_v16, %v4372_v55  ;;  %p6571_p5 = pnand %p6570_p3, %p6564_p0 }
 0x16f   : > { %5954 = vmatmul.mubr.msk.bf16.gmra.mrb[24].mxu1 %vm830_vm3, %v5291_v4  ;;  %6090 = vmatmul.mubr.msk.bf16.gmra.mrb[24].mxu0 %vm830_vm3, %v5453_v62 }
 0x170   : > { %5957 = vmatprep.mubr.msk.bf16.mxu1 %vm830_vm3, %v5292_v25  ;;  %6093 = vmatprep.mubr.msk.bf16.mxu0 %vm830_vm3, %v5454_v19 }
 0x177   : > { %5958 = vmatmul.mubr.msk.bf16.gmra.mrb[28].mxu1 %vm830_vm3, %v5293_v18  ;;  %6094 = vmatmul.mubr.msk.bf16.gmra.mrb[28].mxu0 %vm830_vm3, %v5455_v36 }
 0x1f2   : > { %v5897_v20 = vpop.f32.mrb[0].mxu1 }
 0x1f3   : > { %v1946_v22 = vpop.f32.mrb[1].mxu1 }
 0x1f4   : > { %v5898_v12 = vpop.f32.mrb[2].mxu1 }
 0x1f5   : > { %v1949_v49 = vpop.f32.mrb[3].mxu1 }
 0x1fa   : > { %v5901_v63 = vpop.f32.mrb[4].mxu1 }
 0x1fb   : > { %v1962_v39 = vpop.f32.mrb[5].mxu1 }
 0x1fc   : > { %v5902_v35 = vpop.f32.mrb[6].mxu1 }
 0x1fd   : > { %v1965_v24 = vpop.f32.mrb[7].mxu1 }
 0x202   : > { %v5905_v59 = vpop.f32.mrb[8].mxu1 }
 0x203   : > { %v1978_v53 = vpop.f32.mrb[9].mxu1 }
 0x204   : > { %v5906_v50 = vpop.f32.mrb[10].mxu1 }
 0x205   : > { %v1981_v15 = vpop.f32.mrb[11].mxu1 }
 0x20a   : > { %v8522_v13 = vpop.f32.mrb[12].mxu1 }
 0x20b   : > { %v8524_v28 = vpop.f32.mrb[13].mxu1 }
 0x20c   : > { %v8526_v44 = vpop.f32.mrb[14].mxu1 }
 0x20d   : > { %v8528_v61 = vpop.f32.mrb[15].mxu1 }
 0x212   : > { %v6067_v42 = vpop.f32.mrb[0].mxu0 }
 0x213   : > { %v6099_v51 = vadd.f32 %v6067_v42, %v5897_v20  ;;  %v4507_v0 = vpop.f32.mrb[1].mxu0 }
 0x214   : > { %v6100_v41 = vadd.f32 %v4507_v0, %v1946_v22  ;;  %v6068_v6 = vpop.f32.mrb[2].mxu0 }
 0x215   : > { %v4675_v5 = vadd.f32 %v6099_v51, %v8533_v54  ;;  %v6101_v47 = vadd.f32 %v6068_v6, %v5898_v12  ;;  %v4510_v38 = vpop.f32.mrb[3].mxu0 }
 0x216   : > { %v4673_v7 = vadd.f32 %v6100_v41, %v8533_v54  ;;  %v6102_v10 = vadd.f32 %v4510_v38, %v1949_v49 }
 0x217   : > { %v4676_v23 = vadd.f32 %v6101_v47, %v8533_v54  ;;  %v4707_v29 = vmax.f32 %v4675_v5, 0.0 }
 0x218   : > { %v4674_v33 = vadd.f32 %v6102_v10, %v8533_v54  ;;  %v4705_v21 = vmax.f32 %v4673_v7, 0.0 }
 0x219   : > { %v4708_v2 = vmax.f32 %v4676_v23, 0.0 }
 0x21a   : > { %v4706_v57 = vmax.f32 %v4674_v33, 0.0  ;;  %v6071_v32 = vpop.f32.mrb[4].mxu0 }
 0x21b   : > { %v5551_v34 = vpack.c.bf16 %v4708_v2, %v4707_v29  ;;  %v6103_v1 = vadd.f32 %v6071_v32, %v5901_v63  ;;  %v4523_v11 = vpop.f32.mrb[5].mxu0 }
 0x21c   : > { %v5546_v27 = vpack.c.bf16 %v4706_v57, %v4705_v21  ;;  %v6104_v31 = vadd.f32 %v4523_v11, %v1962_v39  ;;  %v6072_v52 = vpop.f32.mrb[6].mxu0 }
 0x21d   : > { %5623 = vst [vmem:[%s8542_s19 + $0x8] sm:$0xff] %v5551_v34   ;;  %v4679_v8 = vadd.f32 %v6103_v1, %v8533_v54  ;;  %v6105_v48 = vadd.f32 %v6072_v52, %v5902_v35  ;;  %v4526_v9 = vpop.f32.mrb[7].mxu0 }
 0x21e   : > { %5547 = vst [vmem:[%s8542_s19] sm:$0xff] %v5546_v27   ;;  %v4677_v58 = vadd.f32 %v6104_v31, %v8533_v54  ;;  %v6106_v14 = vadd.f32 %v4526_v9, %v1965_v24 }
 0x21f   : > { %v4680_v30 = vadd.f32 %v6105_v48, %v8533_v54  ;;  %v4711_v43 = vmax.f32 %v4679_v8, 0.0 }
 0x220   : > { %v4678_v26 = vadd.f32 %v6106_v14, %v8533_v54  ;;  %v4709_v62 = vmax.f32 %v4677_v58, 0.0 }
 0x221   : > { %v4712_v4 = vmax.f32 %v4680_v30, 0.0 }
 0x222   : > { %v4710_v19 = vmax.f32 %v4678_v26, 0.0  ;;  %v6075_v56 = vpop.f32.mrb[8].mxu0 }
 0x223   : > { %v5561_v40 = vpack.c.bf16 %v4712_v4, %v4711_v43  ;;  %v6107_v37 = vadd.f32 %v6075_v56, %v5905_v59  ;;  %v4539_v25 = vpop.f32.mrb[9].mxu0 }
 0x224   : > { %v5556_v46 = vpack.c.bf16 %v4710_v19, %v4709_v62  ;;  %v6108_v17 = vadd.f32 %v4539_v25, %v1978_v53  ;;  %v6076_v60 = vpop.f32.mrb[10].mxu0 }
 0x225   : > { %5625 = vst [vmem:[%s8542_s19 + $0x18] sm:$0xff] %v5561_v40   ;;  %v4683_v45 = vadd.f32 %v6107_v37, %v8533_v54  ;;  %v6109_v3 = vadd.f32 %v6076_v60, %v5906_v50  ;;  %v4542_v16 = vpop.f32.mrb[11].mxu0 }
 0x226   : > { %5624 = vst [vmem:[%s8542_s19 + $0x10] sm:$0xff] %v5556_v46   ;;  %v4681_v55 = vadd.f32 %v6108_v17, %v8533_v54  ;;  %v6110_v18 = vadd.f32 %v4542_v16, %v1981_v15 }
 0x227   : > { %v4684_v36 = vadd.f32 %v6109_v3, %v8533_v54  ;;  %v4715_v22 = vmax.f32 %v4683_v45, 0.0 }
 0x228   : > { %v4682_v20 = vadd.f32 %v6110_v18, %v8533_v54  ;;  %v4713_v49 = vmax.f32 %v4681_v55, 0.0 }
 0x229   : > { %v4716_v12 = vmax.f32 %v4684_v36, 0.0 }
 0x22a   : > { %v4714_v63 = vmax.f32 %v4682_v20, 0.0  ;;  %v6079_v39 = vpop.f32.mrb[12].mxu0 }
 0x22b   : > { %v5571_v35 = vpack.c.bf16 %v4716_v12, %v4715_v22  ;;  %v6111_v24 = vadd.f32 %v6079_v39, %v8522_v13  ;;  %v4555_v59 = vpop.f32.mrb[13].mxu0 }
 0x22c   : > { %v5566_v53 = vpack.c.bf16 %v4714_v63, %v4713_v49  ;;  %v6112_v50 = vadd.f32 %v4555_v59, %v8524_v28  ;;  %v6080_v42 = vpop.f32.mrb[14].mxu0 }
 0x22d   : > { %5627 = vst [vmem:[%s8542_s19 + $0x28] sm:$0xff] %v5571_v35   ;;  %v4687_v15 = vadd.f32 %v6111_v24, %v8533_v54  ;;  %v6113_v51 = vadd.f32 %v6080_v42, %v8526_v44  ;;  %v4558_v0 = vpop.f32.mrb[15].mxu0 }
 0x22e   : > { %5626 = vst [vmem:[%s8542_s19 + $0x20] sm:$0xff] %v5566_v53   ;;  %v4685_v41 = vadd.f32 %v6112_v50, %v8533_v54  ;;  %v6114_v6 = vadd.f32 %v4558_v0, %v8528_v61 }
 0x22f   : > { %v4688_v5 = vadd.f32 %v6113_v51, %v8533_v54  ;;  %v4719_v47 = vmax.f32 %v4687_v15, 0.0 }
 0x230   : > { %v4686_v13 = vadd.f32 %v6114_v6, %v8533_v54  ;;  %v4717_v28 = vmax.f32 %v4685_v41, 0.0 }
 0x231   : > { %v4720_v38 = vmax.f32 %v4688_v5, 0.0 }
 0x232   : > { %v4718_v7 = vmax.f32 %v4686_v13, 0.0  ;;  %v5947_v10 = vpop.f32.mrb[16].mxu1  ;;  %v6083_v23 = vpop.f32.mrb[16].mxu0 }
 0x233   : > { %v5581_v33 = vpack.c.bf16 %v4720_v38, %v4719_v47  ;;  %v6115_v44 = vadd.f32 %v6083_v23, %v5947_v10  ;;  %v2687_v29 = vpop.f32.mrb[17].mxu1  ;;  %v4571_v2 = vpop.f32.mrb[17].mxu0 }
 0x234   : > { %v5576_v21 = vpack.c.bf16 %v4718_v7, %v4717_v28  ;;  %v6116_v57 = vadd.f32 %v4571_v2, %v2687_v29  ;;  %v5948_v32 = vpop.f32.mrb[18].mxu1  ;;  %v6084_v61 = vpop.f32.mrb[18].mxu0 }
 0x235   : > { %5629 = vst [vmem:[%s8542_s19 + $0x38] sm:$0xff] %v5581_v33   ;;  %v4691_v34 = vadd.f32 %v6115_v44, %v8533_v54  ;;  %v6117_v1 = vadd.f32 %v6084_v61, %v5948_v32  ;;  %v2690_v11 = vpop.f32.mrb[19].mxu1  ;;  %v4574_v27 = vpop.f32.mrb[19].mxu0 }
 0x236   : > { %5628 = vst [vmem:[%s8542_s19 + $0x30] sm:$0xff] %v5576_v21   ;;  %v4689_v31 = vadd.f32 %v6116_v57, %v8533_v54  ;;  %v6118_v52 = vadd.f32 %v4574_v27, %v2690_v11 }
 0x237   : > { %v4692_v8 = vadd.f32 %v6117_v1, %v8533_v54  ;;  %v4723_v9 = vmax.f32 %v4691_v34, 0.0 }
 0x238   : > { %v4690_v48 = vadd.f32 %v6118_v52, %v8533_v54  ;;  %v4721_v14 = vmax.f32 %v4689_v31, 0.0 }
 0x239   : > { %v4724_v58 = vmax.f32 %v4692_v8, 0.0 }
 0x23a   : > { %v4722_v30 = vmax.f32 %v4690_v48, 0.0  ;;  %v5951_v26 = vpop.f32.mrb[20].mxu1  ;;  %v6087_v43 = vpop.f32.mrb[20].mxu0 }
 0x23b   : > { %v5591_v4 = vpack.c.bf16 %v4724_v58, %v4723_v9  ;;  %v6119_v62 = vadd.f32 %v6087_v43, %v5951_v26  ;;  %v2703_v19 = vpop.f32.mrb[21].mxu1  ;;  %v4587_v56 = vpop.f32.mrb[21].mxu0 }
 0x23c   : > { %v5586_v40 = vpack.c.bf16 %v4722_v30, %v4721_v14  ;;  %v6120_v37 = vadd.f32 %v4587_v56, %v2703_v19  ;;  %v5952_v25 = vpop.f32.mrb[22].mxu1  ;;  %v6088_v46 = vpop.f32.mrb[22].mxu0 }
 0x23d   : > { %5631 = vst [vmem:[%s8542_s19 + $0x48] sm:$0xff] %v5591_v4   ;;  %v4695_v17 = vadd.f32 %v6119_v62, %v8533_v54  ;;  %v6121_v60 = vadd.f32 %v6088_v46, %v5952_v25  ;;  %v2706_v45 = vpop.f32.mrb[23].mxu1  ;;  %v4590_v3 = vpop.f32.mrb[23].mxu0 }
 0x23e   : > { %5630 = vst [vmem:[%s8542_s19 + $0x40] sm:$0xff] %v5586_v40   ;;  %v4693_v16 = vadd.f32 %v6120_v37, %v8533_v54  ;;  %v6122_v55 = vadd.f32 %v4590_v3, %v2706_v45 }
 0x23f   : > { %v4696_v18 = vadd.f32 %v6121_v60, %v8533_v54  ;;  %v4727_v20 = vmax.f32 %v4695_v17, 0.0 }
 0x240   : > { %v4694_v36 = vadd.f32 %v6122_v55, %v8533_v54  ;;  %v4725_v12 = vmax.f32 %v4693_v16, 0.0 }
 0x241   : > { %v4728_v22 = vmax.f32 %v4696_v18, 0.0 }
 0x242   : > { %v4726_v49 = vmax.f32 %v4694_v36, 0.0  ;;  %v5955_v63 = vpop.f32.mrb[24].mxu1  ;;  %v6091_v39 = vpop.f32.mrb[24].mxu0 }
 0x243   : > { %v5601_v35 = vpack.c.bf16 %v4728_v22, %v4727_v20  ;;  %v6123_v24 = vadd.f32 %v6091_v39, %v5955_v63  ;;  %v2719_v59 = vpop.f32.mrb[25].mxu1  ;;  %v4603_v53 = vpop.f32.mrb[25].mxu0 }
 0x244   : > { %v5596_v50 = vpack.c.bf16 %v4726_v49, %v4725_v12  ;;  %v6124_v42 = vadd.f32 %v4603_v53, %v2719_v59  ;;  %v5956_v15 = vpop.f32.mrb[26].mxu1  ;;  %v6092_v51 = vpop.f32.mrb[26].mxu0 }
 0x245   : > { %5633 = vst [vmem:[%s8542_s19 + $0x58] sm:$0xff] %v5601_v35   ;;  %v4699_v0 = vadd.f32 %v6123_v24, %v8533_v54  ;;  %v6125_v41 = vadd.f32 %v6092_v51, %v5956_v15  ;;  %v2722_v6 = vpop.f32.mrb[27].mxu1  ;;  %v4606_v5 = vpop.f32.mrb[27].mxu0 }
 0x246   : > { %5632 = vst [vmem:[%s8542_s19 + $0x50] sm:$0xff] %v5596_v50   ;;  %v4697_v13 = vadd.f32 %v6124_v42, %v8533_v54  ;;  %v6126_v47 = vadd.f32 %v4606_v5, %v2722_v6 }
 0x247   : > { %v4700_v38 = vadd.f32 %v6125_v41, %v8533_v54  ;;  %v4731_v7 = vmax.f32 %v4699_v0, 0.0 }
 0x248   : > { %v4698_v28 = vadd.f32 %v6126_v47, %v8533_v54  ;;  %v4729_v23 = vmax.f32 %v4697_v13, 0.0 }
 0x249   : > { %v4732_v10 = vmax.f32 %v4700_v38, 0.0 }
 0x24a   : > { %v4730_v33 = vmax.f32 %v4698_v28, 0.0  ;;  %v5959_v44 = vpop.f32.mrb[28].mxu1  ;;  %v6095_v29 = vpop.f32.mrb[28].mxu0 }
 0x24b   : > { %v5611_v2 = vpack.c.bf16 %v4732_v10, %v4731_v7  ;;  %v6127_v21 = vadd.f32 %v6095_v29, %v5959_v44  ;;  %v2735_v57 = vpop.f32.mrb[29].mxu1  ;;  %v4619_v32 = vpop.f32.mrb[29].mxu0 }
 0x24c   : > { %v5606_v61 = vpack.c.bf16 %v4730_v33, %v4729_v23  ;;  %v6128_v34 = vadd.f32 %v4619_v32, %v2735_v57  ;;  %v5960_v1 = vpop.f32.mrb[30].mxu1  ;;  %v6096_v11 = vpop.f32.mrb[30].mxu0 }
 0x24d   : > { %5635 = vst [vmem:[%s8542_s19 + $0x68] sm:$0xff] %v5611_v2   ;;  %v4703_v27 = vadd.f32 %v6127_v21, %v8533_v54  ;;  %v6129_v31 = vadd.f32 %v6096_v11, %v5960_v1  ;;  %v2738_v52 = vpop.f32.mrb[31].mxu1  ;;  %v4622_v8 = vpop.f32.mrb[31].mxu0 }
 0x24e   : > { %5634 = vst [vmem:[%s8542_s19 + $0x60] sm:$0xff] %v5606_v61   ;;  %v4701_v48 = vadd.f32 %v6128_v34, %v8533_v54  ;;  %v6130_v9 = vadd.f32 %v4622_v8, %v2738_v52 }
 0x24f   : > { %v4704_v58 = vadd.f32 %v6129_v31, %v8533_v54  ;;  %v4735_v30 = vmax.f32 %v4703_v27, 0.0 }
 0x250   : > { %v4702_v14 = vadd.f32 %v6130_v9, %v8533_v54  ;;  %v4733_v43 = vmax.f32 %v4701_v48, 0.0 }
 0x251   : > { %v4736_v26 = vmax.f32 %v4704_v58, 0.0 }
 0x252   : > { %v4734_v4 = vmax.f32 %v4702_v14, 0.0 }
 0x253   : > { %v5621_v62 = vpack.c.bf16 %v4736_v26, %v4735_v30 }
 0x254   : > { %v5616_v19 = vpack.c.bf16 %v4734_v4, %v4733_v43 }
 0x255   : > { %5637 = vst [vmem:[%s8542_s19 + $0x78] sm:$0xff] %v5621_v62  }
 0x256   : > { %5636 = vst [vmem:[%s8542_s19 + $0x70] sm:$0xff] %v5616_v19  }
 0x257   : > { %6574 = shalt.err (!%p6571_p5)
}
 0x258   : > { %s6575_s6 = scalar_lea.hbm %s8595_s28, 2048  ;;  %s6579_s9 = scalar_lea.hbm %s8652_s3, 4096 }
 0x259   : > { %p6576_p6 = scmp.ne.s32.totalorder %s8595_s28, %s6575_s6  ;;  %p6580_p10 = scmp.lt.u32.totalorder %s8595_s28, %s8652_s3 }
 0x25a   : > { %p6581_p11 = scmp.lt.u32.totalorder %s6579_s9, %s6575_s6  ;;  %p6583_p13 = scmp.lt.u32.totalorder %s6575_s6, %s8595_s28 }
 0x25b   : > { %p6577_p7 = pnand %p6576_p6, %p6704_p4 }
 0x25c   : > { %p6582_p12 = por %p6581_p11, %p6580_p10 }
 0x25d   : > { %p6578_p9 = pneg %p6577_p7 }
 0x25e   : > { %p6584_p0 = por %p6583_p13, %p6582_p12 }
 0x260   : > { %p6585_p1 = pnand %p6584_p0, %p6578_p9 }
 0x262   : > { %6588 = shalt.err (!%p6585_p1)
}
 0x263   : > { %s6642_s18 = smov 64   ;;  %s6643_s19 = smov 4  }
 0x264   : > { %6366 = dma.vmem_to_hbm [thread:$0]  (%p6704_p4), %s8597_s23, 2048, %s8595_s28, %s8603_s15, %s6642_s18, %s6642_s18, %s6643_s19  }
 0x265 PF: > { %p6372_p2 = scmp.ge.s32.totalorder %s6639_s17, 2  ;;  %s4929_s21 = sand.u32 1, %s6619_s12  }
 0x266   : > { %s4930_s26 = scalar_lea.sflag [#allocation3], %s4929_s21 }
 0x267   : > { %p6369_p3 = pnand %p6372_p2, %p6711_p8 }
 0x269   : > { %6614 = dma.done.wait (!%p6369_p3), %s4930_s26, 2048  }
 0x26a   : > { %6616 = vsyncadd (!%p6369_p3), %s4930_s26, 4294965248  ;;  %s16_s17 = sadd.s32 1, %s6639_s17   ;;  %s8719_s12 = smov %s6623_s13 }
 0x26b   : > { %p13_p5 = scmp.ge.s32.totalorder %s16_s17, 4   ;;  %s8720_s13 = smov %s6627_s14 }
 0x26c   : > { %s8721_s14 = smov %s6717_s25  ;;  %s8722_s15 = smov %s6635_s16 }
 0x26d   : > { %s8723_s16 = smov %s8725_s20  ;;  %15 = sbr.rel (!%p13_p5) target bundleno = 4 (0x4), region = 70 }
 0x274   :  { %4935 = vsyncpa [#allocation3], 1 }
 0x275   :  { %4937 = vsyncpa [#allocation3 + $0x1], 1 }

</bundles_post_ra>
